<compile_context>
chip_gen: v7x
topology: tpu7x:2x2x1
jax: 0.10.0
libtpu: 0.0.40
codegen_flags: <defaults>
</compile_context>

<pallas_src>
import functools
import math

import jax
import jax.numpy as jnp
import numpy as np
from jax import lax
from jax.experimental import pallas as pl
from jax.experimental.pallas import tpu as pltpu


def _layernorm(x, g, b, eps=1e-5):
    mu = jnp.mean(x, axis=-1, keepdims=True)
    var = jnp.mean((x - mu) ** 2, axis=-1, keepdims=True)
    return (x - mu) * lax.rsqrt(var + eps) * g + b


def stable_block_kernel(
    x_ref,
    ln1_g_ref, ln1_b_ref,
    wq_ref, wk_ref, wv_ref,          # (H, C, hd) bf16 each
    wproj_ref, bproj_ref,            # (H, hd, C) bf16, (1, C) f32
    ln2_g_ref, ln2_b_ref,
    wfc1_ref, bfc1_ref,              # (C, hidden) bf16, (1, hidden) f32
    wfc2_ref, bfc2_ref,              # (hidden, C) bf16, (1, C) f32
    out_ref,
    *, num_heads, max_attn_val,
):
    f32 = jnp.float32
    bf16 = jnp.bfloat16
    bdims = ((0,), (0,))             # head axis is the batch dim of every dot

    x = x_ref[...].astype(f32)       # (N, C)
    N, C = x.shape
    H = num_heads
    hd = C // H

    # Fold 1/sqrt(hd) (query scale) and 1/max_attn_val (soft-cap divide) into
    # one constant multiply on the raw logits; multiply back by the cap after
    # tanh.  Saves two full element-wise passes and a VPU divide.
    cap = f32(max_attn_val)
    scale_over_cap = f32((hd ** -0.5) / max_attn_val)

    # ---------------- attention branch: x + proj(attn(LN1(x))) -------------
    xn = _layernorm(x, ln1_g_ref[...], ln1_b_ref[...])
    xnb = xn.astype(bf16)
    # Create the head axis as a *leading* (untiled) dim once, so every matmul
    # below is a plain head-batched dot_general with no minor-dim reshape,
    # transpose or concatenate inside the kernel.
    xh = jnp.broadcast_to(xnb[None], (H, N, C))                       # bf16

    q = lax.dot_general(xh, wq_ref[...], (((2,), (1,)), bdims),
                        preferred_element_type=f32).astype(bf16)      # (H,N,hd)
    k = lax.dot_general(xh, wk_ref[...], (((2,), (1,)), bdims),
                        preferred_element_type=f32).astype(bf16)      # (H,N,hd)
    v = lax.dot_general(xh, wv_ref[...], (((2,), (1,)), bdims),
                        preferred_element_type=f32).astype(bf16)      # (H,N,hd)

    # scores: contract head_dim of q and k directly (no materialized k.T)
    s = lax.dot_general(q, k, (((2,), (2,)), bdims),
                        preferred_element_type=f32)                   # (H,N,N)
    s = cap * jnp.tanh(s * scale_over_cap)                            # soft cap
    m = jnp.max(s, axis=-1, keepdims=True)
    e = jnp.exp(s - m)
    denom = jnp.sum(e, axis=-1, keepdims=True)
    p = e * pl.reciprocal(denom, approx=True)                         # softmax

    o = lax.dot_general(p.astype(bf16), v, (((2,), (1,)), bdims),
                        preferred_element_type=f32).astype(bf16)      # (H,N,hd)

    # Output projection done per head (batched) then reduced over the cheap
    # leading head axis — replaces concatenate + (N,C)@(C,C).
    a = lax.dot_general(o, wproj_ref[...], (((2,), (1,)), bdims),
                        preferred_element_type=f32)                   # (H,N,C)
    a = jnp.sum(a, axis=0) + bproj_ref[...]                           # (N, C)
    x1 = x + a

    # ---------------- MLP branch: x1 + fc2(gelu(fc1(LN2(x1)))) --------------
    xn2 = _layernorm(x1, ln2_g_ref[...], ln2_b_ref[...]).astype(bf16)
    h1 = jnp.dot(xn2, wfc1_ref[...], preferred_element_type=f32) + bfc1_ref[...]
    # exact GELU (erf form), matching nn.GELU() default
    h1 = 0.5 * h1 * (1.0 + lax.erf(h1 * f32(1.0 / math.sqrt(2.0))))
    h2 = jnp.dot(h1.astype(bf16), wfc2_ref[...],
                 preferred_element_type=f32) + bfc2_ref[...]

    out_ref[...] = (x1 + h2).astype(out_ref.dtype)


def _rep_spec(shape):
    """Grid-invariant (replicated) block spec covering the whole array."""
    # NOTE: these are grid-invariant; for production sizes they should be
    # single-buffered (pl.Buffered(1)) or staged once into VMEM scratch so the
    # default 2-deep pipelining does not double the resident weight footprint.
    nd = len(shape)
    return pl.BlockSpec(shape, lambda b, _nd=nd: (0,) * _nd)


def prepare_params(p, num_heads):
    """Split / reshape PyTorch-layout weights into the kernel's layout (bf16)."""
    C = p["w_qkv"].shape[0]
    H = num_heads
    hd = C // H
    bf16 = jnp.bfloat16
    # PyTorch layout of the 3C output axis is [qkv_idx, head, head_dim].
    w3 = p["w_qkv"].reshape(C, 3, H, hd)
    return {
        "ln1_g": p["ln1_g"], "ln1_b": p["ln1_b"],
        "w_q": jnp.transpose(w3[:, 0], (1, 0, 2)).astype(bf16),   # (H, C, hd)
        "w_k": jnp.transpose(w3[:, 1], (1, 0, 2)).astype(bf16),
        "w_v": jnp.transpose(w3[:, 2], (1, 0, 2)).astype(bf16),
        "w_proj": p["w_proj"].reshape(H, hd, C).astype(bf16),     # (H, hd, C)
        "b_proj": p["b_proj"],
        "ln2_g": p["ln2_g"], "ln2_b": p["ln2_b"],
        "w_fc1": p["w_fc1"].astype(bf16), "b_fc1": p["b_fc1"],
        "w_fc2": p["w_fc2"].astype(bf16), "b_fc2": p["b_fc2"],
    }


def stable_block(x, kp, *, num_heads, max_attn_val=30.0):
    B, N, C = x.shape
    assert C % num_heads == 0
    H = num_heads
    hd = C // H
    hidden = kp["w_fc1"].shape[1]
    kernel = functools.partial(
        stable_block_kernel, num_heads=num_heads, max_attn_val=max_attn_val
    )
    return pl.pallas_call(
        kernel,
        out_shape=jax.ShapeDtypeStruct((B, N, C), x.dtype),
        grid=(B,),
        in_specs=[
            # batch dim squeezed: kernel sees a lane-dense (N, C) tile
            pl.BlockSpec((None, N, C), lambda b: (b, 0, 0)),
            _rep_spec((1, C)), _rep_spec((1, C)),                    # ln1 g, b
            _rep_spec((H, C, hd)), _rep_spec((H, C, hd)), _rep_spec((H, C, hd)),
            _rep_spec((H, hd, C)), _rep_spec((1, C)),                # proj w, b
            _rep_spec((1, C)), _rep_spec((1, C)),                    # ln2 g, b
            _rep_spec((C, hidden)), _rep_spec((1, hidden)),          # fc1
            _rep_spec((hidden, C)), _rep_spec((1, C)),               # fc2
        ],
        out_specs=pl.BlockSpec((None, N, C), lambda b: (b, 0, 0)),
        compiler_params=pltpu.CompilerParams(
            dimension_semantics=("parallel",),
            vmem_limit_bytes=32 * 1024 * 1024,   # explicit, with v7x headroom
        ),
    )(
        x,
        kp["ln1_g"], kp["ln1_b"],
        kp["w_q"], kp["w_k"], kp["w_v"],
        kp["w_proj"], kp["b_proj"],
        kp["ln2_g"], kp["ln2_b"],
        kp["w_fc1"], kp["b_fc1"],
        kp["w_fc2"], kp["b_fc2"],
    )


def stable_block_ref(x, params, *, num_heads, max_attn_val=30.0):
    """Pure-JAX f32 reference (original weight layout) for a sanity check."""
    B, N, C = x.shape
    hd = C // num_heads
    scale = hd ** (-0.5)

    def ln(v, g, b, eps=1e-5):
        mu = v.mean(-1, keepdims=True)
        var = ((v - mu) ** 2).mean(-1, keepdims=True)
        return (v - mu) / jnp.sqrt(var + eps) * g + b

    xn = ln(x, params["ln1_g"][0], params["ln1_b"][0])
    qkv = xn @ params["w_qkv"]                                    # (B,N,3C)
    qkv = qkv.reshape(B, N, 3, num_heads, hd).transpose(2, 0, 3, 1, 4)
    q, k, v = qkv[0], qkv[1], qkv[2]                              # (B,H,N,hd)
    s = (q * scale) @ k.transpose(0, 1, 3, 2)
    s = max_attn_val * jnp.tanh(s / max_attn_val)
    p = jax.nn.softmax(s, axis=-1)
    a = (p @ v).transpose(0, 2, 1, 3).reshape(B, N, C)
    a = a @ params["w_proj"] + params["b_proj"][0]
    x1 = x + a
    xn2 = ln(x1, params["ln2_g"][0], params["ln2_b"][0])
    h1 = xn2 @ params["w_fc1"] + params["b_fc1"][0]
    h1 = 0.5 * h1 * (1.0 + lax.erf(h1 / jnp.sqrt(2.0)))
    h2 = h1 @ params["w_fc2"] + params["b_fc2"][0]
    return x1 + h2


if __name__ == "__main__":
    # Small but lane-aligned config (C multiple of 128 so every vreg/store is
    # lane-dense): dim=128, heads=2 (head_dim=64), mlp_ratio=4, seq=128.
    B, N, C = 2, 128, 128
    num_heads = 2
    hidden = int(C * 4.0)

    key = jax.random.PRNGKey(0)
    ks = jax.random.split(key, 8)

    params = {
        "ln1_g": jnp.ones((1, C), jnp.float32),
        "ln1_b": jnp.zeros((1, C), jnp.float32),
        "w_qkv": (0.05 * jax.random.normal(ks[0], (C, 3 * C))).astype(jnp.float32),
        "w_proj": (0.05 * jax.random.normal(ks[1], (C, C))).astype(jnp.float32),
        "b_proj": (0.01 * jax.random.normal(ks[2], (1, C))).astype(jnp.float32),
        "ln2_g": jnp.ones((1, C), jnp.float32),
        "ln2_b": jnp.zeros((1, C), jnp.float32),
        "w_fc1": (0.05 * jax.random.normal(ks[3], (C, hidden))).astype(jnp.float32),
        "b_fc1": (0.01 * jax.random.normal(ks[4], (1, hidden))).astype(jnp.float32),
        "w_fc2": (0.05 * jax.random.normal(ks[5], (hidden, C))).astype(jnp.float32),
        "b_fc2": (0.01 * jax.random.normal(ks[6], (1, C))).astype(jnp.float32),
    }

    x = jax.random.normal(ks[7], (B, N, C), dtype=jnp.float32)

    kparams = prepare_params(params, num_heads)
    out = stable_block(x, kparams, num_heads=num_heads)
    out = jax.block_until_ready(out)

    ref = stable_block_ref(x, params, num_heads=num_heads)
    # bf16 MXU operands + approx reciprocal -> looser tolerance than pure f32.
    np.testing.assert_allclose(np.asarray(out), np.asarray(ref),
                               rtol=2e-2, atol=2e-2)

    print("KERNEL_OK")
</pallas_src>

<mosaic_0001>
module attributes {stable_mosaic.version = 11 : i64} {
  func.func @stable_block_kernel(%arg0: i32, %arg1: memref<1x128x128xf32, #tpu.memory_space<vmem>>, %arg2: memref<1x128xf32, #tpu.memory_space<vmem>>, %arg3: memref<1x128xf32, #tpu.memory_space<vmem>>, %arg4: memref<2x128x64xbf16, #tpu.memory_space<vmem>>, %arg5: memref<2x128x64xbf16, #tpu.memory_space<vmem>>, %arg6: memref<2x128x64xbf16, #tpu.memory_space<vmem>>, %arg7: memref<2x64x128xbf16, #tpu.memory_space<vmem>>, %arg8: memref<1x128xf32, #tpu.memory_space<vmem>>, %arg9: memref<1x128xf32, #tpu.memory_space<vmem>>, %arg10: memref<1x128xf32, #tpu.memory_space<vmem>>, %arg11: memref<128x512xbf16, #tpu.memory_space<vmem>>, %arg12: memref<1x512xf32, #tpu.memory_space<vmem>>, %arg13: memref<512x128xbf16, #tpu.memory_space<vmem>>, %arg14: memref<1x128xf32, #tpu.memory_space<vmem>>, %arg15: memref<1x128x128xf32, #tpu.memory_space<vmem>>) attributes {dimension_semantics = [#tpu.dimension_semantics<parallel>], iteration_bounds = array<i64: 2>, scalar_prefetch = 0 : i64, scratch_operands = 0 : i64, tpu.core_type = #tpu.core_type<tc>, window_params = [{transform_indices = @transform_0, window_bounds = array<i64: 1, 128, 128>}, {pipeline_mode = #tpu.pipeline_mode<synchronous>, transform_indices = @transform_1, window_bounds = array<i64: 1, 128>}, {pipeline_mode = #tpu.pipeline_mode<synchronous>, transform_indices = @transform_2, window_bounds = array<i64: 1, 128>}, {pipeline_mode = #tpu.pipeline_mode<synchronous>, transform_indices = @transform_3, window_bounds = array<i64: 2, 128, 64>}, {pipeline_mode = #tpu.pipeline_mode<synchronous>, transform_indices = @transform_4, window_bounds = array<i64: 2, 128, 64>}, {pipeline_mode = #tpu.pipeline_mode<synchronous>, transform_indices = @transform_5, window_bounds = array<i64: 2, 128, 64>}, {pipeline_mode = #tpu.pipeline_mode<synchronous>, transform_indices = @transform_6, window_bounds = array<i64: 2, 64, 128>}, {pipeline_mode = #tpu.pipeline_mode<synchronous>, transform_indices = @transform_7, window_bounds = array<i64: 1, 128>}, {pipeline_mode = #tpu.pipeline_mode<synchronous>, transform_indices = @transform_8, window_bounds = array<i64: 1, 128>}, {pipeline_mode = #tpu.pipeline_mode<synchronous>, transform_indices = @transform_9, window_bounds = array<i64: 1, 128>}, {pipeline_mode = #tpu.pipeline_mode<synchronous>, transform_indices = @transform_10, window_bounds = array<i64: 128, 512>}, {pipeline_mode = #tpu.pipeline_mode<synchronous>, transform_indices = @transform_11, window_bounds = array<i64: 1, 512>}, {pipeline_mode = #tpu.pipeline_mode<synchronous>, transform_indices = @transform_12, window_bounds = array<i64: 512, 128>}, {pipeline_mode = #tpu.pipeline_mode<synchronous>, transform_indices = @transform_13, window_bounds = array<i64: 1, 128>}, {transform_indices = @transform_14, window_bounds = array<i64: 1, 128, 128>}]} {
    %c0 = arith.constant 0 : index
    %c0_0 = arith.constant 0 : index
    %c0_1 = arith.constant 0 : index
    %0 = vector.load %arg1[%c0, %c0_0, %c0_1] : memref<1x128x128xf32, #tpu.memory_space<vmem>>, vector<1x128x128xf32>
    %1 = vector.shape_cast %0 : vector<1x128x128xf32> to vector<128x128xf32>
    %c0_2 = arith.constant 0 : index
    %c0_3 = arith.constant 0 : index
    %2 = vector.load %arg2[%c0_2, %c0_3] : memref<1x128xf32, #tpu.memory_space<vmem>>, vector<1x128xf32>
    %c0_4 = arith.constant 0 : index
    %c0_5 = arith.constant 0 : index
    %3 = vector.load %arg3[%c0_4, %c0_5] : memref<1x128xf32, #tpu.memory_space<vmem>>, vector<1x128xf32>
    %cst = arith.constant dense<0.000000e+00> : vector<128xf32>
    %4 = vector.multi_reduction <add>, %1, %cst [1] : vector<128x128xf32> to vector<128xf32>
    %5 = vector.shape_cast %4 : vector<128xf32> to vector<128x1xf32>
    %cst_6 = arith.constant 1.280000e+02 : f32
    %6 = vector.broadcast %cst_6 : f32 to vector<128x1xf32>
    %7 = arith.divf %5, %6 : vector<128x1xf32>
    %8 = vector.broadcast %7 : vector<128x1xf32> to vector<128x128xf32>
    %9 = arith.subf %1, %8 : vector<128x128xf32>
    %10 = arith.mulf %9, %9 : vector<128x128xf32>
    %cst_7 = arith.constant dense<0.000000e+00> : vector<128xf32>
    %11 = vector.multi_reduction <add>, %10, %cst_7 [1] : vector<128x128xf32> to vector<128xf32>
    %12 = vector.shape_cast %11 : vector<128xf32> to vector<128x1xf32>
    %cst_8 = arith.constant 1.280000e+02 : f32
    %13 = vector.broadcast %cst_8 : f32 to vector<128x1xf32>
    %14 = arith.divf %12, %13 : vector<128x1xf32>
    %15 = vector.broadcast %7 : vector<128x1xf32> to vector<128x128xf32>
    %16 = arith.subf %1, %15 : vector<128x128xf32>
    %cst_9 = arith.constant 9.99999974E-6 : f32
    %17 = vector.broadcast %cst_9 : f32 to vector<128x1xf32>
    %18 = arith.addf %14, %17 : vector<128x1xf32>
    %19 = math.rsqrt %18 : vector<128x1xf32>
    %20 = vector.broadcast %19 : vector<128x1xf32> to vector<128x128xf32>
    %21 = arith.mulf %16, %20 : vector<128x128xf32>
    %22 = vector.broadcast %2 : vector<1x128xf32> to vector<128x128xf32>
    %23 = arith.mulf %21, %22 : vector<128x128xf32>
    %24 = vector.broadcast %3 : vector<1x128xf32> to vector<128x128xf32>
    %25 = arith.addf %23, %24 : vector<128x128xf32>
    %26 = arith.truncf %25 : vector<128x128xf32> to vector<128x128xbf16>
    %27 = vector.shape_cast %26 : vector<128x128xbf16> to vector<1x128x128xbf16>
    %28 = vector.shape_cast %27 : vector<1x128x128xbf16> to vector<1x128x128xbf16>
    %29 = vector.broadcast %28 : vector<1x128x128xbf16> to vector<2x128x128xbf16>
    %c0_10 = arith.constant 0 : index
    %c0_11 = arith.constant 0 : index
    %c0_12 = arith.constant 0 : index
    %30 = vector.load %arg4[%c0_10, %c0_11, %c0_12] : memref<2x128x64xbf16, #tpu.memory_space<vmem>>, vector<2x128x64xbf16>
    %cst_13 = arith.constant dense<0.000000e+00> : vector<2x128x64xf32>
    %31 = tpu.matmul %29, %30, %cst_13 {dimension_numbers = #tpu.dot_dimension_numbers<[2], [1], [1], [2], [0, 0, 0, 1, 1, 2], [0], [0]>} : vector<2x128x128xbf16>, vector<2x128x64xbf16>, vector<2x128x64xf32> -> vector<2x128x64xf32>
    %32 = arith.truncf %31 : vector<2x128x64xf32> to vector<2x128x64xbf16>
    %c0_14 = arith.constant 0 : index
    %c0_15 = arith.constant 0 : index
    %c0_16 = arith.constant 0 : index
    %33 = vector.load %arg5[%c0_14, %c0_15, %c0_16] : memref<2x128x64xbf16, #tpu.memory_space<vmem>>, vector<2x128x64xbf16>
    %cst_17 = arith.constant dense<0.000000e+00> : vector<2x128x64xf32>
    %34 = tpu.matmul %29, %33, %cst_17 {dimension_numbers = #tpu.dot_dimension_numbers<[2], [1], [1], [2], [0, 0, 0, 1, 1, 2], [0], [0]>} : vector<2x128x128xbf16>, vector<2x128x64xbf16>, vector<2x128x64xf32> -> vector<2x128x64xf32>
    %35 = arith.truncf %34 : vector<2x128x64xf32> to vector<2x128x64xbf16>
    %c0_18 = arith.constant 0 : index
    %c0_19 = arith.constant 0 : index
    %c0_20 = arith.constant 0 : index
    %36 = vector.load %arg6[%c0_18, %c0_19, %c0_20] : memref<2x128x64xbf16, #tpu.memory_space<vmem>>, vector<2x128x64xbf16>
    %cst_21 = arith.constant dense<0.000000e+00> : vector<2x128x64xf32>
    %37 = tpu.matmul %29, %36, %cst_21 {dimension_numbers = #tpu.dot_dimension_numbers<[2], [1], [1], [2], [0, 0, 0, 1, 1, 2], [0], [0]>} : vector<2x128x128xbf16>, vector<2x128x64xbf16>, vector<2x128x64xf32> -> vector<2x128x64xf32>
    %38 = arith.truncf %37 : vector<2x128x64xf32> to vector<2x128x64xbf16>
    %cst_22 = arith.constant dense<0.000000e+00> : vector<2x128x128xf32>
    %39 = tpu.matmul %32, %35, %cst_22 {dimension_numbers = #tpu.dot_dimension_numbers<[2], [2], [1], [1], [0, 0, 0, 1, 1, 1], [0], [0]>} : vector<2x128x64xbf16>, vector<2x128x64xbf16>, vector<2x128x128xf32> -> vector<2x128x128xf32>
    %cst_23 = arith.constant 0.00416666688 : f32
    %40 = vector.broadcast %cst_23 : f32 to vector<2x128x128xf32>
    %41 = arith.mulf %39, %40 : vector<2x128x128xf32>
    %42 = math.tanh %41 : vector<2x128x128xf32>
    %cst_24 = arith.constant 3.000000e+01 : f32
    %43 = vector.broadcast %cst_24 : f32 to vector<2x128x128xf32>
    %44 = arith.mulf %43, %42 : vector<2x128x128xf32>
    %cst_25 = arith.constant dense<0xFF800000> : vector<2x128xf32>
    %45 = vector.multi_reduction <maximumf>, %44, %cst_25 [2] : vector<2x128x128xf32> to vector<2x128xf32>
    %46 = vector.shape_cast %45 : vector<2x128xf32> to vector<2x128x1xf32>
    %47 = vector.broadcast %46 : vector<2x128x1xf32> to vector<2x128x128xf32>
    %48 = arith.subf %44, %47 : vector<2x128x128xf32>
    %49 = math.exp %48 : vector<2x128x128xf32>
    %cst_26 = arith.constant dense<0.000000e+00> : vector<2x128xf32>
    %50 = vector.multi_reduction <add>, %49, %cst_26 [2] : vector<2x128x128xf32> to vector<2x128xf32>
    %51 = vector.shape_cast %50 : vector<2x128xf32> to vector<2x128x1xf32>
    %52 = tpu.reciprocal %51 {approx = true} : vector<2x128x1xf32> -> vector<2x128x1xf32>
    %53 = vector.broadcast %52 : vector<2x128x1xf32> to vector<2x128x128xf32>
    %54 = arith.mulf %49, %53 : vector<2x128x128xf32>
    %55 = arith.truncf %54 : vector<2x128x128xf32> to vector<2x128x128xbf16>
    %cst_27 = arith.constant dense<0.000000e+00> : vector<2x128x64xf32>
    %56 = tpu.matmul %55, %38, %cst_27 {dimension_numbers = #tpu.dot_dimension_numbers<[2], [1], [1], [2], [0, 0, 0, 1, 1, 2], [0], [0]>} : vector<2x128x128xbf16>, vector<2x128x64xbf16>, vector<2x128x64xf32> -> vector<2x128x64xf32>
    %57 = arith.truncf %56 : vector<2x128x64xf32> to vector<2x128x64xbf16>
    %c0_28 = arith.constant 0 : index
    %c0_29 = arith.constant 0 : index
    %c0_30 = arith.constant 0 : index
    %58 = vector.load %arg7[%c0_28, %c0_29, %c0_30] : memref<2x64x128xbf16, #tpu.memory_space<vmem>>, vector<2x64x128xbf16>
    %cst_31 = arith.constant dense<0.000000e+00> : vector<2x128x128xf32>
    %59 = tpu.matmul %57, %58, %cst_31 {dimension_numbers = #tpu.dot_dimension_numbers<[2], [1], [1], [2], [0, 0, 0, 1, 1, 2], [0], [0]>} : vector<2x128x64xbf16>, vector<2x64x128xbf16>, vector<2x128x128xf32> -> vector<2x128x128xf32>
    %cst_32 = arith.constant dense<0.000000e+00> : vector<128x128xf32>
    %60 = vector.multi_reduction <add>, %59, %cst_32 [0] : vector<2x128x128xf32> to vector<128x128xf32>
    %c0_33 = arith.constant 0 : index
    %c0_34 = arith.constant 0 : index
    %61 = vector.load %arg8[%c0_33, %c0_34] : memref<1x128xf32, #tpu.memory_space<vmem>>, vector<1x128xf32>
    %62 = vector.broadcast %61 : vector<1x128xf32> to vector<128x128xf32>
    %63 = arith.addf %60, %62 : vector<128x128xf32>
    %64 = arith.addf %1, %63 : vector<128x128xf32>
    %c0_35 = arith.constant 0 : index
    %c0_36 = arith.constant 0 : index
    %65 = vector.load %arg9[%c0_35, %c0_36] : memref<1x128xf32, #tpu.memory_space<vmem>>, vector<1x128xf32>
    %c0_37 = arith.constant 0 : index
    %c0_38 = arith.constant 0 : index
    %66 = vector.load %arg10[%c0_37, %c0_38] : memref<1x128xf32, #tpu.memory_space<vmem>>, vector<1x128xf32>
    %cst_39 = arith.constant dense<0.000000e+00> : vector<128xf32>
    %67 = vector.multi_reduction <add>, %64, %cst_39 [1] : vector<128x128xf32> to vector<128xf32>
    %68 = vector.shape_cast %67 : vector<128xf32> to vector<128x1xf32>
    %cst_40 = arith.constant 1.280000e+02 : f32
    %69 = vector.broadcast %cst_40 : f32 to vector<128x1xf32>
    %70 = arith.divf %68, %69 : vector<128x1xf32>
    %71 = vector.broadcast %70 : vector<128x1xf32> to vector<128x128xf32>
    %72 = arith.subf %64, %71 : vector<128x128xf32>
    %73 = arith.mulf %72, %72 : vector<128x128xf32>
    %cst_41 = arith.constant dense<0.000000e+00> : vector<128xf32>
    %74 = vector.multi_reduction <add>, %73, %cst_41 [1] : vector<128x128xf32> to vector<128xf32>
    %75 = vector.shape_cast %74 : vector<128xf32> to vector<128x1xf32>
    %cst_42 = arith.constant 1.280000e+02 : f32
    %76 = vector.broadcast %cst_42 : f32 to vector<128x1xf32>
    %77 = arith.divf %75, %76 : vector<128x1xf32>
    %78 = vector.broadcast %70 : vector<128x1xf32> to vector<128x128xf32>
    %79 = arith.subf %64, %78 : vector<128x128xf32>
    %cst_43 = arith.constant 9.99999974E-6 : f32
    %80 = vector.broadcast %cst_43 : f32 to vector<128x1xf32>
    %81 = arith.addf %77, %80 : vector<128x1xf32>
    %82 = math.rsqrt %81 : vector<128x1xf32>
    %83 = vector.broadcast %82 : vector<128x1xf32> to vector<128x128xf32>
    %84 = arith.mulf %79, %83 : vector<128x128xf32>
    %85 = vector.broadcast %65 : vector<1x128xf32> to vector<128x128xf32>
    %86 = arith.mulf %84, %85 : vector<128x128xf32>
    %87 = vector.broadcast %66 : vector<1x128xf32> to vector<128x128xf32>
    %88 = arith.addf %86, %87 : vector<128x128xf32>
    %89 = arith.truncf %88 : vector<128x128xf32> to vector<128x128xbf16>
    %c0_44 = arith.constant 0 : index
    %c0_45 = arith.constant 0 : index
    %90 = vector.load %arg11[%c0_44, %c0_45] : memref<128x512xbf16, #tpu.memory_space<vmem>>, vector<128x512xbf16>
    %cst_46 = arith.constant dense<0.000000e+00> : vector<128x512xf32>
    %91 = tpu.matmul %89, %90, %cst_46 {dimension_numbers = #tpu.dot_dimension_numbers<[1], [0], [0], [1], [0, 0, 1, 1], [], []>} : vector<128x128xbf16>, vector<128x512xbf16>, vector<128x512xf32> -> vector<128x512xf32>
    %c0_47 = arith.constant 0 : index
    %c0_48 = arith.constant 0 : index
    %92 = vector.load %arg12[%c0_47, %c0_48] : memref<1x512xf32, #tpu.memory_space<vmem>>, vector<1x512xf32>
    %93 = vector.broadcast %92 : vector<1x512xf32> to vector<128x512xf32>
    %94 = arith.addf %91, %93 : vector<128x512xf32>
    %cst_49 = arith.constant 5.000000e-01 : f32
    %95 = vector.broadcast %cst_49 : f32 to vector<128x512xf32>
    %96 = arith.mulf %95, %94 : vector<128x512xf32>
    %cst_50 = arith.constant 0.707106769 : f32
    %97 = vector.broadcast %cst_50 : f32 to vector<128x512xf32>
    %98 = arith.mulf %94, %97 : vector<128x512xf32>
    %99 = math.erf %98 : vector<128x512xf32>
    %cst_51 = arith.constant 1.000000e+00 : f32
    %100 = vector.broadcast %cst_51 : f32 to vector<128x512xf32>
    %101 = arith.addf %100, %99 : vector<128x512xf32>
    %102 = arith.mulf %96, %101 : vector<128x512xf32>
    %103 = arith.truncf %102 : vector<128x512xf32> to vector<128x512xbf16>
    %c0_52 = arith.constant 0 : index
    %c0_53 = arith.constant 0 : index
    %104 = vector.load %arg13[%c0_52, %c0_53] : memref<512x128xbf16, #tpu.memory_space<vmem>>, vector<512x128xbf16>
    %cst_54 = arith.constant dense<0.000000e+00> : vector<128x128xf32>
    %105 = tpu.matmul %103, %104, %cst_54 {dimension_numbers = #tpu.dot_dimension_numbers<[1], [0], [0], [1], [0, 0, 1, 1], [], []>} : vector<128x512xbf16>, vector<512x128xbf16>, vector<128x128xf32> -> vector<128x128xf32>
    %c0_55 = arith.constant 0 : index
    %c0_56 = arith.constant 0 : index
    %106 = vector.load %arg14[%c0_55, %c0_56] : memref<1x128xf32, #tpu.memory_space<vmem>>, vector<1x128xf32>
    %107 = vector.broadcast %106 : vector<1x128xf32> to vector<128x128xf32>
    %108 = arith.addf %105, %107 : vector<128x128xf32>
    %109 = arith.addf %64, %108 : vector<128x128xf32>
    %c0_57 = arith.constant 0 : index
    %c0_58 = arith.constant 0 : index
    %c0_59 = arith.constant 0 : index
    %110 = vector.load %arg15[%c0_57, %c0_58, %c0_59] : memref<1x128x128xf32, #tpu.memory_space<vmem>>, vector<1x128x128xf32>
    %111 = vector.shape_cast %110 : vector<1x128x128xf32> to vector<128x128xf32>
    %112 = vector.shape_cast %109 : vector<128x128xf32> to vector<1x128x128xf32>
    tpu.vector_store %arg15[%c0_57, %c0_58, %c0_59], %112 {strides = array<i32>} : memref<1x128x128xf32, #tpu.memory_space<vmem>>, vector<1x128x128xf32>,
    return
  }
  func.func @transform_0(%arg0: i32) -> (i32, i32, i32) {
    %c0_i32 = arith.constant 0 : i32
    %c0_i32_0 = arith.constant 0 : i32
    %c0_i32_1 = arith.constant 0 : i32
    return %arg0, %c0_i32, %c0_i32_0 : i32, i32, i32
  }
  func.func @transform_1(%arg0: i32) -> (i32, i32) {
    %c0_i32 = arith.constant 0 : i32
    %c0_i32_0 = arith.constant 0 : i32
    %c0_i32_1 = arith.constant 0 : i32
    return %c0_i32, %c0_i32_0 : i32, i32
  }
  func.func @transform_2(%arg0: i32) -> (i32, i32) {
    %c0_i32 = arith.constant 0 : i32
    %c0_i32_0 = arith.constant 0 : i32
    %c0_i32_1 = arith.constant 0 : i32
    return %c0_i32, %c0_i32_0 : i32, i32
  }
  func.func @transform_3(%arg0: i32) -> (i32, i32, i32) {
    %c0_i32 = arith.constant 0 : i32
    %c0_i32_0 = arith.constant 0 : i32
    %c0_i32_1 = arith.constant 0 : i32
    %c0_i32_2 = arith.constant 0 : i32
    return %c0_i32, %c0_i32_0, %c0_i32_1 : i32, i32, i32
  }
  func.func @transform_4(%arg0: i32) -> (i32, i32, i32) {
    %c0_i32 = arith.constant 0 : i32
    %c0_i32_0 = arith.constant 0 : i32
    %c0_i32_1 = arith.constant 0 : i32
    %c0_i32_2 = arith.constant 0 : i32
    return %c0_i32, %c0_i32_0, %c0_i32_1 : i32, i32, i32
  }
  func.func @transform_5(%arg0: i32) -> (i32, i32, i32) {
    %c0_i32 = arith.constant 0 : i32
    %c0_i32_0 = arith.constant 0 : i32
    %c0_i32_1 = arith.constant 0 : i32
    %c0_i32_2 = arith.constant 0 : i32
    return %c0_i32, %c0_i32_0, %c0_i32_1 : i32, i32, i32
  }
  func.func @transform_6(%arg0: i32) -> (i32, i32, i32) {
    %c0_i32 = arith.constant 0 : i32
    %c0_i32_0 = arith.constant 0 : i32
    %c0_i32_1 = arith.constant 0 : i32
    %c0_i32_2 = arith.constant 0 : i32
    return %c0_i32, %c0_i32_0, %c0_i32_1 : i32, i32, i32
  }
  func.func @transform_7(%arg0: i32) -> (i32, i32) {
    %c0_i32 = arith.constant 0 : i32
    %c0_i32_0 = arith.constant 0 : i32
    %c0_i32_1 = arith.constant 0 : i32
    return %c0_i32, %c0_i32_0 : i32, i32
  }
  func.func @transform_8(%arg0: i32) -> (i32, i32) {
    %c0_i32 = arith.constant 0 : i32
    %c0_i32_0 = arith.constant 0 : i32
    %c0_i32_1 = arith.constant 0 : i32
    return %c0_i32, %c0_i32_0 : i32, i32
  }
  func.func @transform_9(%arg0: i32) -> (i32, i32) {
    %c0_i32 = arith.constant 0 : i32
    %c0_i32_0 = arith.constant 0 : i32
    %c0_i32_1 = arith.constant 0 : i32
    return %c0_i32, %c0_i32_0 : i32, i32
  }
  func.func @transform_10(%arg0: i32) -> (i32, i32) {
    %c0_i32 = arith.constant 0 : i32
    %c0_i32_0 = arith.constant 0 : i32
    %c0_i32_1 = arith.constant 0 : i32
    return %c0_i32, %c0_i32_0 : i32, i32
  }
  func.func @transform_11(%arg0: i32) -> (i32, i32) {
    %c0_i32 = arith.constant 0 : i32
    %c0_i32_0 = arith.constant 0 : i32
    %c0_i32_1 = arith.constant 0 : i32
    return %c0_i32, %c0_i32_0 : i32, i32
  }
  func.func @transform_12(%arg0: i32) -> (i32, i32) {
    %c0_i32 = arith.constant 0 : i32
    %c0_i32_0 = arith.constant 0 : i32
    %c0_i32_1 = arith.constant 0 : i32
    return %c0_i32, %c0_i32_0 : i32, i32
  }
  func.func @transform_13(%arg0: i32) -> (i32, i32) {
    %c0_i32 = arith.constant 0 : i32
    %c0_i32_0 = arith.constant 0 : i32
    %c0_i32_1 = arith.constant 0 : i32
    return %c0_i32, %c0_i32_0 : i32, i32
  }
  func.func @transform_14(%arg0: i32) -> (i32, i32, i32) {
    %c0_i32 = arith.constant 0 : i32
    %c0_i32_0 = arith.constant 0 : i32
    %c0_i32_1 = arith.constant 0 : i32
    return %arg0, %c0_i32, %c0_i32_0 : i32, i32, i32
  }
}

</mosaic_0001>

<bundles_post_ra>
// kernel: tpu_custom_call.1
= control target key start
LH: loop header
LB: loop body
LE: loop exit
PB: predicated region body
PF: predicated region fallthrough
CT: control target
= control target key end

     0   :  { %s8250_s0 = inlined_call_operand.vmem [shape: f32[2,128,128], index: 0, kind: input, shape index: {}]   ;;  %s8251_s1 = inlined_call_operand.vmem [shape: f32[1,128], index: 1, kind: input, shape index: {}]   ;;  %s8252_s2 = inlined_call_operand.vmem [shape: f32[1,128], index: 2, kind: input, shape index: {}]   ;;  %s8253_s3 = inlined_call_operand.vmem [shape: bf16[2,128,64], index: 3, kind: input, shape index: {}]   ;;  %s8254_s4 = inlined_call_operand.vmem [shape: bf16[2,128,64], index: 4, kind: input, shape index: {}]   ;;  %s8255_s5 = inlined_call_operand.vmem [shape: bf16[2,128,64], index: 5, kind: input, shape index: {}]   ;;  %s8256_s6 = inlined_call_operand.hbm [shape: bf16[2,64,128], index: 6, kind: input, shape index: {}]   ;;  %s8257_s7 = inlined_call_operand.vmem [shape: f32[1,128], index: 7, kind: input, shape index: {}]   ;;  %s8258_s8 = inlined_call_operand.vmem [shape: f32[1,128], index: 8, kind: input, shape index: {}]   ;;  %s8259_s9 = inlined_call_operand.vmem [shape: f32[1,128], index: 9, kind: input, shape index: {}]   ;;  %s8260_s10 = inlined_call_operand.vmem [shape: bf16[128,512], index: 10, kind: input, shape index: {}]   ;;  %s8261_s11 = inlined_call_operand.vmem [shape: f32[1,512], index: 11, kind: input, shape index: {}]   ;;  %s8262_s12 = inlined_call_operand.hbm [shape: bf16[512,128], index: 12, kind: input, shape index: {}]   ;;  %s8263_s13 = inlined_call_operand.vmem [shape: f32[1,128], index: 13, kind: input, shape index: {}]   ;;  %s8264_s14 = inlined_call_operand.hbm [shape: f32[2,128,128], index: 14, kind: output, shape index: {}]  }
   0x1   :  { %8293 = sst [smem:[#allocation39_spill]] %s8264_s14 }
   0x2   :  { %19 = vsyncpa [#allocation3], 0 }
   0x3   :  { %20 = vsyncpa [#allocation6], 0 }
   0x4   :  { %21 = vsyncpa [#allocation4], 0 }
   0x5   :  { %23 = vsyncpa [#allocation4 + $0x1], 0  ;;  %s6329_s29 = smov 0   ;;  %s6331_s30 = smov 0  }
   0x6   :  { %s6333_s15 = smov 0   ;;  %s6335_s16 = smov 0  }
   0x7 LB: > { %8294 = sst [smem:[#allocation11_spill]] %s6232_s29  ;;  %s6350_s17 = sadd.s32 4294967295, %s6244_s16   ;;  %s6244_s16 = sphi %s6335_s16, %s8362_s16   ;;  %s6240_s15 = sphi %s6333_s15, %s8364_s15   ;;  %s6236_s30 = sphi %s6331_s30, %s8366_s30   ;;  %s6232_s29 = sphi %s6329_s29, %s8365_s29  }
   0x8   : > { %8295 = sst [smem:[#allocation12_spill]] %s6240_s15  ;;  %s4629_s18 = sadd.s32 4294967294, %s6244_s16  }
   0x9   : > { %8296 = sst [smem:[#allocation13_spill]] %s6244_s16  ;;  %s6354_s19 = sadd.s32 1, %s6244_s16  }
   0xa   : > { %8297 = sst [smem:[#allocation14_spill]] %s6354_s19  ;;  %s335_s20 = sadd.s32 1, %s6240_s15 }
   0xb   : > { %s332_s21 = ssub.s32 %s6244_s16, %s6354_s19  ;;  %p345_p0 = scmp.ne.s32.totalorder %s6240_s15, %s6236_s30 }
   0xc   : > { %p333_p1 = scmp.eq.s32.totalorder %s332_s21, 0  ;;  %p346_p2 = scmp.eq.s32.totalorder %s6350_s17, 1 }
   0xd   : > { %p351_p3 = scmp.ne.s32.totalorder %s6236_s30, %s6232_s29  ;;  %p352_p4 = scmp.eq.s32.totalorder %s4629_s18, 1 }
   0xe   : > { %s6365_s22 = scalar_select %p333_p1, %s6240_s15, %s335_s20  }
   0xf   : > { %p6367_p5 = por %p346_p2, %p345_p0  ;;  %p6371_p6 = por %p352_p4, %p351_p3 }
  0x10   : > { %8298 = sst [smem:[#allocation15_spill]] %s6365_s22  ;;  %p4630_p7 = scmp.ge.s32.totalorder %s6244_s16, 1 }
  0x11   : > { %s8299_s23 = scalar_select %p6367_p5, 1, 0 }
  0x12   : > { %s8301_s24 = scalar_select %p6371_p6, 1, 0 }
  0x13   : > { %8300 = sst [smem:[#allocation16_spill]] %s8299_s23  ;;  %p359_p8 = scmp.lt.s32.totalorder %s6244_s16, 3 }
  0x14   : > { %8302 = sst [smem:[#allocation17_spill]] %s8301_s24  ;;  %p8270_p9 = scmp.eq.s32.totalorder %s6350_s17, 0 }
  0x15   : > { %p6378_p10 = pnand %p4630_p7, %p359_p8  ;;  %s6246_s26 = smov [#allocation2]  }
  0x16   : > { %s386_s27 = sshll.u32 %s6246_s26, 4  ;;  %s6247_s18 = smov [#allocation5]   ;;  %s387_s27 = int_to_ptr.vmem [resolvable:$true] %s386_s27 }
  0x17   : > { %s8303_s25 = scalar_select %p6378_p10, 1, 0 }
  0x18   : > { %p5527_p11 = pneg %p6378_p10  ;;  %s414_s20 = sshll.u32 %s6247_s18, 4  ;;  %s6390_s20 = int_to_ptr.vmem [resolvable:$true] %s414_s20 }
  0x19   : > { %s6118_s15 = scalar_lea.hbm %s8256_s6, 1024 }
  0x1a   : > { %p6386_p12 = pnand %p8270_p9, %p5527_p11  ;;  %p6119_p13 = scmp.ne.s32.totalorder %s8256_s6, %s6118_s15 }
  0x1b   : > { %p6125_p3 = scmp.lt.u32.totalorder %s6118_s15, %s8256_s6 }
  0x1c   : > { %p6120_p0 = pneg %p6386_p12 }
  0x1e   : > { %p6121_p1 = pnand %p6120_p0, %p6119_p13 }
  0x20   : > { %p6122_p2 = pneg %p6121_p1 }
  0x22   : > { %p6127_p4 = pnand %p6125_p3, %p6122_p2 }
  0x24   : > { %6130 = shalt.err (!%p6127_p4)
}
  0x25   : > { %s6131_s18 = scalar_lea.vmem %s387_s27, 1024  ;;  %p6139_p9 = scmp.lt.s32.totalorder %s387_s27, %s387_s27 }
  0x26   : > { %p6132_p7 = scmp.ne.s32.totalorder %s387_s27, %s6131_s18  ;;  %p6140_p6 = scmp.lt.s32.totalorder %s6131_s18, %s6131_s18 }
  0x28   : > { %p6134_p8 = pnand %p6132_p7, %p6120_p0  ;;  %p6141_p5 = por %p6140_p6, %p6139_p9 }
  0x2a   : > { %p6135_p11 = pneg %p6134_p8 }
  0x2c   : > { %p6142_p10 = pnand %p6141_p5, %p6135_p11 }
  0x2e   : > { %6145 = shalt.err (!%p6142_p10)
}
  0x2f   : > { %s6248_s19 = smov 64   ;;  %s6249_s22 = smov 4  }
  0x30   : > { %5530 = dma.hbm_to_vmem [thread:$0]  (!%p6386_p12), %s8256_s6, 1024, %s387_s27, [#allocation3], %s6248_s19, %s6248_s19, %s6249_s22  }
  0x31   : > { %s6146_s26 = scalar_lea.hbm %s8262_s12, 4096 }
  0x32   : > { %p6147_p13 = scmp.ne.s32.totalorder %s8262_s12, %s6146_s26  ;;  %p6153_p9 = scmp.lt.u32.totalorder %s6146_s26, %s8262_s12 }
  0x34   : > { %p6149_p5 = pnand %p6147_p13, %p6120_p0 }
  0x36   : > { %p6150_p6 = pneg %p6149_p5 }
  0x38   : > { %p6155_p10 = pnand %p6153_p9, %p6150_p6 }
  0x3a   : > { %6158 = shalt.err (!%p6155_p10)
}
  0x3b   : > { %s6159_s27 = scalar_lea.vmem %s6390_s20, 4096  ;;  %p6167_p4 = scmp.lt.s32.totalorder %s6390_s20, %s6390_s20 }
  0x3c   : > { %p6160_p1 = scmp.ne.s32.totalorder %s6390_s20, %s6159_s27  ;;  %p6168_p7 = scmp.lt.s32.totalorder %s6159_s27, %s6159_s27 }
  0x3e   : > { %p6162_p2 = pnand %p6160_p1, %p6120_p0  ;;  %p6169_p8 = por %p6168_p7, %p6167_p4 }
  0x40   : > { %p6163_p3 = pneg %p6162_p2 }
  0x42   : > { %p6170_p11 = pnand %p6169_p8, %p6163_p3 }
  0x44   : > { %6173 = shalt.err (!%p6170_p11)
}
  0x45   : > { %5533 = dma.hbm_to_vmem [thread:$0]  (!%p6386_p12), %s8262_s12, 4096, %s6390_s20, [#allocation6], %s6248_s19, %s6248_s19, %s6249_s22  }
  0x46   : > { %p8305_p13 = scmp.ne.s32.totalorder %s8303_s25, 0 }
  0x48   : > { %441 = sbr.rel (%p8305_p13) target bundleno = 2623 (0xa3f), region = 76 }
  0x4f   : > { %p8306_p5 = scmp.eq.s32.totalorder %s6350_s17, 0 }
  0x51   : > { %6219 = dma.done.wait (%p8306_p5), [#allocation3], 1024   ;;  %p8307_p0 = pmov %p8306_p5 }
  0x53   : > { %6221 = vsyncadd (%p8307_p0), [#allocation3], 4294966272  ;;  %p8308_p6 = pmov %p8307_p0 }
  0x54   : > { %p8309_p9 = pmov %p8307_p0 }
  0x55   : > { %6223 = dma.done.wait (%p8308_p6), [#allocation6], 4096  }
  0x56   : > { %6225 = vsyncadd (%p8309_p9), [#allocation6], 4294963200  ;;  %p491_p10 = scmp.lt.s32.totalorder %s6350_s17, 1  ;;  %v5582_v16 = vld [vmem:[%s8253_s3] sm:$0xff]   ;;  %v5584_v61 = vld [vmem:[%s8253_s3 + $0x8] sm:$0xff]   ;;  %vm1758_vm0 = vcmask 523264  }
  0x57   : > { %v5583_v17 = vld [vmem:[%s8254_s4] sm:$0xff]   ;;  %5117 = vmatprep.subr.bf16.mxu1 %v5582_v16  ;;  %v5585_v62 = vld [vmem:[%s8254_s4 + $0x8] sm:$0xff]   ;;  %s488_s29 = sand.u32 1, %s6236_s30   ;;  %s8352_s21 = sld [smem:[#allocation16_spill]] }
  0x58   : > { %s492_s23 = scalar_select %p491_p10, %s6350_s17, 1  ;;  %5181 = vmatprep.subr.bf16.mxu0 %v5583_v17  ;;  %5118 = vmatpush3.bf16.msra.mxu1 %v5582_v16 }
  0x59   : > { %5182 = vmatpush3.bf16.msra.mxu0 %v5583_v17  ;;  %5119 = vmatprep.subr.bf16.mxu1 %v5584_v61  ;;  %s4637_s15 = sshll.u32 %s488_s29, 7  ;;  %s4804_s26 = sshll.u32 %s6350_s17, 11 }
  0x5a   : > { %s4803_s28 = sshll.u32 %s492_s23, 7  ;;  %5183 = vmatprep.subr.bf16.mxu0 %v5585_v62  ;;  %s8151_s24 = scalar_lea.vmem [#allocation7], %s4637_s15 }
  0x5b   : > { %s6454_s19 = scalar_lea.vmem %s8250_s0, %s4803_s28  ;;  %s4545_s18 = sshll.u32 %s8151_s24, 4  ;;  %s8202_s18 = int_to_ptr.vmem [resolvable:$true] %s4545_s18 }
  0x5c   : > { %v497_v0 = vld [vmem:[%s6454_s19] sm:$0xff]  ;;  %v499_v1 = vld [vmem:[%s6454_s19 + $0x10] sm:$0xff]  ;;  %v498_v2 = vld [vmem:[%s6454_s19 + $0x8] sm:$0xff]  ;;  %5120 = vmatpush3.bf16.msra.mxu1 %v5584_v61  ;;  %s8354_s16 = sld [smem:[#allocation39_spill]]  ;;  %s8209_s17 = scalar_lea.sflag [#allocation4], %s488_s29 }
  0x5d   : > { %515 = vadd.xlane.f32.xlu0 %v497_v0  ;;  %519 = vadd.xlane.f32.xlu1 %v499_v1  ;;  %v500_v3 = vld [vmem:[%s6454_s19 + $0x18] sm:$0xff]  ;;  %v501_v4 = vld [vmem:[%s6454_s19 + $0x20] sm:$0xff]  ;;  %v502_v5 = vld [vmem:[%s6454_s19 + $0x28] sm:$0xff]  ;;  %s6174_s28 = scalar_lea.vmem %s8202_s18, 2048  ;;  %p8357_p1 = scmp.ne.s32.totalorder %s8352_s21, 0 }
  0x5e   : > { %v503_v6 = vld [vmem:[%s6454_s19 + $0x30] sm:$0xff]  ;;  %v504_v7 = vld [vmem:[%s6454_s19 + $0x38] sm:$0xff]  ;;  %v6465_v8 = vld [vmem:[%s6454_s19 + $0x40] sm:$0xff]  ;;  %5184 = vmatpush3.bf16.msra.mxu0 %v5585_v62  ;;  %p6175_p12 = scmp.ne.s32.totalorder %s8202_s18, %s6174_s28  ;;  %s6251_s20 = smov [#allocation7]  }
  0x5f   : > { %v6468_v9 = vld [vmem:[%s6454_s19 + $0x48] sm:$0xff]  ;;  %v6471_v10 = vld [vmem:[%s6454_s19 + $0x50] sm:$0xff]  ;;  %v6474_v11 = vld [vmem:[%s6454_s19 + $0x58] sm:$0xff]  ;;  %s6178_s25 = sshll.u32 %s6251_s20, 4  ;;  %s6179_s25 = int_to_ptr.vmem [resolvable:$false] %s6178_s25 }
  0x60   : > { %v6479_v12 = vld [vmem:[%s6454_s19 + $0x60] sm:$0xff]  ;;  %v6482_v13 = vld [vmem:[%s6454_s19 + $0x68] sm:$0xff]  ;;  %v6487_v14 = vld [vmem:[%s6454_s19 + $0x70] sm:$0xff]  ;;  %p6176_p2 = pnand %p6175_p12, %p8357_p1  ;;  %s6180_s22 = scalar_lea.vmem %s6179_s25, 4096 }
  0x61   : > { %517 = vadd.xlane.f32.xlu0 %v498_v2  ;;  %521 = vadd.xlane.f32.xlu1 %v500_v3  ;;  %v6490_v15 = vld [vmem:[%s6454_s19 + $0x78] sm:$0xff]  ;;  %p6181_p4 = scmp.lt.s32.totalorder %s8202_s18, %s6179_s25  ;;  %p6182_p7 = scmp.lt.s32.totalorder %s6180_s22, %s6174_s28 }
  0x62   : > { %s8355_s23 = smov %s8354_s16  ;;  %p6177_p3 = pneg %p6176_p2 }
  0x63   : > { %p6183_p8 = por %p6182_p7, %p6181_p4 }
  0x65   : > { %523 = vadd.xlane.f32.xlu0 %v501_v4  ;;  %525 = vadd.xlane.f32.xlu1 %v502_v5  ;;  %p6184_p11 = pnand %p6183_p8, %p6177_p3 }
  0x69   : > { %527 = vadd.xlane.f32.xlu0 %v503_v6  ;;  %529 = vadd.xlane.f32.xlu1 %v504_v7 }
  0x6d   : > { %531 = vadd.xlane.f32.xlu0 %v6465_v8  ;;  %533 = vadd.xlane.f32.xlu1 %v6468_v9 }
  0x71   : > { %535 = vadd.xlane.f32.xlu0 %v6471_v10  ;;  %537 = vadd.xlane.f32.xlu1 %v6474_v11 }
  0x75   : > { %539 = vadd.xlane.f32.xlu0 %v6479_v12  ;;  %541 = vadd.xlane.f32.xlu1 %v6482_v13 }
  0x79   : > { %543 = vadd.xlane.f32.xlu0 %v6487_v14  ;;  %545 = vadd.xlane.f32.xlu1 %v6490_v15 }
  0xea   : > { %v516_v18 = vpop.xlane.xlu0 %515  ;;  %v520_v19 = vpop.xlane.xlu1 %519 }
  0xeb   : > { %v548_v20 = vmul.f32 0.0078125, %v516_v18  ;;  %v550_v21 = vmul.f32 0.0078125, %v520_v19 }
  0xed   : > { %v6502_v22 = vsub.f32 %v497_v0, %v548_v20  ;;  %v6504_v23 = vsub.f32 %v499_v1, %v550_v21 }
  0xee   : > { %v518_v24 = vpop.xlane.xlu0 %517  ;;  %v522_v25 = vpop.xlane.xlu1 %521 }
  0xef   : > { %v549_v26 = vmul.f32 0.0078125, %v518_v24  ;;  %v580_v27 = vmul.f32 %v6502_v22, %v6502_v22  ;;  %v551_v28 = vmul.f32 0.0078125, %v522_v25  ;;  %v582_v29 = vmul.f32 %v6504_v23, %v6504_v23  ;;  %v5588_v24 = vld [vmem:[%s8253_s3 + $0x18] sm:$0xff]  }
  0xf0   : > { %v5589_v25 = vld [vmem:[%s8254_s4 + $0x18] sm:$0xff]  }
  0xf1   : > { %596 = vadd.xlane.f32.xlu0 %v580_v27  ;;  %v6510_v30 = vsub.f32 %v498_v2, %v549_v26  ;;  %v6512_v31 = vsub.f32 %v500_v3, %v551_v28  ;;  %v5591_v27 = vld [vmem:[%s8254_s4 + $0x20] sm:$0xff]   ;;  %v5592_v28 = vld [vmem:[%s8253_s3 + $0x28] sm:$0xff]  }
  0xf2   : > { %v524_v32 = vpop.xlane.xlu0 %523  ;;  %v526_v33 = vpop.xlane.xlu1 %525 }
  0xf3   : > { %v552_v34 = vmul.f32 0.0078125, %v524_v32  ;;  %v581_v35 = vmul.f32 %v6510_v30, %v6510_v30  ;;  %v553_v36 = vmul.f32 0.0078125, %v526_v33  ;;  %v583_v37 = vmul.f32 %v6512_v31, %v6512_v31  ;;  %v5594_v32 = vld [vmem:[%s8253_s3 + $0x30] sm:$0xff]  }
  0xf4   : > { %v5595_v33 = vld [vmem:[%s8254_s4 + $0x30] sm:$0xff]  }
  0xf5   : > { %600 = vadd.xlane.f32.xlu0 %v582_v29  ;;  %598 = vadd.xlane.f32.xlu1 %v581_v35  ;;  %v6518_v38 = vsub.f32 %v501_v4, %v552_v34  ;;  %v6520_v39 = vsub.f32 %v502_v5, %v553_v36  ;;  %v5593_v29 = vld [vmem:[%s8254_s4 + $0x28] sm:$0xff]   ;;  %v5596_v34 = vld [vmem:[%s8253_s3 + $0x38] sm:$0xff]   ;;  %v6619_v36 = vld [vmem:[%s8253_s3 + $0x40] sm:$0xff]  }
  0xf6   : > { %v528_v40 = vpop.xlane.xlu0 %527  ;;  %v530_v41 = vpop.xlane.xlu1 %529  ;;  %v5597_v35 = vld [vmem:[%s8254_s4 + $0x38] sm:$0xff]  }
  0xf7   : > { %v554_v42 = vmul.f32 0.0078125, %v528_v40  ;;  %v584_v43 = vmul.f32 %v6518_v38, %v6518_v38  ;;  %v555_v44 = vmul.f32 0.0078125, %v530_v41  ;;  %v585_v45 = vmul.f32 %v6520_v39, %v6520_v39 }
  0xf9   : > { %602 = vadd.xlane.f32.xlu1 %v583_v37  ;;  %604 = vadd.xlane.f32.xlu0 %v584_v43  ;;  %v6526_v46 = vsub.f32 %v503_v6, %v554_v42  ;;  %v6528_v47 = vsub.f32 %v504_v7, %v555_v44  ;;  %v6624_v37 = vld [vmem:[%s8255_s5] sm:$0xff]  }
  0xfa   : > { %v532_v48 = vpop.xlane.xlu0 %531  ;;  %v534_v49 = vpop.xlane.xlu1 %533 }
  0xfb   : > { %v556_v50 = vmul.f32 0.0078125, %v532_v48  ;;  %v586_v51 = vmul.f32 %v6526_v46, %v6526_v46  ;;  %v557_v52 = vmul.f32 0.0078125, %v534_v49  ;;  %v587_v53 = vmul.f32 %v6528_v47, %v6528_v47 }
  0xfd   : > { %606 = vadd.xlane.f32.xlu1 %v585_v45  ;;  %608 = vadd.xlane.f32.xlu0 %v586_v51  ;;  %v6535_v54 = vsub.f32 %v6465_v8, %v556_v50  ;;  %v6538_v55 = vsub.f32 %v6468_v9, %v557_v52 }
  0xfe   : > { %v536_v56 = vpop.xlane.xlu0 %535  ;;  %v538_v57 = vpop.xlane.xlu1 %537 }
  0xff   : > { %v558_v58 = vmul.f32 0.0078125, %v536_v56  ;;  %v588_v59 = vmul.f32 %v6535_v54, %v6535_v54  ;;  %v559_v60 = vmul.f32 0.0078125, %v538_v57  ;;  %v589_v63 = vmul.f32 %v6538_v55, %v6538_v55 }
 0x101   : > { %610 = vadd.xlane.f32.xlu1 %v587_v53  ;;  %612 = vadd.xlane.f32.xlu0 %v588_v59  ;;  %v6551_v0 = vsub.f32 %v6471_v10, %v558_v58  ;;  %v6554_v1 = vsub.f32 %v6474_v11, %v559_v60  ;;  %v5586_v10 = vld [vmem:[%s8253_s3 + $0x10] sm:$0xff]  }
 0x102   : > { %v540_v2 = vpop.xlane.xlu0 %539  ;;  %v542_v3 = vpop.xlane.xlu1 %541  ;;  %v5587_v11 = vld [vmem:[%s8254_s4 + $0x10] sm:$0xff]   ;;  %5121 = vmatprep.subr.bf16.mxu1 %v5586_v10 }
 0x103   : > { %v560_v4 = vmul.f32 0.0078125, %v540_v2  ;;  %v590_v5 = vmul.f32 %v6551_v0, %v6551_v0  ;;  %v561_v6 = vmul.f32 0.0078125, %v542_v3  ;;  %v591_v7 = vmul.f32 %v6554_v1, %v6554_v1  ;;  %5185 = vmatprep.subr.bf16.mxu0 %v5587_v11  ;;  %5122 = vmatpush3.bf16.msra.mxu1 %v5586_v10 }
 0x104   : > { %5186 = vmatpush3.bf16.msra.mxu0 %v5587_v11  ;;  %5123 = vmatprep.subr.bf16.mxu1 %v5588_v24 }
 0x105   : > { %614 = vadd.xlane.f32.xlu1 %v589_v63  ;;  %616 = vadd.xlane.f32.xlu0 %v590_v5  ;;  %v6561_v8 = vsub.f32 %v6479_v12, %v560_v4  ;;  %v6564_v9 = vsub.f32 %v6482_v13, %v561_v6 }
 0x106   : > { %v544_v16 = vpop.xlane.xlu0 %543  ;;  %v546_v17 = vpop.xlane.xlu1 %545  ;;  %5187 = vmatprep.subr.bf16.mxu0 %v5589_v25 }
 0x107   : > { %v562_v18 = vmul.f32 0.0078125, %v544_v16  ;;  %v592_v19 = vmul.f32 %v6561_v8, %v6561_v8  ;;  %v563_v20 = vmul.f32 0.0078125, %v546_v17  ;;  %v593_v12 = vmul.f32 %v6564_v9, %v6564_v9  ;;  %5124 = vmatpush3.bf16.msra.mxu1 %v5588_v24 }
 0x108   : > { %5188 = vmatpush3.bf16.msra.mxu0 %v5589_v25  ;;  %v6639_v25 = vld [vmem:[%s8252_s2] ss:$0 sm:$0xff] }
 0x109   : > { %618 = vadd.xlane.f32.xlu1 %v591_v7  ;;  %620 = vadd.xlane.f32.xlu0 %v592_v19  ;;  %v6577_v13 = vsub.f32 %v6487_v14, %v562_v18  ;;  %v6580_v21 = vsub.f32 %v6490_v15, %v563_v20  ;;  %v5590_v15 = vld [vmem:[%s8253_s3 + $0x20] sm:$0xff]  }
 0x10a   : > { %5125 = vmatprep.subr.bf16.mxu1 %v5590_v15  ;;  %5189 = vmatprep.subr.bf16.mxu0 %v5591_v27  ;;  %v6632_v7 = vld [vmem:[%s8251_s1] ss:$0 sm:$0xff] }
 0x10b   : > { %v594_v26 = vmul.f32 %v6577_v13, %v6577_v13  ;;  %v595_v14 = vmul.f32 %v6580_v21, %v6580_v21  ;;  %5126 = vmatpush3.bf16.msra.mxu1 %v5590_v15 }
 0x10c   : > { %5190 = vmatpush3.bf16.msra.mxu0 %v5591_v27  ;;  %5127 = vmatprep.subr.bf16.mxu1 %v5592_v28 }
 0x10d   : > { %622 = vadd.xlane.f32.xlu1 %v593_v12  ;;  %624 = vadd.xlane.f32.xlu0 %v594_v26 }
 0x10e   : > { %5191 = vmatprep.subr.bf16.mxu0 %v5593_v29 }
 0x10f   : > { %5128 = vmatpush3.bf16.msra.mxu1 %v5592_v28 }
 0x110   : > { %5192 = vmatpush3.bf16.msra.mxu0 %v5593_v29  ;;  %5129 = vmatprep.subr.bf16.mxu1 %v5594_v32 }
 0x111   : > { %626 = vadd.xlane.f32.xlu1 %v595_v14  ;;  %5193 = vmatprep.subr.bf16.mxu0 %v5595_v33 }
 0x113   : > { %5130 = vmatpush3.bf16.msra.mxu1 %v5594_v32 }
 0x114   : > { %5194 = vmatpush3.bf16.msra.mxu0 %v5595_v33  ;;  %5131 = vmatprep.subr.bf16.mxu1 %v5596_v34 }
 0x115   : > { %5195 = vmatprep.subr.bf16.mxu0 %v5597_v35 }
 0x117   : > { %5132 = vmatpush3.bf16.msra.mxu1 %v5596_v34 }
 0x118   : > { %5196 = vmatpush3.bf16.msra.mxu0 %v5597_v35  ;;  %5149 = vmatprep.subr.bf16.mxu1 %v6619_v36 }
 0x119   : > { %5245 = vmatprep.subr.bf16.mxu0 %v6624_v37 }
 0x17e   : > { %v597_v40 = vpop.xlane.xlu0 %596 }
 0x17f   : > { %v628_v41 = vmul.f32 0.0078125, %v597_v40 }
 0x181   : > { %v644_v42 = vadd.f32 1e-05, %v628_v41 }
 0x182   : > { %v599_v43 = vpop.xlane.xlu1 %598  ;;  %v601_v44 = vpop.xlane.xlu0 %600 }
 0x183   : > { %5718 = vrsqrt.f32 %v644_v42  ;;  %v629_v45 = vmul.f32 0.0078125, %v599_v43  ;;  %v630_v48 = vmul.f32 0.0078125, %v601_v44 }
 0x185   : > { %v645_v49 = vadd.f32 1e-05, %v629_v45  ;;  %v646_v50 = vadd.f32 1e-05, %v630_v48 }
 0x186   : > { %v603_v51 = vpop.xlane.xlu1 %602  ;;  %v605_v52 = vpop.xlane.xlu0 %604 }
 0x187   : > { %5720 = vrsqrt.f32 %v645_v49  ;;  %v631_v53 = vmul.f32 0.0078125, %v603_v51  ;;  %v632_v56 = vmul.f32 0.0078125, %v605_v52 }
 0x188   : > { %5722 = vrsqrt.f32 %v646_v50 }
 0x189   : > { %v647_v57 = vadd.f32 1e-05, %v631_v53  ;;  %v648_v58 = vadd.f32 1e-05, %v632_v56 }
 0x18a   : > { %v607_v59 = vpop.xlane.xlu1 %606  ;;  %v609_v60 = vpop.xlane.xlu0 %608 }
 0x18b   : > { %5724 = vrsqrt.f32 %v647_v57  ;;  %v633_v61 = vmul.f32 0.0078125, %v607_v59  ;;  %v634_v62 = vmul.f32 0.0078125, %v609_v60 }
 0x18c   : > { %5726 = vrsqrt.f32 %v648_v58 }
 0x18d   : > { %v5719_v63 = vpop.eup %5718  ;;  %v649_v2 = vadd.f32 1e-05, %v633_v61  ;;  %v650_v3 = vadd.f32 1e-05, %v634_v62 }
 0x18e   : > { %v676_v4 = vmul.f32 %v5719_v63, %v6502_v22  ;;  %v611_v5 = vpop.xlane.xlu1 %610  ;;  %v613_v6 = vpop.xlane.xlu0 %612 }
 0x18f   : > { %5728 = vrsqrt.f32 %v649_v2  ;;  %v635_v10 = vmul.f32 0.0078125, %v611_v5  ;;  %v636_v11 = vmul.f32 0.0078125, %v613_v6  ;;  %v5601_v2 = vld [vmem:[%s8255_s5 + $0x8] sm:$0xff]  }
 0x190   : > { %5730 = vrsqrt.f32 %v650_v3  ;;  %v698_v20 = vmul.f32 %v6632_v7, %v676_v4 }
 0x191   : > { %v5721_v16 = vpop.eup %5720  ;;  %v651_v17 = vadd.f32 1e-05, %v635_v10  ;;  %v652_v18 = vadd.f32 1e-05, %v636_v11 }
 0x192   : > { %v5723_v19 = vpop.eup %5722  ;;  %v677_v12 = vmul.f32 %v5721_v16, %v6510_v30  ;;  %v615_v22 = vpop.xlane.xlu1 %614  ;;  %v720_v30 = vadd.f32 %v6639_v25, %v698_v20 }
 0x193   : > { %v617_v24 = vpop.xlane.xlu0 %616  ;;  %v678_v26 = vmul.f32 %v5723_v19, %v6504_v23  ;;  %5732 = vrsqrt.f32 %v651_v17  ;;  %v637_v14 = vmul.f32 0.0078125, %v615_v22 }
 0x194   : > { %v638_v15 = vmul.f32 0.0078125, %v617_v24  ;;  %v699_v27 = vmul.f32 %v6632_v7, %v677_v12  ;;  %5734 = vrsqrt.f32 %v652_v18 }
 0x195   : > { %v5725_v28 = vpop.eup %5724  ;;  %v653_v29 = vadd.f32 1e-05, %v637_v14  ;;  %v700_v35 = vmul.f32 %v6632_v7, %v678_v26 }
 0x196   : > { %v654_v32 = vadd.f32 1e-05, %v638_v15  ;;  %v5727_v33 = vpop.eup %5726  ;;  %v721_v34 = vadd.f32 %v6639_v25, %v699_v27  ;;  %v679_v40 = vmul.f32 %v5725_v28, %v6512_v31  ;;  %v619_v41 = vpop.xlane.xlu1 %618 }
 0x197   : > { %v621_v23 = vpop.xlane.xlu0 %620  ;;  %v680_v42 = vmul.f32 %v5727_v33, %v6518_v38  ;;  %5736 = vrsqrt.f32 %v653_v29  ;;  %v639_v43 = vmul.f32 0.0078125, %v619_v41  ;;  %v722_v53 = vadd.f32 %v6639_v25, %v700_v35 }
 0x198   : > { %v701_v44 = vmul.f32 %v6632_v7, %v679_v40  ;;  %5738 = vrsqrt.f32 %v654_v32  ;;  %v640_v45 = vmul.f32 0.0078125, %v621_v23  ;;  %v6649_v48 = vpack.c.bf16 %v721_v34, %v720_v30  ;;  %v5604_v32 = vld [vmem:[%s8253_s3 + $0x58] sm:$0xff]  }
 0x199   : > { %v5729_v49 = vpop.eup %5728  ;;  %v702_v50 = vmul.f32 %v6632_v7, %v680_v42  ;;  %v655_v51 = vadd.f32 1e-05, %v639_v43  ;;  %v5606_v43 = vld [vmem:[%s8253_s3 + $0x60] sm:$0xff]  }
 0x19a   : > { %v5731_v52 = vpop.eup %5730  ;;  %v723_v31 = vadd.f32 %v6639_v25, %v701_v44  ;;  %v681_v56 = vmul.f32 %v5729_v49, %v6520_v39  ;;  %v656_v38 = vadd.f32 1e-05, %v640_v45  ;;  %v623_v57 = vpop.xlane.xlu1 %622  ;;  %5133 = vmatprep.mubr.bf16.mxu1 %v6649_v48  ;;  %5197 = vmatprep.mubr.bf16.mxu0 %v6649_v48  ;;  %v5600_v39 = vld [vmem:[%s8253_s3 + $0x48] sm:$0xff]  }
 0x19b   : > { %v625_v58 = vpop.xlane.xlu0 %624  ;;  %v682_v59 = vmul.f32 %v5731_v52, %v6526_v46  ;;  %5740 = vrsqrt.f32 %v655_v51  ;;  %v641_v60 = vmul.f32 0.0078125, %v623_v57  ;;  %v724_v4 = vadd.f32 %v6639_v25, %v702_v50 }
 0x19c   : > { %v703_v61 = vmul.f32 %v6632_v7, %v681_v56  ;;  %5742 = vrsqrt.f32 %v656_v38  ;;  %v642_v62 = vmul.f32 0.0078125, %v625_v58  ;;  %v6659_v63 = vpack.c.bf16 %v723_v31, %v722_v53  ;;  %v5608_v56 = vld [vmem:[%s8253_s3 + $0x68] sm:$0xff]  }
 0x19d   : > { %v5733_v3 = vpop.eup %5732  ;;  %v657_v46 = vadd.f32 1e-05, %v641_v60  ;;  %v704_v10 = vmul.f32 %v6632_v7, %v682_v59 }
 0x19e   : > { %v5735_v5 = vpop.eup %5734  ;;  %v725_v6 = vadd.f32 %v6639_v25, %v703_v61  ;;  %v683_v11 = vmul.f32 %v5733_v3, %v6528_v47  ;;  %v658_v16 = vadd.f32 1e-05, %v642_v62  ;;  %v627_v17 = vpop.xlane.xlu1 %626  ;;  %5134 = vmatmul.mubr.bf16.vlgmr.msra.gmra.mrb[0].mxu1 %v6659_v63  ;;  %5198 = vmatmul.mubr.bf16.vlgmr.msra.gmra.mrb[0].mxu0 %v6659_v63  ;;  %v5602_v47 = vld [vmem:[%s8253_s3 + $0x50] sm:$0xff]   ;;  %v5612_v3 = vld [vmem:[%s8253_s3 + $0x78] sm:$0xff]  }
 0x19f   : > { %v684_v18 = vmul.f32 %v5735_v5, %v6535_v54  ;;  %5744 = vrsqrt.f32 %v657_v46  ;;  %v643_v19 = vmul.f32 0.0078125, %v627_v17  ;;  %5150 = vmatpush3.bf16.msra.mxu1 %v6619_v36  ;;  %5246 = vmatpush3.bf16.msra.mxu0 %v6624_v37  ;;  %v5603_v54 = vld [vmem:[%s8255_s5 + $0x10] sm:$0xff]   ;;  %v726_v26 = vadd.f32 %v6639_v25, %v704_v10  ;;  %v5615_v46 = vld [vmem:[%s8254_s4 + $0x48] sm:$0xff]   ;;  %v5618_v10 = vld [vmem:[%s8254_s4 + $0x60] sm:$0xff]  }
 0x1a0   : > { %v705_v20 = vmul.f32 %v6632_v7, %v683_v11  ;;  %5746 = vrsqrt.f32 %v658_v16  ;;  %5151 = vmatprep.subr.bf16.mxu1 %v5600_v39  ;;  %v6677_v12 = vpack.c.bf16 %v725_v6, %v724_v4  ;;  %5247 = vmatprep.subr.bf16.mxu0 %v5601_v2  ;;  %v5610_v62 = vld [vmem:[%s8253_s3 + $0x70] sm:$0xff]   ;;  %v5613_v4 = vld [vmem:[%s8255_s5 + $0x38] sm:$0xff]   ;;  %v5619_v11 = vld [vmem:[%s8254_s4 + $0x68] sm:$0xff]  }
 0x1a1   : > { %v5737_v22 = vpop.eup %5736  ;;  %v706_v36 = vmul.f32 %v6632_v7, %v684_v18  ;;  %v659_v24 = vadd.f32 1e-05, %v643_v19  ;;  %v5616_v5 = vld [vmem:[%s8254_s4 + $0x50] sm:$0xff]   ;;  %v5617_v6 = vld [vmem:[%s8254_s4 + $0x58] sm:$0xff]   ;;  %v5622_v18 = vld [vmem:[%s8255_s5 + $0x40] sm:$0xff]  }
 0x1a2   : > { %v5739_v37 = vpop.eup %5738  ;;  %v727_v14 = vadd.f32 %v6639_v25, %v705_v20  ;;  %v685_v15 = vmul.f32 %v5737_v22, %v6538_v55  ;;  %5137 = vmatprep.mubr.bf16.mxu1 %v6677_v12  ;;  %5201 = vmatprep.mubr.bf16.mxu0 %v6677_v12  ;;  %v5605_v55 = vld [vmem:[%s8255_s5 + $0x18] sm:$0xff]   ;;  %v5620_v16 = vld [vmem:[%s8254_s4 + $0x70] sm:$0xff]   ;;  %v5623_v19 = vld [vmem:[%s8255_s5 + $0x48] sm:$0xff]  }
 0x1a3   : > { %v686_v27 = vmul.f32 %v5739_v37, %v6551_v0  ;;  %5748 = vrsqrt.f32 %v659_v24  ;;  %5152 = vmatpush3.bf16.msra.mxu1 %v5600_v39  ;;  %5248 = vmatpush3.bf16.msra.mxu0 %v5601_v2  ;;  %v728_v0 = vadd.f32 %v6639_v25, %v706_v36  ;;  %v5621_v17 = vld [vmem:[%s8254_s4 + $0x78] sm:$0xff]   ;;  %v5624_v20 = vld [vmem:[%s8255_s5 + $0x50] sm:$0xff]   ;;  %v5627_v22 = vld [vmem:[%s8255_s5 + $0x68] sm:$0xff]  }
 0x1a4   : > { %v707_v28 = vmul.f32 %v6632_v7, %v685_v15  ;;  %5153 = vmatprep.subr.bf16.mxu1 %v5602_v47  ;;  %v6693_v29 = vpack.c.bf16 %v727_v14, %v726_v26  ;;  %5249 = vmatprep.subr.bf16.mxu0 %v5603_v54  ;;  %v5628_v36 = vld [vmem:[%s8255_s5 + $0x70] sm:$0xff]   ;;  %v5629_v24 = vld [vmem:[%s8255_s5 + $0x78] sm:$0xff]  }
 0x1a5   : > { %v5741_v33 = vpop.eup %5740  ;;  %v708_v35 = vmul.f32 %v6632_v7, %v686_v27 }
 0x1a6   : > { %v5743_v30 = vpop.eup %5742  ;;  %v729_v34 = vadd.f32 %v6639_v25, %v707_v28  ;;  %v687_v40 = vmul.f32 %v5741_v33, %v6554_v1  ;;  %5138 = vmatmul.mubr.bf16.gmra.mrb[4].mxu1 %v6693_v29  ;;  %5202 = vmatmul.mubr.bf16.gmra.mrb[4].mxu0 %v6693_v29  ;;  %v5607_v1 = vld [vmem:[%s8255_s5 + $0x20] sm:$0xff]  }
 0x1a7   : > { %v688_v41 = vmul.f32 %v5743_v30, %v6561_v8  ;;  %5154 = vmatpush3.bf16.msra.mxu1 %v5602_v47  ;;  %5250 = vmatpush3.bf16.msra.mxu0 %v5603_v54  ;;  %v730_v49 = vadd.f32 %v6639_v25, %v708_v35  ;;  %v5625_v47 = vld [vmem:[%s8255_s5 + $0x58] sm:$0xff]   ;;  %v5626_v54 = vld [vmem:[%s8255_s5 + $0x60] sm:$0xff]  }
 0x1a8   : > { %v709_v23 = vmul.f32 %v6632_v7, %v687_v40  ;;  %5155 = vmatprep.subr.bf16.mxu1 %v5604_v32  ;;  %v6709_v42 = vpack.c.bf16 %v729_v34, %v728_v0  ;;  %5251 = vmatprep.subr.bf16.mxu0 %v5605_v55 }
 0x1a9   : > { %v5745_v44 = vpop.eup %5744  ;;  %v710_v45 = vmul.f32 %v6632_v7, %v688_v41 }
 0x1aa   : > { %v5747_v8 = vpop.eup %5746  ;;  %v731_v50 = vadd.f32 %v6639_v25, %v709_v23  ;;  %v689_v51 = vmul.f32 %v5745_v44, %v6564_v9  ;;  %5141 = vmatprep.mubr.bf16.mxu1 %v6709_v42  ;;  %5205 = vmatprep.mubr.bf16.mxu0 %v6709_v42  ;;  %v5609_v9 = vld [vmem:[%s8255_s5 + $0x28] sm:$0xff]  }
 0x1ab   : > { %v690_v52 = vmul.f32 %v5747_v8, %v6577_v13  ;;  %5156 = vmatpush3.bf16.msra.mxu1 %v5604_v32  ;;  %5252 = vmatpush3.bf16.msra.mxu0 %v5605_v55  ;;  %v732_v57 = vadd.f32 %v6639_v25, %v710_v45 }
 0x1ac   : > { %v711_v53 = vmul.f32 %v6632_v7, %v689_v51  ;;  %5157 = vmatprep.subr.bf16.mxu1 %v5606_v43  ;;  %v6725_v31 = vpack.c.bf16 %v731_v50, %v730_v49  ;;  %5253 = vmatprep.subr.bf16.mxu0 %v5607_v1 }
 0x1ad   : > { %v5749_v38 = vpop.eup %5748  ;;  %v712_v58 = vmul.f32 %v6632_v7, %v690_v52 }
 0x1ae   : > { %v733_v13 = vadd.f32 %v6639_v25, %v711_v53  ;;  %v691_v59 = vmul.f32 %v5749_v38, %v6580_v21  ;;  %5142 = vmatmul.mubr.bf16.gmra.mrb[8].mxu1 %v6725_v31  ;;  %5206 = vmatmul.mubr.bf16.gmra.mrb[8].mxu0 %v6725_v31  ;;  %v5611_v21 = vld [vmem:[%s8255_s5 + $0x30] sm:$0xff]  }
 0x1af   : > { %5158 = vmatpush3.bf16.msra.mxu1 %v5606_v43  ;;  %5254 = vmatpush3.bf16.msra.mxu0 %v5607_v1  ;;  %v734_v39 = vadd.f32 %v6639_v25, %v712_v58 }
 0x1b0   : > { %v713_v60 = vmul.f32 %v6632_v7, %v691_v59  ;;  %5159 = vmatprep.subr.bf16.mxu1 %v5608_v56  ;;  %v6740_v61 = vpack.c.bf16 %v733_v13, %v732_v57  ;;  %5255 = vmatprep.subr.bf16.mxu0 %v5609_v9 }
 0x1b2   : > { %v735_v2 = vadd.f32 %v6639_v25, %v713_v60  ;;  %5145 = vmatprep.mubr.bf16.mxu1 %v6740_v61  ;;  %5209 = vmatprep.mubr.bf16.mxu0 %v6740_v61  ;;  %v5614_v25 = vld [vmem:[%s8254_s4 + $0x40] sm:$0xff]  }
 0x1b3   : > { %5160 = vmatpush3.bf16.msra.mxu1 %v5608_v56  ;;  %5256 = vmatpush3.bf16.msra.mxu0 %v5609_v9 }
 0x1b4   : > { %5161 = vmatprep.subr.bf16.mxu1 %v5610_v62  ;;  %v6752_v7 = vpack.c.bf16 %v735_v2, %v734_v39  ;;  %5257 = vmatprep.subr.bf16.mxu0 %v5611_v21 }
 0x1b6   : > { %5146 = vmatmul.mubr.bf16.gmra.mrb[12].mxu1 %v6752_v7  ;;  %5210 = vmatmul.mubr.bf16.gmra.mrb[12].mxu0 %v6752_v7 }
 0x1b7   : > { %5162 = vmatpush3.bf16.msra.mxu1 %v5610_v62  ;;  %5165 = vmatprep.mubr.bf16.mxu1 %v6649_v48 }
 0x1b8   : > { %5258 = vmatpush3.bf16.msra.mxu0 %v5611_v21  ;;  %5261 = vmatprep.mubr.bf16.mxu0 %v6649_v48 }
 0x1b9   : > { %5163 = vmatprep.subr.bf16.mxu1 %v5612_v3  ;;  %5259 = vmatprep.subr.bf16.mxu0 %v5613_v4 }
 0x1bb   : > { %5164 = vmatpush3.bf16.msra.mxu1 %v5612_v3 }
 0x1bc   : > { %5260 = vmatpush3.bf16.msra.mxu0 %v5613_v4  ;;  %5213 = vmatprep.subr.bf16.mxu1 %v5614_v25 }
 0x1be   : > { %5166 = vmatmul.mubr.bf16.vlgmr.msra.gmra.mrb[16].mxu1 %v6659_v63 }
 0x1bf   : > { %5214 = vmatpush3.bf16.msra.mxu1 %v5614_v25  ;;  %5262 = vmatmul.mubr.bf16.vlgmr.msra.gmra.mrb[16].mxu0 %v6659_v63 }
 0x1c0   : > { %5169 = vmatprep.mubr.bf16.mxu1 %v6677_v12  ;;  %5265 = vmatprep.mubr.bf16.mxu0 %v6677_v12 }
 0x1c1   : > { %5215 = vmatprep.subr.bf16.mxu1 %v5615_v46 }
 0x1c3   : > { %5216 = vmatpush3.bf16.msra.mxu1 %v5615_v46 }
 0x1c4   : > { %5217 = vmatprep.subr.bf16.mxu1 %v5616_v5 }
 0x1c6   : > { %5170 = vmatmul.mubr.bf16.gmra.mrb[20].mxu1 %v6693_v29 }
 0x1c7   : > { %5218 = vmatpush3.bf16.msra.mxu1 %v5616_v5  ;;  %5266 = vmatmul.mubr.bf16.gmra.mrb[20].mxu0 %v6693_v29 }
 0x1c8   : > { %5173 = vmatprep.mubr.bf16.mxu1 %v6709_v42  ;;  %5269 = vmatprep.mubr.bf16.mxu0 %v6709_v42 }
 0x1c9   : > { %5219 = vmatprep.subr.bf16.mxu1 %v5617_v6 }
 0x1cb   : > { %5220 = vmatpush3.bf16.msra.mxu1 %v5617_v6 }
 0x1cc   : > { %5221 = vmatprep.subr.bf16.mxu1 %v5618_v10 }
 0x1ce   : > { %5174 = vmatmul.mubr.bf16.gmra.mrb[24].mxu1 %v6725_v31 }
 0x1cf   : > { %5222 = vmatpush3.bf16.msra.mxu1 %v5618_v10  ;;  %5270 = vmatmul.mubr.bf16.gmra.mrb[24].mxu0 %v6725_v31 }
 0x1d0   : > { %5177 = vmatprep.mubr.bf16.mxu1 %v6740_v61  ;;  %5273 = vmatprep.mubr.bf16.mxu0 %v6740_v61 }
 0x1d1   : > { %5223 = vmatprep.subr.bf16.mxu1 %v5619_v11 }
 0x1d3   : > { %5224 = vmatpush3.bf16.msra.mxu1 %v5619_v11 }
 0x1d4   : > { %5225 = vmatprep.subr.bf16.mxu1 %v5620_v16 }
 0x1d6   : > { %5178 = vmatmul.mubr.bf16.gmra.mrb[28].mxu1 %v6752_v7 }
 0x1d7   : > { %5226 = vmatpush3.bf16.msra.mxu1 %v5620_v16  ;;  %5274 = vmatmul.mubr.bf16.gmra.mrb[28].mxu0 %v6752_v7 }
 0x1d8   : > { %5229 = vmatprep.mubr.bf16.mxu1 %v6649_v48  ;;  %5227 = vmatprep.subr.bf16.mxu1 %v5621_v17 }
 0x1db   : > { %5228 = vmatpush3.bf16.msra.mxu1 %v5621_v17 }
 0x1dc   : > { %5277 = vmatprep.subr.bf16.mxu1 %v5622_v18 }
 0x1de   : > { %5230 = vmatmul.mubr.bf16.vlgmr.msra.gmra.mrb[32].mxu1 %v6659_v63 }
 0x1df   : > { %5233 = vmatprep.mubr.bf16.mxu1 %v6677_v12  ;;  %5278 = vmatpush3.bf16.msra.mxu1 %v5622_v18 }
 0x1e0   : > { %5279 = vmatprep.subr.bf16.mxu1 %v5623_v19 }
 0x1e3   : > { %5280 = vmatpush3.bf16.msra.mxu1 %v5623_v19 }
 0x1e4   : > { %5281 = vmatprep.subr.bf16.mxu1 %v5624_v20 }
 0x1e6   : > { %5234 = vmatmul.mubr.bf16.gmra.mrb[36].mxu1 %v6693_v29 }
 0x1e7   : > { %5237 = vmatprep.mubr.bf16.mxu1 %v6709_v42  ;;  %5282 = vmatpush3.bf16.msra.mxu1 %v5624_v20 }
 0x1e8   : > { %5283 = vmatprep.subr.bf16.mxu1 %v5625_v47 }
 0x1eb   : > { %5284 = vmatpush3.bf16.msra.mxu1 %v5625_v47 }
 0x1ec   : > { %5285 = vmatprep.subr.bf16.mxu1 %v5626_v54 }
 0x1ee   : > { %5238 = vmatmul.mubr.bf16.gmra.mrb[40].mxu1 %v6725_v31 }
 0x1ef   : > { %5241 = vmatprep.mubr.bf16.mxu1 %v6740_v61  ;;  %5286 = vmatpush3.bf16.msra.mxu1 %v5626_v54 }
 0x1f0   : > { %5287 = vmatprep.subr.bf16.mxu1 %v5627_v22 }
 0x1f3   : > { %5288 = vmatpush3.bf16.msra.mxu1 %v5627_v22 }
 0x1f4   : > { %5289 = vmatprep.subr.bf16.mxu1 %v5628_v36 }
 0x1f6   : > { %5242 = vmatmul.mubr.bf16.gmra.mrb[44].mxu1 %v6752_v7 }
 0x1f7   : > { %5290 = vmatpush3.bf16.msra.mxu1 %v5628_v36  ;;  %5293 = vmatprep.mubr.bf16.mxu1 %v6649_v48 }
 0x1f8   : > { %5291 = vmatprep.subr.bf16.mxu1 %v5629_v24 }
 0x1fb   : > { %5292 = vmatpush3.bf16.msra.mxu1 %v5629_v24 }
 0x1fe   : > { %5294 = vmatmul.mubr.bf16.vlgmr.msra.gmra.mrb[48].mxu1 %v6659_v63 }
 0x1ff   : > { %5297 = vmatprep.mubr.bf16.mxu1 %v6677_v12 }
 0x206   : > { %5298 = vmatmul.mubr.bf16.gmra.mrb[52].mxu1 %v6693_v29 }
 0x207   : > { %5301 = vmatprep.mubr.bf16.mxu1 %v6709_v42 }
 0x20e   : > { %5302 = vmatmul.mubr.bf16.gmra.mrb[56].mxu1 %v6725_v31 }
 0x20f   : > { %5305 = vmatprep.mubr.bf16.mxu1 %v6740_v61 }
 0x216   : > { %5306 = vmatmul.mubr.bf16.gmra.mrb[60].mxu1 %v6752_v7 }
 0x271   : > { %v6842_v37 = vpop.f32.mrb[0].mxu1  ;;  %v5199_v26 = vpop.f32.mrb[0].mxu0 }
 0x272   : > { %v858_v48 = vpop.f32.mrb[1].mxu1  ;;  %v1196_v14 = vpop.f32.mrb[1].mxu0 }
 0x273   : > { %v6844_v15 = vpop.f32.mrb[2].mxu1  ;;  %v5200_v63 = vpop.f32.mrb[2].mxu0 }
 0x274   : > { %v1067_v12 = vpack.c.bf16 %v6844_v15, %v6842_v37  ;;  %v1405_v27 = vpack.c.bf16 %v5200_v63, %v5199_v26  ;;  %v861_v28 = vpop.f32.mrb[3].mxu1  ;;  %v1199_v29 = vpop.f32.mrb[3].mxu0 }
 0x275   : > { %v1066_v32 = vpack.c.bf16 %v861_v28, %v858_v48  ;;  %v1404_v55 = vpack.c.bf16 %v1199_v29, %v1196_v14 }
 0x276   : > { %v1787_v8 = vsel %vm1758_vm0, %v1405_v27, 0 }
 0x277   : > { %v1784_v33 = vsel %vm1758_vm0, %v1404_v55, 0  ;;  %5501 = vmatprep.subr.msk.bf16.mxu0 %vm1758_vm0, %v1404_v55  ;;  %5325 = vmatprep.mubr.msk.bf16.mxu0 %vm1758_vm0, %v1066_v32 }
 0x278   : > { %5310 = vmatpush3.bf16.xpose.msra.mxu0 %v1784_v33 }
 0x279   : > { %v6851_v0 = vpop.f32.mrb[4].mxu1  ;;  %v5203_v30 = vpop.f32.mrb[4].mxu0  ;;  %5502 = vmatprep.subr.msk.bf16.mxu0 %vm1758_vm0, %v1405_v27 }
 0x27a   : > { %v6854_v34 = vpop.f32.mrb[5].mxu1  ;;  %v1212_v35 = vpop.f32.mrb[5].mxu0 }
 0x27b   : > { %v6856_v40 = vpop.f32.mrb[6].mxu1  ;;  %v5204_v41 = vpop.f32.mrb[6].mxu0 }
 0x27c   : > { %v1069_v23 = vpack.c.bf16 %v6856_v40, %v6851_v0  ;;  %v1407_v42 = vpack.c.bf16 %v5204_v41, %v5203_v30  ;;  %v6860_v43 = vpop.f32.mrb[7].mxu1  ;;  %v1215_v1 = vpop.f32.mrb[7].mxu0 }
 0x27d   : > { %v1068_v44 = vpack.c.bf16 %v6860_v43, %v6854_v34  ;;  %v1406_v45 = vpack.c.bf16 %v1215_v1, %v1212_v35 }
 0x27e   : > { %v1793_v6 = vsel %vm1758_vm0, %v1407_v42, 0 }
 0x27f   : > { %v1790_v59 = vsel %vm1758_vm0, %v1406_v45, 0 }
 0x280   : > { %5312 = vmatpush3.bf16.xpose.msra.mxu0 %v1787_v8 }
 0x281   : > { %v6865_v49 = vpop.f32.mrb[8].mxu1  ;;  %v5207_v50 = vpop.f32.mrb[8].mxu0  ;;  %5503 = vmatprep.subr.msk.bf16.mxu0 %vm1758_vm0, %v1406_v45 }
 0x282   : > { %v6868_v51 = vpop.f32.mrb[9].mxu1  ;;  %v1228_v52 = vpop.f32.mrb[9].mxu0 }
 0x283   : > { %v6870_v53 = vpop.f32.mrb[10].mxu1  ;;  %v5208_v31 = vpop.f32.mrb[10].mxu0 }
 0x284   : > { %v1071_v56 = vpack.c.bf16 %v6870_v53, %v6865_v49  ;;  %v1409_v9 = vpack.c.bf16 %v5208_v31, %v5207_v50  ;;  %v6874_v38 = vpop.f32.mrb[11].mxu1  ;;  %v1231_v57 = vpop.f32.mrb[11].mxu0 }
 0x285   : > { %v1070_v13 = vpack.c.bf16 %v6874_v38, %v6868_v51  ;;  %v1408_v58 = vpack.c.bf16 %v1231_v57, %v1228_v52 }
 0x287   : > { %v1796_v26 = vsel %vm1758_vm0, %v1408_v58, 0 }
 0x288   : > { %5314 = vmatpush3.bf16.xpose.msra.mxu0 %v1790_v59 }
 0x289   : > { %v6879_v60 = vpop.f32.mrb[12].mxu1  ;;  %v5211_v61 = vpop.f32.mrb[12].mxu0  ;;  %5504 = vmatprep.subr.msk.bf16.mxu0 %vm1758_vm0, %v1407_v42  ;;  %v1799_v42 = vsel %vm1758_vm0, %v1409_v9, 0 }
 0x28a   : > { %v6882_v62 = vpop.f32.mrb[13].mxu1  ;;  %v1244_v21 = vpop.f32.mrb[13].mxu0 }
 0x28b   : > { %v6884_v39 = vpop.f32.mrb[14].mxu1  ;;  %v5212_v2 = vpop.f32.mrb[14].mxu0 }
 0x28c   : > { %v1073_v7 = vpack.c.bf16 %v6884_v39, %v6879_v60  ;;  %v6888_v3 = vpack.c.bf16 %v5212_v2, %v5211_v61  ;;  %v6890_v4 = vpop.f32.mrb[15].mxu1  ;;  %v1247_v25 = vpop.f32.mrb[15].mxu0 }
 0x28d   : > { %v1072_v46 = vpack.c.bf16 %v6890_v4, %v6882_v62  ;;  %v1410_v5 = vpack.c.bf16 %v1247_v25, %v1244_v21 }
 0x28f   : > { %v1802_v2 = vsel %vm1758_vm0, %v1410_v5, 0 }
 0x290   : > { %5316 = vmatpush3.bf16.xpose.msra.mxu0 %v1793_v6 }
 0x291   : > { %v6895_v10 = vpop.f32.mrb[16].mxu1  ;;  %5505 = vmatprep.subr.msk.bf16.mxu0 %vm1758_vm0, %v1408_v58 }
 0x292   : > { %v5263_v11 = vpop.f32.mrb[16].mxu0  ;;  %v1003_v16 = vpop.f32.mrb[17].mxu1 }
 0x293   : > { %v1534_v17 = vpop.f32.mrb[17].mxu0  ;;  %v6898_v18 = vpop.f32.mrb[18].mxu1 }
 0x294   : > { %v1075_v19 = vpack.c.bf16 %v6898_v18, %v6895_v10  ;;  %v5264_v20 = vpop.f32.mrb[18].mxu0  ;;  %v1006_v47 = vpop.f32.mrb[19].mxu1 }
 0x295   : > { %v6902_v54 = vpack.c.bf16 %v5264_v20, %v5263_v11  ;;  %v1074_v22 = vpack.c.bf16 %v1006_v47, %v1003_v16  ;;  %v1537_v36 = vpop.f32.mrb[19].mxu0 }
 0x296   : > { %v1742_v24 = vpack.c.bf16 %v1537_v36, %v1534_v17 }
 0x297   : > { %5357 = vmatprep.mubr.msk.bf16.mxu1 %vm1758_vm0, %v1074_v22 }
 0x298   : > { %5318 = vmatpush3.bf16.xpose.msra.mxu0 %v1796_v26 }
 0x299   : > { %v6906_v48 = vpop.f32.mrb[20].mxu1  ;;  %5506 = vmatprep.subr.msk.bf16.mxu0 %vm1758_vm0, %v1409_v9 }
 0x29a   : > { %v5267_v14 = vpop.f32.mrb[20].mxu0  ;;  %v6909_v63 = vpop.f32.mrb[21].mxu1 }
 0x29b   : > { %v1550_v27 = vpop.f32.mrb[21].mxu0  ;;  %v6911_v28 = vpop.f32.mrb[22].mxu1 }
 0x29c   : > { %v1077_v29 = vpack.c.bf16 %v6911_v28, %v6906_v48  ;;  %v5268_v32 = vpop.f32.mrb[22].mxu0  ;;  %v6915_v55 = vpop.f32.mrb[23].mxu1 }
 0x29d   : > { %v6917_v33 = vpack.c.bf16 %v5268_v32, %v5267_v14  ;;  %v1076_v30 = vpack.c.bf16 %v6915_v55, %v6909_v63  ;;  %v1553_v35 = vpop.f32.mrb[23].mxu0 }
 0x29e   : > { %v1744_v41 = vpack.c.bf16 %v1553_v35, %v1550_v27  ;;  %v1805_v27 = vsel %vm1758_vm0, %v6888_v3, 0 }
 0x2a0   : > { %5320 = vmatpush3.bf16.xpose.msra.mxu0 %v1799_v42 }
 0x2a1   : > { %v6922_v1 = vpop.f32.mrb[24].mxu1  ;;  %5507 = vmatprep.subr.msk.bf16.mxu0 %vm1758_vm0, %v1410_v5 }
 0x2a2   : > { %v5271_v45 = vpop.f32.mrb[24].mxu0  ;;  %v6925_v8 = vpop.f32.mrb[25].mxu1 }
 0x2a3   : > { %v1566_v50 = vpop.f32.mrb[25].mxu0  ;;  %v6927_v52 = vpop.f32.mrb[26].mxu1 }
 0x2a4   : > { %v1079_v31 = vpack.c.bf16 %v6927_v52, %v6922_v1  ;;  %v5272_v57 = vpop.f32.mrb[26].mxu0  ;;  %v6931_v58 = vpop.f32.mrb[27].mxu1 }
 0x2a5   : > { %v6933_v59 = vpack.c.bf16 %v5272_v57, %v5271_v45  ;;  %v1078_v9 = vpack.c.bf16 %v6931_v58, %v6925_v8  ;;  %v1569_v61 = vpop.f32.mrb[27].mxu0 }
 0x2a6   : > { %v1746_v21 = vpack.c.bf16 %v1569_v61, %v1566_v50 }
 0x2a8   : > { %5322 = vmatpush3.bf16.xpose.msra.mxu0 %v1802_v2 }
 0x2a9   : > { %v6938_v25 = vpop.f32.mrb[28].mxu1  ;;  %5508 = vmatprep.subr.msk.bf16.mxu0 %vm1758_vm0, %v6888_v3 }
 0x2aa   : > { %v5275_v6 = vpop.f32.mrb[28].mxu0  ;;  %v6942_v11 = vpop.f32.mrb[29].mxu1 }
 0x2ab   : > { %v1582_v16 = vpop.f32.mrb[29].mxu0  ;;  %v6944_v17 = vpop.f32.mrb[30].mxu1 }
 0x2ac   : > { %v1081_v20 = vpack.c.bf16 %v6944_v17, %v6938_v25  ;;  %v5276_v47 = vpop.f32.mrb[30].mxu0  ;;  %v6948_v22 = vpop.f32.mrb[31].mxu1 }
 0x2ad   : > { %v6950_v36 = vpack.c.bf16 %v5276_v47, %v5275_v6  ;;  %v1080_v5 = vpack.c.bf16 %v6948_v22, %v6942_v11  ;;  %v1585_v26 = vpop.f32.mrb[31].mxu0 }
 0x2ae   : > { %v1748_v14 = vpack.c.bf16 %v1585_v26, %v1582_v16 }
 0x2b0   : > { %5324 = vmatpush3.bf16.xpose.msra.mxu0 %v1805_v27 }
 0x2b1   : > { %v5231_v32 = vpop.f32.mrb[32].mxu1  ;;  %5373 = vmatprep.subr.bf16.mxu0 %v1742_v24 }
 0x2b2   : > { %v1341_v35 = vpop.f32.mrb[33].mxu1 }
 0x2b3   : > { %v5232_v42 = vpop.f32.mrb[34].mxu1 }
 0x2b4   : > { %v1413_v45 = vpack.c.bf16 %v5232_v42, %v5231_v32  ;;  %v1344_v50 = vpop.f32.mrb[35].mxu1 }
 0x2b5   : > { %v1412_v57 = vpack.c.bf16 %v1344_v50, %v1341_v35 }
 0x2b7   : > { %v1929_v61 = vsel %vm1758_vm0, %v1412_v57, 0  ;;  %5326 = vmatmul.mubr.msk.bf16.vlgmr.msra.gmra.mrb[32].mxu0 %vm1758_vm0, %v1067_v12  ;;  %5509 = vmatprep.subr.msk.bf16.mxu1 %vm1758_vm0, %v1412_v57  ;;  %v1932_v12 = vsel %vm1758_vm0, %v1413_v45, 0 }
 0x2b8   : > { %5329 = vmatprep.mubr.msk.bf16.mxu0 %vm1758_vm0, %v1068_v44  ;;  %5342 = vmatpush3.bf16.xpose.msra.mxu1 %v1929_v61 }
 0x2b9   : > { %5374 = vmatpush3.bf16.msra.mxu0 %v1742_v24  ;;  %v5235_v3 = vpop.f32.mrb[36].mxu1  ;;  %5510 = vmatprep.subr.msk.bf16.mxu1 %vm1758_vm0, %v1413_v45 }
 0x2ba   : > { %5375 = vmatprep.subr.bf16.mxu0 %v6902_v54  ;;  %v1357_v2 = vpop.f32.mrb[37].mxu1 }
 0x2bb   : > { %v5236_v6 = vpop.f32.mrb[38].mxu1 }
 0x2bc   : > { %v1415_v16 = vpack.c.bf16 %v5236_v6, %v5235_v3  ;;  %v1360_v37 = vpop.f32.mrb[39].mxu1 }
 0x2bd   : > { %v1414_v15 = vpack.c.bf16 %v1360_v37, %v1357_v2  ;;  %5376 = vmatpush3.bf16.msra.mxu0 %v6902_v54 }
 0x2be   : > { %5377 = vmatprep.subr.bf16.mxu0 %v1744_v41  ;;  %v1938_v49 = vsel %vm1758_vm0, %v1415_v16, 0 }
 0x2bf   : > { %5330 = vmatmul.mubr.msk.bf16.gmra.mrb[36].mxu0 %vm1758_vm0, %v1069_v23  ;;  %v1935_v0 = vsel %vm1758_vm0, %v1414_v15, 0 }
 0x2c0   : > { %5333 = vmatprep.mubr.msk.bf16.mxu0 %vm1758_vm0, %v1070_v13  ;;  %5344 = vmatpush3.bf16.xpose.msra.mxu1 %v1932_v12 }
 0x2c1   : > { %5378 = vmatpush3.bf16.msra.mxu0 %v1744_v41  ;;  %v5239_v34 = vpop.f32.mrb[40].mxu1  ;;  %5511 = vmatprep.subr.msk.bf16.mxu1 %vm1758_vm0, %v1414_v15 }
 0x2c2   : > { %5379 = vmatprep.subr.bf16.mxu0 %v6917_v33  ;;  %v1373_v43 = vpop.f32.mrb[41].mxu1 }
 0x2c3   : > { %v5240_v44 = vpop.f32.mrb[42].mxu1 }
 0x2c4   : > { %v1417_v54 = vpack.c.bf16 %v5240_v44, %v5239_v34  ;;  %v1376_v24 = vpop.f32.mrb[43].mxu1 }
 0x2c5   : > { %v1416_v47 = vpack.c.bf16 %v1376_v24, %v1373_v43  ;;  %5380 = vmatpush3.bf16.msra.mxu0 %v6917_v33 }
 0x2c6   : > { %5381 = vmatprep.subr.bf16.mxu0 %v1746_v21  ;;  %v1944_v27 = vsel %vm1758_vm0, %v1417_v54, 0 }
 0x2c7   : > { %5334 = vmatmul.mubr.msk.bf16.gmra.mrb[40].mxu0 %vm1758_vm0, %v1071_v56 }
 0x2c8   : > { %5337 = vmatprep.mubr.msk.bf16.mxu0 %vm1758_vm0, %v1072_v46  ;;  %5346 = vmatpush3.bf16.xpose.msra.mxu1 %v1935_v0 }
 0x2c9   : > { %5382 = vmatpush3.bf16.msra.mxu0 %v1746_v21  ;;  %v5243_v40 = vpop.f32.mrb[44].mxu1  ;;  %5512 = vmatprep.subr.msk.bf16.mxu1 %vm1758_vm0, %v1415_v16 }
 0x2ca   : > { %5383 = vmatprep.subr.bf16.mxu0 %v6933_v59  ;;  %v1389_v23 = vpop.f32.mrb[45].mxu1 }
 0x2cb   : > { %v5244_v51 = vpop.f32.mrb[46].mxu1 }
 0x2cc   : > { %v1419_v38 = vpack.c.bf16 %v5244_v51, %v5243_v40  ;;  %v1392_v13 = vpop.f32.mrb[47].mxu1 }
 0x2cd   : > { %v1418_v33 = vpack.c.bf16 %v1392_v13, %v1389_v23  ;;  %5384 = vmatpush3.bf16.msra.mxu0 %v6933_v59  ;;  %v1941_v59 = vsel %vm1758_vm0, %v1416_v47, 0 }
 0x2ce   : > { %5385 = vmatprep.subr.bf16.mxu0 %v1748_v14  ;;  %v1950_v15 = vsel %vm1758_vm0, %v1419_v38, 0 }
 0x2cf   : > { %5338 = vmatmul.mubr.msk.bf16.gmra.mrb[44].mxu0 %vm1758_vm0, %v1073_v7  ;;  %v1947_v57 = vsel %vm1758_vm0, %v1418_v33, 0 }
 0x2d0   : > { %5348 = vmatpush3.bf16.xpose.msra.mxu1 %v1938_v49 }
 0x2d1   : > { %5386 = vmatpush3.bf16.msra.mxu0 %v1748_v14  ;;  %v5295_v53 = vpop.f32.mrb[48].mxu1  ;;  %5513 = vmatprep.subr.msk.bf16.mxu1 %vm1758_vm0, %v1416_v47 }
 0x2d2   : > { %5387 = vmatprep.subr.bf16.mxu0 %v6950_v36  ;;  %v1679_v56 = vpop.f32.mrb[49].mxu1 }
 0x2d3   : > { %v5296_v62 = vpop.f32.mrb[50].mxu1 }
 0x2d4   : > { %v1751_v4 = vpack.c.bf16 %v5296_v62, %v5295_v53  ;;  %v1682_v46 = vpop.f32.mrb[51].mxu1 }
 0x2d5   : > { %v1750_v41 = vpack.c.bf16 %v1682_v46, %v1679_v56  ;;  %5388 = vmatpush3.bf16.msra.mxu0 %v6950_v36 }
 0x2d8   : > { %5350 = vmatpush3.bf16.xpose.msra.mxu1 %v1941_v59 }
 0x2d9   : > { %v5299_v60 = vpop.f32.mrb[52].mxu1  ;;  %5514 = vmatprep.subr.msk.bf16.mxu1 %vm1758_vm0, %v1417_v54 }
 0x2da   : > { %v1695_v39 = vpop.f32.mrb[53].mxu1 }
 0x2db   : > { %v5300_v7 = vpop.f32.mrb[54].mxu1 }
 0x2dc   : > { %v1753_v21 = vpack.c.bf16 %v5300_v7, %v5299_v60  ;;  %v1698_v26 = vpop.f32.mrb[55].mxu1 }
 0x2dd   : > { %v1752_v14 = vpack.c.bf16 %v1698_v26, %v1695_v39 }
 0x2e0   : > { %5352 = vmatpush3.bf16.xpose.msra.mxu1 %v1944_v27 }
 0x2e1   : > { %v5303_v32 = vpop.f32.mrb[56].mxu1  ;;  %5515 = vmatprep.subr.msk.bf16.mxu1 %vm1758_vm0, %v1418_v33 }
 0x2e2   : > { %v1711_v35 = vpop.f32.mrb[57].mxu1 }
 0x2e3   : > { %v5304_v42 = vpop.f32.mrb[58].mxu1 }
 0x2e4   : > { %v1755_v36 = vpack.c.bf16 %v5304_v42, %v5303_v32  ;;  %v1714_v45 = vpop.f32.mrb[59].mxu1 }
 0x2e5   : > { %v1754_v50 = vpack.c.bf16 %v1714_v45, %v1711_v35 }
 0x2e8   : > { %5354 = vmatpush3.bf16.xpose.msra.mxu1 %v1947_v57 }
 0x2e9   : > { %v5307_v61 = vpop.f32.mrb[60].mxu1  ;;  %5516 = vmatprep.subr.msk.bf16.mxu1 %vm1758_vm0, %v1419_v38 }
 0x2ea   : > { %v1727_v3 = vpop.f32.mrb[61].mxu1 }
 0x2eb   : > { %v5308_v2 = vpop.f32.mrb[62].mxu1 }
 0x2ec   : > { %v1757_v6 = vpack.c.bf16 %v5308_v2, %v5307_v61  ;;  %v1730_v16 = vpop.f32.mrb[63].mxu1 }
 0x2ed   : > { %v1756_v37 = vpack.c.bf16 %v1730_v16, %v1727_v3 }
 0x2f0   : > { %5356 = vmatpush3.bf16.xpose.msra.mxu1 %v1950_v15 }
 0x2f1   : > { %5405 = vmatprep.subr.bf16.mxu1 %v1750_v41 }
 0x2f7   : > { %5358 = vmatmul.mubr.msk.bf16.vlgmr.msra.gmra.mrb[64].mxu1 %vm1758_vm0, %v1075_v19 }
 0x2f8   : > { %5361 = vmatprep.mubr.msk.bf16.mxu1 %vm1758_vm0, %v1076_v30  ;;  %5406 = vmatpush3.bf16.msra.mxu1 %v1750_v41 }
 0x2f9   : > { %5407 = vmatprep.subr.bf16.mxu1 %v1751_v4 }
 0x2fc   : > { %5408 = vmatpush3.bf16.msra.mxu1 %v1751_v4 }
 0x2fd   : > { %5409 = vmatprep.subr.bf16.mxu1 %v1752_v14 }
 0x2ff   : > { %5362 = vmatmul.mubr.msk.bf16.gmra.mrb[68].mxu1 %vm1758_vm0, %v1077_v29 }
 0x300   : > { %5365 = vmatprep.mubr.msk.bf16.mxu1 %vm1758_vm0, %v1078_v9  ;;  %5410 = vmatpush3.bf16.msra.mxu1 %v1752_v14 }
 0x301   : > { %5411 = vmatprep.subr.bf16.mxu1 %v1753_v21 }
 0x304   : > { %5412 = vmatpush3.bf16.msra.mxu1 %v1753_v21 }
 0x305   : > { %5413 = vmatprep.subr.bf16.mxu1 %v1754_v50 }
 0x307   : > { %5366 = vmatmul.mubr.msk.bf16.gmra.mrb[72].mxu1 %vm1758_vm0, %v1079_v31 }
 0x308   : > { %5369 = vmatprep.mubr.msk.bf16.mxu1 %vm1758_vm0, %v1080_v5  ;;  %5414 = vmatpush3.bf16.msra.mxu1 %v1754_v50 }
 0x309   : > { %5415 = vmatprep.subr.bf16.mxu1 %v1755_v36 }
 0x30c   : > { %5416 = vmatpush3.bf16.msra.mxu1 %v1755_v36 }
 0x30d   : > { %5417 = vmatprep.subr.bf16.mxu1 %v1756_v37 }
 0x30f   : > { %5370 = vmatmul.mubr.msk.bf16.gmra.mrb[76].mxu1 %vm1758_vm0, %v1081_v20 }
 0x310   : > { %5418 = vmatpush3.bf16.msra.mxu1 %v1756_v37 }
 0x311   : > { %5419 = vmatprep.subr.bf16.mxu1 %v1757_v6 }
 0x314   : > { %5420 = vmatpush3.bf16.msra.mxu1 %v1757_v6 }
 0x38a   : > { %v5327_v10 = vpop.f32.mrb[32].mxu0 }
 0x38b   : > { %v2051_v18 = vmul.f32 0.004166667, %v5327_v10  ;;  %v1841_v19 = vpop.f32.mrb[33].mxu0 }
 0x38c   : > { %v2049_v48 = vmul.f32 0.004166667, %v1841_v19  ;;  %v5328_v63 = vpop.f32.mrb[34].mxu0 }
 0x38d   : > { %v1844_v28 = vpop.f32.mrb[35].mxu0  ;;  %v2052_v29 = vmul.f32 0.004166667, %v5328_v63 }
 0x38e   : > { %5750 = vtanh.f32 %v2049_v48  ;;  %v2050_v55 = vmul.f32 0.004166667, %v1844_v28 }
 0x38f   : > { %5752 = vtanh.f32 %v2051_v18 }
 0x390   : > { %5754 = vtanh.f32 %v2050_v55 }
 0x391   : > { %5756 = vtanh.f32 %v2052_v29 }
 0x392   : > { %v5331_v30 = vpop.f32.mrb[36].mxu0 }
 0x393   : > { %v2055_v1 = vmul.f32 0.004166667, %v5331_v30  ;;  %v1857_v8 = vpop.f32.mrb[37].mxu0 }
 0x394   : > { %v2053_v52 = vmul.f32 0.004166667, %v1857_v8  ;;  %v5332_v31 = vpop.f32.mrb[38].mxu0 }
 0x395   : > { %v1860_v58 = vpop.f32.mrb[39].mxu0  ;;  %v2056_v9 = vmul.f32 0.004166667, %v5332_v31 }
 0x396   : > { %5758 = vtanh.f32 %v2053_v52  ;;  %v2054_v25 = vmul.f32 0.004166667, %v1860_v58 }
 0x397   : > { %5760 = vtanh.f32 %v2055_v1 }
 0x398   : > { %v5751_v11 = vpop.eup %5750  ;;  %5762 = vtanh.f32 %v2054_v25 }
 0x399   : > { %v5753_v17 = vpop.eup %5752  ;;  %v7036_v20 = vmul.f32 30.0, %v5751_v11  ;;  %5764 = vtanh.f32 %v2056_v9 }
 0x39a   : > { %v5755_v22 = vpop.eup %5754  ;;  %v5335_v5 = vpop.f32.mrb[40].mxu0  ;;  %v7042_v0 = vmul.f32 30.0, %v5753_v17 }
 0x39b   : > { %v2059_v12 = vmul.f32 0.004166667, %v5335_v5  ;;  %2145 = vmax.xlane.f32.xlu0 %v7036_v20  ;;  %v1873_v34 = vpop.f32.mrb[41].mxu0  ;;  %v7039_v43 = vmul.f32 30.0, %v5755_v22  ;;  %v5757_v44 = vpop.eup %5756 }
 0x39c   : > { %v2057_v54 = vmul.f32 0.004166667, %v1873_v34  ;;  %v5336_v24 = vpop.f32.mrb[42].mxu0  ;;  %v7045_v51 = vmul.f32 30.0, %v5757_v44 }
 0x39d   : > { %2147 = vmax.xlane.f32.xlu1 %v7039_v43  ;;  %v1876_v47 = vpop.f32.mrb[43].mxu0  ;;  %v2060_v40 = vmul.f32 0.004166667, %v5336_v24 }
 0x39e   : > { %5766 = vtanh.f32 %v2057_v54  ;;  %v2058_v23 = vmul.f32 0.004166667, %v1876_v47 }
 0x39f   : > { %5768 = vtanh.f32 %v2059_v12  ;;  %2149 = vmax.xlane.f32.xlu0 %v7042_v0 }
 0x3a0   : > { %v5759_v38 = vpop.eup %5758  ;;  %5770 = vtanh.f32 %v2058_v23 }
 0x3a1   : > { %v5761_v13 = vpop.eup %5760  ;;  %2151 = vmax.xlane.f32.xlu1 %v7045_v51  ;;  %v7048_v33 = vmul.f32 30.0, %v5759_v38  ;;  %5772 = vtanh.f32 %v2060_v40 }
 0x3a2   : > { %v5763_v49 = vpop.eup %5762  ;;  %v5339_v53 = vpop.f32.mrb[44].mxu0  ;;  %v7054_v39 = vmul.f32 30.0, %v5761_v13 }
 0x3a3   : > { %v2063_v56 = vmul.f32 0.004166667, %v5339_v53  ;;  %2153 = vmax.xlane.f32.xlu0 %v7048_v33  ;;  %v1889_v62 = vpop.f32.mrb[45].mxu0  ;;  %v7051_v4 = vmul.f32 30.0, %v5763_v49  ;;  %v5765_v46 = vpop.eup %5764 }
 0x3a4   : > { %v2061_v41 = vmul.f32 0.004166667, %v1889_v62  ;;  %v5340_v59 = vpop.f32.mrb[46].mxu0  ;;  %v7057_v26 = vmul.f32 30.0, %v5765_v46 }
 0x3a5   : > { %2155 = vmax.xlane.f32.xlu1 %v7051_v4  ;;  %v1892_v60 = vpop.f32.mrb[47].mxu0  ;;  %v2064_v7 = vmul.f32 0.004166667, %v5340_v59 }
 0x3a6   : > { %5774 = vtanh.f32 %v2061_v41  ;;  %v2062_v21 = vmul.f32 0.004166667, %v1892_v60 }
 0x3a7   : > { %5776 = vtanh.f32 %v2063_v56  ;;  %2157 = vmax.xlane.f32.xlu0 %v7054_v39 }
 0x3a8   : > { %v5767_v14 = vpop.eup %5766  ;;  %5778 = vtanh.f32 %v2062_v21 }
 0x3a9   : > { %v5769_v27 = vpop.eup %5768  ;;  %2159 = vmax.xlane.f32.xlu1 %v7057_v26  ;;  %v7060_v32 = vmul.f32 30.0, %v5767_v14  ;;  %5780 = vtanh.f32 %v2064_v7 }
 0x3aa   : > { %v5771_v35 = vpop.eup %5770  ;;  %v7066_v45 = vmul.f32 30.0, %v5769_v27 }
 0x3ab   : > { %2161 = vmax.xlane.f32.xlu0 %v7060_v32  ;;  %v7063_v42 = vmul.f32 30.0, %v5771_v35  ;;  %v5773_v36 = vpop.eup %5772 }
 0x3ac   : > { %v7069_v50 = vmul.f32 30.0, %v5773_v36 }
 0x3ad   : > { %2163 = vmax.xlane.f32.xlu1 %v7063_v42 }
 0x3af   : > { %2165 = vmax.xlane.f32.xlu0 %v7066_v45 }
 0x3b0   : > { %v5775_v57 = vpop.eup %5774 }
 0x3b1   : > { %v5777_v61 = vpop.eup %5776  ;;  %2167 = vmax.xlane.f32.xlu1 %v7069_v50  ;;  %v7072_v3 = vmul.f32 30.0, %v5775_v57 }
 0x3b2   : > { %v5779_v2 = vpop.eup %5778  ;;  %v7078_v37 = vmul.f32 30.0, %v5777_v61 }
 0x3b3   : > { %2169 = vmax.xlane.f32.xlu0 %v7072_v3  ;;  %v7075_v6 = vmul.f32 30.0, %v5779_v2  ;;  %v5781_v16 = vpop.eup %5780 }
 0x3b4   : > { %v7081_v15 = vmul.f32 30.0, %v5781_v16 }
 0x3b5   : > { %2171 = vmax.xlane.f32.xlu1 %v7075_v6 }
 0x3b7   : > { %2173 = vmax.xlane.f32.xlu0 %v7078_v37 }
 0x3b9   : > { %2175 = vmax.xlane.f32.xlu1 %v7081_v15 }
 0x3ca   : > { %v5359_v10 = vpop.f32.mrb[64].mxu1 }
 0x3cb   : > { %v2067_v18 = vmul.f32 0.004166667, %v5359_v10  ;;  %v1986_v19 = vpop.f32.mrb[65].mxu1 }
 0x3cc   : > { %v2065_v48 = vmul.f32 0.004166667, %v1986_v19  ;;  %v5360_v63 = vpop.f32.mrb[66].mxu1 }
 0x3cd   : > { %v1989_v28 = vpop.f32.mrb[67].mxu1  ;;  %v2068_v29 = vmul.f32 0.004166667, %v5360_v63 }
 0x3ce   : > { %5782 = vtanh.f32 %v2065_v48  ;;  %v2066_v55 = vmul.f32 0.004166667, %v1989_v28 }
 0x3cf   : > { %5784 = vtanh.f32 %v2067_v18 }
 0x3d0   : > { %5786 = vtanh.f32 %v2066_v55 }
 0x3d1   : > { %5788 = vtanh.f32 %v2068_v29 }
 0x3d2   : > { %v5363_v30 = vpop.f32.mrb[68].mxu1 }
 0x3d3   : > { %v2071_v1 = vmul.f32 0.004166667, %v5363_v30  ;;  %v2002_v8 = vpop.f32.mrb[69].mxu1 }
 0x3d4   : > { %v2069_v52 = vmul.f32 0.004166667, %v2002_v8  ;;  %v5364_v31 = vpop.f32.mrb[70].mxu1 }
 0x3d5   : > { %v2005_v58 = vpop.f32.mrb[71].mxu1  ;;  %v2072_v9 = vmul.f32 0.004166667, %v5364_v31 }
 0x3d6   : > { %5790 = vtanh.f32 %v2069_v52  ;;  %v2070_v25 = vmul.f32 0.004166667, %v2005_v58 }
 0x3d7   : > { %5792 = vtanh.f32 %v2071_v1 }
 0x3d8   : > { %v5783_v11 = vpop.eup %5782  ;;  %5794 = vtanh.f32 %v2070_v25 }
 0x3d9   : > { %v5785_v17 = vpop.eup %5784  ;;  %v7084_v22 = vmul.f32 30.0, %v5783_v11  ;;  %5796 = vtanh.f32 %v2072_v9 }
 0x3da   : > { %v5787_v5 = vpop.eup %5786  ;;  %v5367_v12 = vpop.f32.mrb[72].mxu1  ;;  %v7090_v38 = vmul.f32 30.0, %v5785_v17 }
 0x3db   : > { %v2075_v34 = vmul.f32 0.004166667, %v5367_v12  ;;  %2177 = vmax.xlane.f32.xlu0 %v7084_v22  ;;  %v2018_v44 = vpop.f32.mrb[73].mxu1  ;;  %v7087_v54 = vmul.f32 30.0, %v5787_v5  ;;  %v5789_v24 = vpop.eup %5788 }
 0x3dc   : > { %v2073_v47 = vmul.f32 0.004166667, %v2018_v44  ;;  %v5368_v40 = vpop.f32.mrb[74].mxu1  ;;  %v7093_v53 = vmul.f32 30.0, %v5789_v24 }
 0x3dd   : > { %2179 = vmax.xlane.f32.xlu1 %v7087_v54  ;;  %v2021_v23 = vpop.f32.mrb[75].mxu1  ;;  %v2076_v13 = vmul.f32 0.004166667, %v5368_v40 }
 0x3de   : > { %5798 = vtanh.f32 %v2073_v47  ;;  %v2074_v49 = vmul.f32 0.004166667, %v2021_v23 }
 0x3df   : > { %5800 = vtanh.f32 %v2075_v34  ;;  %2181 = vmax.xlane.f32.xlu0 %v7090_v38 }
 0x3e0   : > { %v5791_v56 = vpop.eup %5790  ;;  %5802 = vtanh.f32 %v2074_v49 }
 0x3e1   : > { %v5793_v62 = vpop.eup %5792  ;;  %2183 = vmax.xlane.f32.xlu1 %v7093_v53  ;;  %v7096_v46 = vmul.f32 30.0, %v5791_v56  ;;  %5804 = vtanh.f32 %v2076_v13 }
 0x3e2   : > { %v5795_v41 = vpop.eup %5794  ;;  %v5371_v59 = vpop.f32.mrb[76].mxu1  ;;  %v7102_v61 = vmul.f32 30.0, %v5793_v62 }
 0x3e3   : > { %v2079_v60 = vmul.f32 0.004166667, %v5371_v59  ;;  %2185 = vmax.xlane.f32.xlu0 %v7096_v46  ;;  %v2034_v7 = vpop.f32.mrb[77].mxu1  ;;  %v7099_v21 = vmul.f32 30.0, %v5795_v41  ;;  %v5797_v14 = vpop.eup %5796 }
 0x3e4   : > { %v2077_v27 = vmul.f32 0.004166667, %v2034_v7  ;;  %v5372_v35 = vpop.f32.mrb[78].mxu1  ;;  %v7105_v16 = vmul.f32 30.0, %v5797_v14 }
 0x3e5   : > { %5806 = vtanh.f32 %v2079_v60  ;;  %v2080_v36 = vmul.f32 0.004166667, %v5372_v35  ;;  %2187 = vmax.xlane.f32.xlu1 %v7099_v21  ;;  %v2037_v57 = vpop.f32.mrb[79].mxu1 }
 0x3e6   : > { %v2078_v2 = vmul.f32 0.004166667, %v2037_v57 }
 0x3e7   : > { %5808 = vtanh.f32 %v2080_v36  ;;  %2189 = vmax.xlane.f32.xlu0 %v7102_v61 }
 0x3e8   : > { %v5799_v10 = vpop.eup %5798  ;;  %5810 = vtanh.f32 %v2077_v27 }
 0x3e9   : > { %v5801_v18 = vpop.eup %5800  ;;  %2191 = vmax.xlane.f32.xlu1 %v7105_v16  ;;  %v7108_v19 = vmul.f32 30.0, %v5799_v10  ;;  %5812 = vtanh.f32 %v2078_v2 }
 0x3ea   : > { %v5803_v48 = vpop.eup %5802  ;;  %v7114_v29 = vmul.f32 30.0, %v5801_v18 }
 0x3eb   : > { %2193 = vmax.xlane.f32.xlu0 %v7108_v19  ;;  %v7111_v63 = vmul.f32 30.0, %v5803_v48  ;;  %v5805_v28 = vpop.eup %5804 }
 0x3ec   : > { %v7117_v30 = vmul.f32 30.0, %v5805_v28 }
 0x3ed   : > { %2195 = vmax.xlane.f32.xlu1 %v7111_v63 }
 0x3ef   : > { %v5807_v55 = vpop.eup %5806  ;;  %2197 = vmax.xlane.f32.xlu0 %v7114_v29 }
 0x3f0   : > { %v7119_v1 = vmul.f32 30.0, %v5807_v55 }
 0x3f1   : > { %v5809_v8 = vpop.eup %5808  ;;  %2199 = vmax.xlane.f32.xlu1 %v7117_v30 }
 0x3f2   : > { %v5811_v52 = vpop.eup %5810  ;;  %v7122_v31 = vmul.f32 30.0, %v5809_v8 }
 0x3f3   : > { %2205 = vmax.xlane.f32.xlu0 %v7119_v1  ;;  %v5813_v58 = vpop.eup %5812  ;;  %v7126_v9 = vmul.f32 30.0, %v5811_v52 }
 0x3f4   : > { %v7129_v25 = vmul.f32 30.0, %v5813_v58 }
 0x3f5   : > { %2207 = vmax.xlane.f32.xlu1 %v7122_v31 }
 0x3f7   : > { %2201 = vmax.xlane.f32.xlu0 %v7126_v9 }
 0x3f9   : > { %2203 = vmax.xlane.f32.xlu1 %v7129_v25 }
 0x428   : > { %v2146_v11 = vpop.xlane.xlu0 %2145 }
 0x429   : > { %v2209_v17 = vsub.f32 %v7036_v20, %v2146_v11 }
 0x42a   : > { %v2148_v5 = vpop.xlane.xlu1 %2147 }
 0x42b   : > { %v2241_v12 = vmul.f32 1.442695, %v2209_v17  ;;  %v2210_v34 = vsub.f32 %v7039_v43, %v2148_v5 }
 0x42c   : > { %v2150_v44 = vpop.xlane.xlu0 %2149 }
 0x42d   : > { %5814 = vpow2.f32 %v2241_v12  ;;  %v2243_v24 = vmul.f32 1.442695, %v2210_v34  ;;  %v2211_v47 = vsub.f32 %v7042_v0, %v2150_v44 }
 0x42e   : > { %v2152_v40 = vpop.xlane.xlu1 %2151 }
 0x42f   : > { %5816 = vpow2.f32 %v2243_v24  ;;  %v2245_v23 = vmul.f32 1.442695, %v2211_v47  ;;  %v2212_v13 = vsub.f32 %v7045_v51, %v2152_v40 }
 0x430   : > { %v2154_v49 = vpop.xlane.xlu0 %2153 }
 0x431   : > { %5818 = vpow2.f32 %v2245_v23  ;;  %v2247_v56 = vmul.f32 1.442695, %v2212_v13  ;;  %v2213_v62 = vsub.f32 %v7048_v33, %v2154_v49 }
 0x432   : > { %v2156_v20 = vpop.xlane.xlu1 %2155 }
 0x433   : > { %5820 = vpow2.f32 %v2247_v56  ;;  %v2249_v41 = vmul.f32 1.442695, %v2213_v62  ;;  %v2214_v43 = vsub.f32 %v7051_v4, %v2156_v20 }
 0x434   : > { %v2158_v59 = vpop.xlane.xlu0 %2157 }
 0x435   : > { %5822 = vpow2.f32 %v2249_v41  ;;  %v2251_v60 = vmul.f32 1.442695, %v2214_v43  ;;  %v2215_v0 = vsub.f32 %v7054_v39, %v2158_v59 }
 0x436   : > { %v2160_v7 = vpop.xlane.xlu1 %2159 }
 0x437   : > { %v7139_v14 = vpop.eup %5814  ;;  %5824 = vpow2.f32 %v2251_v60  ;;  %v2253_v51 = vmul.f32 1.442695, %v2215_v0  ;;  %v2216_v27 = vsub.f32 %v7057_v26, %v2160_v7 }
 0x438   : > { %v2162_v35 = vpop.xlane.xlu0 %2161  ;;  %2305 = vadd.xlane.f32.xlu0 %v7139_v14 }
 0x439   : > { %v7143_v33 = vpop.eup %5816  ;;  %5826 = vpow2.f32 %v2253_v51  ;;  %v2255_v36 = vmul.f32 1.442695, %v2216_v27  ;;  %v2217_v4 = vsub.f32 %v7060_v32, %v2162_v35 }
 0x43a   : > { %v2164_v57 = vpop.xlane.xlu1 %2163  ;;  %2307 = vadd.xlane.f32.xlu1 %v7143_v33 }
 0x43b   : > { %v7147_v39 = vpop.eup %5818  ;;  %5828 = vpow2.f32 %v2255_v36  ;;  %v2257_v2 = vmul.f32 1.442695, %v2217_v4  ;;  %v2218_v10 = vsub.f32 %v7063_v42, %v2164_v57 }
 0x43c   : > { %v2166_v18 = vpop.xlane.xlu0 %2165  ;;  %2309 = vadd.xlane.f32.xlu0 %v7147_v39 }
 0x43d   : > { %v7151_v26 = vpop.eup %5820  ;;  %5830 = vpow2.f32 %v2257_v2  ;;  %v2259_v48 = vmul.f32 1.442695, %v2218_v10  ;;  %v2219_v28 = vsub.f32 %v7066_v45, %v2166_v18 }
 0x43e   : > { %v2168_v55 = vpop.xlane.xlu1 %2167  ;;  %2311 = vadd.xlane.f32.xlu1 %v7151_v26 }
 0x43f   : > { %v7155_v32 = vpop.eup %5822  ;;  %5832 = vpow2.f32 %v2259_v48  ;;  %v2261_v8 = vmul.f32 1.442695, %v2219_v28  ;;  %v2220_v52 = vsub.f32 %v7069_v50, %v2168_v55 }
 0x440   : > { %v2170_v58 = vpop.xlane.xlu0 %2169  ;;  %2313 = vadd.xlane.f32.xlu0 %v7155_v32 }
 0x441   : > { %v7159_v42 = vpop.eup %5824  ;;  %5834 = vpow2.f32 %v2261_v8  ;;  %v2263_v11 = vmul.f32 1.442695, %v2220_v52  ;;  %v2221_v17 = vsub.f32 %v7072_v3, %v2170_v58 }
 0x442   : > { %v2172_v5 = vpop.xlane.xlu1 %2171  ;;  %2315 = vadd.xlane.f32.xlu1 %v7159_v42 }
 0x443   : > { %v7163_v45 = vpop.eup %5826  ;;  %5836 = vpow2.f32 %v2263_v11  ;;  %v2265_v12 = vmul.f32 1.442695, %v2221_v17  ;;  %v2222_v34 = vsub.f32 %v7075_v6, %v2172_v5 }
 0x444   : > { %v2174_v44 = vpop.xlane.xlu0 %2173  ;;  %2317 = vadd.xlane.f32.xlu0 %v7163_v45 }
 0x445   : > { %v7167_v50 = vpop.eup %5828  ;;  %5838 = vpow2.f32 %v2265_v12  ;;  %v2267_v24 = vmul.f32 1.442695, %v2222_v34  ;;  %v2223_v47 = vsub.f32 %v7078_v37, %v2174_v44 }
 0x446   : > { %v2176_v40 = vpop.xlane.xlu1 %2175  ;;  %2319 = vadd.xlane.f32.xlu1 %v7167_v50 }
 0x447   : > { %v7171_v3 = vpop.eup %5830  ;;  %5840 = vpow2.f32 %v2267_v24  ;;  %v2269_v23 = vmul.f32 1.442695, %v2223_v47  ;;  %v2224_v13 = vsub.f32 %v7081_v15, %v2176_v40 }
 0x448   : > { %2321 = vadd.xlane.f32.xlu0 %v7171_v3 }
 0x449   : > { %v7175_v6 = vpop.eup %5832  ;;  %5842 = vpow2.f32 %v2269_v23  ;;  %v2271_v49 = vmul.f32 1.442695, %v2224_v13 }
 0x44a   : > { %2323 = vadd.xlane.f32.xlu1 %v7175_v6 }
 0x44b   : > { %v7178_v56 = vpop.eup %5834  ;;  %5844 = vpow2.f32 %v2271_v49 }
 0x44c   : > { %2325 = vadd.xlane.f32.xlu0 %v7178_v56 }
 0x44d   : > { %v7181_v37 = vpop.eup %5836 }
 0x44e   : > { %2327 = vadd.xlane.f32.xlu1 %v7181_v37 }
 0x44f   : > { %v7184_v62 = vpop.eup %5838 }
 0x450   : > { %2329 = vadd.xlane.f32.xlu0 %v7184_v62 }
 0x451   : > { %v7187_v15 = vpop.eup %5840 }
 0x452   : > { %2331 = vadd.xlane.f32.xlu1 %v7187_v15 }
 0x453   : > { %v7190_v20 = vpop.eup %5842 }
 0x454   : > { %2333 = vadd.xlane.f32.xlu0 %v7190_v20 }
 0x455   : > { %v7193_v41 = vpop.eup %5844 }
 0x456   : > { %2335 = vadd.xlane.f32.xlu1 %v7193_v41 }
 0x468   : > { %v2178_v43 = vpop.xlane.xlu0 %2177 }
 0x469   : > { %v2225_v59 = vsub.f32 %v7084_v22, %v2178_v43 }
 0x46a   : > { %v2180_v60 = vpop.xlane.xlu1 %2179 }
 0x46b   : > { %v2273_v0 = vmul.f32 1.442695, %v2225_v59  ;;  %v2226_v7 = vsub.f32 %v7087_v54, %v2180_v60 }
 0x46c   : > { %v2182_v51 = vpop.xlane.xlu0 %2181 }
 0x46d   : > { %5846 = vpow2.f32 %v2273_v0  ;;  %v2275_v27 = vmul.f32 1.442695, %v2226_v7  ;;  %v2227_v35 = vsub.f32 %v7090_v38, %v2182_v51 }
 0x46e   : > { %v2184_v36 = vpop.xlane.xlu1 %2183 }
 0x46f   : > { %5848 = vpow2.f32 %v2275_v27  ;;  %v2277_v4 = vmul.f32 1.442695, %v2227_v35  ;;  %v2228_v57 = vsub.f32 %v7093_v53, %v2184_v36 }
 0x470   : > { %v2186_v2 = vpop.xlane.xlu0 %2185 }
 0x471   : > { %5850 = vpow2.f32 %v2277_v4  ;;  %v2279_v10 = vmul.f32 1.442695, %v2228_v57  ;;  %v2229_v18 = vsub.f32 %v7096_v46, %v2186_v2 }
 0x472   : > { %v2188_v22 = vpop.xlane.xlu1 %2187 }
 0x473   : > { %5852 = vpow2.f32 %v2279_v10  ;;  %v2281_v48 = vmul.f32 1.442695, %v2229_v18  ;;  %v2230_v54 = vsub.f32 %v7099_v21, %v2188_v22 }
 0x474   : > { %v2190_v28 = vpop.xlane.xlu0 %2189 }
 0x475   : > { %5854 = vpow2.f32 %v2281_v48  ;;  %v2283_v55 = vmul.f32 1.442695, %v2230_v54  ;;  %v2231_v38 = vsub.f32 %v7102_v61, %v2190_v28  ;;  %v5630_v54 = vld [vmem:[#allocation2] sm:$0xff]  }
 0x476   : > { %v2192_v8 = vpop.xlane.xlu1 %2191  ;;  %5437 = vmatprep.subr.bf16.mxu0 %v5630_v54 }
 0x477   : > { %v7203_v52 = vpop.eup %5846  ;;  %5856 = vpow2.f32 %v2283_v55  ;;  %v2285_v53 = vmul.f32 1.442695, %v2231_v38  ;;  %v2232_v58 = vsub.f32 %v7105_v16, %v2192_v8 }
 0x478   : > { %v2194_v11 = vpop.xlane.xlu0 %2193  ;;  %2337 = vadd.xlane.f32.xlu0 %v7203_v52 }
 0x479   : > { %v7207_v46 = vpop.eup %5848  ;;  %5858 = vpow2.f32 %v2285_v53  ;;  %v2287_v17 = vmul.f32 1.442695, %v2232_v58  ;;  %v2233_v21 = vsub.f32 %v7108_v19, %v2194_v11 }
 0x47a   : > { %v2196_v5 = vpop.xlane.xlu1 %2195  ;;  %2339 = vadd.xlane.f32.xlu1 %v7207_v46 }
 0x47b   : > { %v7211_v61 = vpop.eup %5850  ;;  %5860 = vpow2.f32 %v2287_v17  ;;  %v2289_v12 = vmul.f32 1.442695, %v2233_v21  ;;  %v2234_v34 = vsub.f32 %v7111_v63, %v2196_v5 }
 0x47c   : > { %v2198_v44 = vpop.xlane.xlu0 %2197  ;;  %2341 = vadd.xlane.f32.xlu0 %v7211_v61 }
 0x47d   : > { %v7215_v16 = vpop.eup %5852  ;;  %5862 = vpow2.f32 %v2289_v12  ;;  %v2291_v24 = vmul.f32 1.442695, %v2234_v34  ;;  %v2235_v47 = vsub.f32 %v7114_v29, %v2198_v44 }
 0x47e   : > { %v2200_v40 = vpop.xlane.xlu1 %2199  ;;  %2343 = vadd.xlane.f32.xlu1 %v7215_v16 }
 0x47f   : > { %v7219_v19 = vpop.eup %5854  ;;  %5864 = vpow2.f32 %v2291_v24  ;;  %v2293_v23 = vmul.f32 1.442695, %v2235_v47  ;;  %v2236_v13 = vsub.f32 %v7117_v30, %v2200_v40 }
 0x480   : > { %v2206_v49 = vpop.xlane.xlu0 %2205  ;;  %2345 = vadd.xlane.f32.xlu0 %v7219_v19 }
 0x481   : > { %v7223_v63 = vpop.eup %5856  ;;  %5866 = vpow2.f32 %v2293_v23  ;;  %v2295_v43 = vmul.f32 1.442695, %v2236_v13  ;;  %v2239_v30 = vsub.f32 %v7119_v1, %v2206_v49 }
 0x482   : > { %v2208_v59 = vpop.xlane.xlu1 %2207  ;;  %2347 = vadd.xlane.f32.xlu1 %v7223_v63 }
 0x483   : > { %v7226_v29 = vpop.eup %5858  ;;  %5868 = vpow2.f32 %v2295_v43  ;;  %v2240_v35 = vsub.f32 %v7122_v31, %v2208_v59  ;;  %v2301_v2 = vmul.f32 1.442695, %v2239_v30  ;;  %v5631_v30 = vld [vmem:[#allocation2 + $0x8] sm:$0xff]  }
 0x484   : > { %2349 = vadd.xlane.f32.xlu0 %v7226_v29  ;;  %v2202_v60 = vpop.xlane.xlu0 %2201 }
 0x485   : > { %v7229_v0 = vpop.eup %5860  ;;  %v2237_v7 = vsub.f32 %v7126_v9, %v2202_v60  ;;  %v2303_v9 = vmul.f32 1.442695, %v2240_v35 }
 0x486   : > { %2351 = vadd.xlane.f32.xlu1 %v7229_v0  ;;  %v2204_v51 = vpop.xlane.xlu1 %2203 }
 0x487   : > { %v7234_v27 = vpop.eup %5862  ;;  %v2297_v36 = vmul.f32 1.442695, %v2237_v7  ;;  %v2238_v4 = vsub.f32 %v7129_v25, %v2204_v51 }
 0x488   : > { %2353 = vadd.xlane.f32.xlu0 %v7234_v27 }
 0x489   : > { %v7239_v57 = vpop.eup %5864  ;;  %5870 = vpow2.f32 %v2297_v36  ;;  %v2299_v10 = vmul.f32 1.442695, %v2238_v4  ;;  %v5632_v36 = vld [vmem:[#allocation2 + $0x10] sm:$0xff]  }
 0x48a   : > { %2355 = vadd.xlane.f32.xlu1 %v7239_v57 }
 0x48b   : > { %v7242_v1 = vpop.eup %5866  ;;  %5872 = vpow2.f32 %v2299_v10 }
 0x48c   : > { %2357 = vadd.xlane.f32.xlu0 %v7242_v1  ;;  %5874 = vpow2.f32 %v2301_v2 }
 0x48d   : > { %v7245_v18 = vpop.eup %5868  ;;  %5876 = vpow2.f32 %v2303_v9 }
 0x48e   : > { %2359 = vadd.xlane.f32.xlu1 %v7245_v18 }
 0x493   : > { %v7248_v31 = vpop.eup %5870 }
 0x494   : > { %2361 = vadd.xlane.f32.xlu0 %v7248_v31 }
 0x495   : > { %v7251_v25 = vpop.eup %5872 }
 0x496   : > { %2363 = vadd.xlane.f32.xlu1 %v7251_v25  ;;  %v7254_v22 = vpop.eup %5874 }
 0x497   : > { %v7257_v48 = vpop.eup %5876 }
 0x498   : > { %2365 = vadd.xlane.f32.xlu0 %v7254_v22 }
 0x49a   : > { %2367 = vadd.xlane.f32.xlu1 %v7257_v48 }
 0x4c5   : > { %v2306_v28 = vpop.xlane.xlu0 %2305 }
 0x4c6   : > { %5878 = vrcp.f32 %v2306_v28 }
 0x4c7   : > { %v2308_v55 = vpop.xlane.xlu1 %2307 }
 0x4c8   : > { %5880 = vrcp.f32 %v2308_v55 }
 0x4c9   : > { %v2310_v38 = vpop.xlane.xlu0 %2309 }
 0x4ca   : > { %5882 = vrcp.f32 %v2310_v38 }
 0x4cb   : > { %v2312_v8 = vpop.xlane.xlu1 %2311 }
 0x4cc   : > { %5884 = vrcp.f32 %v2312_v8 }
 0x4cd   : > { %v2314_v53 = vpop.xlane.xlu0 %2313 }
 0x4ce   : > { %5886 = vrcp.f32 %v2314_v53 }
 0x4cf   : > { %v2316_v58 = vpop.xlane.xlu1 %2315 }
 0x4d0   : > { %v5879_v11 = vpop.eup %5878  ;;  %5888 = vrcp.f32 %v2316_v58 }
 0x4d1   : > { %v2318_v17 = vpop.xlane.xlu0 %2317  ;;  %v2401_v12 = vmul.f32 %v5879_v11, %v7139_v14 }
 0x4d2   : > { %v5881_v21 = vpop.eup %5880  ;;  %5890 = vrcp.f32 %v2318_v17 }
 0x4d3   : > { %v2320_v5 = vpop.xlane.xlu1 %2319  ;;  %v2402_v34 = vmul.f32 %v5881_v21, %v7143_v33 }
 0x4d4   : > { %v5883_v44 = vpop.eup %5882  ;;  %5892 = vrcp.f32 %v2320_v5 }
 0x4d5   : > { %v2322_v24 = vpop.xlane.xlu0 %2321  ;;  %v2433_v47 = vpack.c.bf16 %v2402_v34, %v2401_v12  ;;  %v2403_v23 = vmul.f32 %v5883_v44, %v7147_v39 }
 0x4d6   : > { %v5885_v40 = vpop.eup %5884  ;;  %5894 = vrcp.f32 %v2322_v24 }
 0x4d7   : > { %v2404_v13 = vmul.f32 %v5885_v40, %v7151_v26  ;;  %5389 = vmatprep.mubr.bf16.mxu0 %v2433_v47  ;;  %v2324_v49 = vpop.xlane.xlu1 %2323 }
 0x4d8   : > { %v5887_v43 = vpop.eup %5886  ;;  %5896 = vrcp.f32 %v2324_v49 }
 0x4d9   : > { %v2326_v59 = vpop.xlane.xlu0 %2325  ;;  %v2434_v60 = vpack.c.bf16 %v2404_v13, %v2403_v23  ;;  %v2405_v7 = vmul.f32 %v5887_v43, %v7155_v32 }
 0x4da   : > { %v5889_v14 = vpop.eup %5888  ;;  %5898 = vrcp.f32 %v2326_v59 }
 0x4db   : > { %5390 = vmatmul.mubr.bf16.vlgmr.msra.gmra.mrb[48].mxu0 %v2434_v60  ;;  %v2328_v33 = vpop.xlane.xlu1 %2327  ;;  %v2406_v51 = vmul.f32 %v5889_v14, %v7159_v42 }
 0x4dc   : > { %v5891_v35 = vpop.eup %5890  ;;  %5900 = vrcp.f32 %v2328_v33  ;;  %5438 = vmatpush3.bf16.msra.mxu0 %v5630_v54 }
 0x4dd   : > { %v2330_v39 = vpop.xlane.xlu0 %2329  ;;  %v2435_v26 = vpack.c.bf16 %v2406_v51, %v2405_v7  ;;  %5439 = vmatprep.subr.bf16.mxu0 %v5631_v30  ;;  %v2407_v10 = vmul.f32 %v5891_v35, %v7163_v45 }
 0x4de   : > { %v5893_v4 = vpop.eup %5892  ;;  %5902 = vrcp.f32 %v2330_v39 }
 0x4df   : > { %5393 = vmatprep.mubr.bf16.mxu0 %v2435_v26  ;;  %v2332_v2 = vpop.xlane.xlu1 %2331  ;;  %v2408_v9 = vmul.f32 %v5893_v4, %v7167_v50 }
 0x4e0   : > { %v5895_v28 = vpop.eup %5894  ;;  %5904 = vrcp.f32 %v2332_v2  ;;  %5440 = vmatpush3.bf16.msra.mxu0 %v5631_v30 }
 0x4e1   : > { %v2334_v32 = vpop.xlane.xlu0 %2333  ;;  %v2436_v42 = vpack.c.bf16 %v2408_v9, %v2407_v10  ;;  %5441 = vmatprep.subr.bf16.mxu0 %v5632_v36  ;;  %v2409_v38 = vmul.f32 %v5895_v28, %v7171_v3 }
 0x4e2   : > { %v5897_v55 = vpop.eup %5896  ;;  %5906 = vrcp.f32 %v2334_v32 }
 0x4e3   : > { %5394 = vmatmul.mubr.bf16.gmra.mrb[52].mxu0 %v2436_v42  ;;  %v2336_v54 = vpop.xlane.xlu1 %2335  ;;  %v2410_v8 = vmul.f32 %v5897_v55, %v7175_v6 }
 0x4e4   : > { %v5899_v53 = vpop.eup %5898  ;;  %5908 = vrcp.f32 %v2336_v54  ;;  %5442 = vmatpush3.bf16.msra.mxu0 %v5632_v36 }
 0x4e5   : > { %v2437_v45 = vpack.c.bf16 %v2410_v8, %v2409_v38  ;;  %v2411_v50 = vmul.f32 %v5899_v53, %v7178_v56 }
 0x4e6   : > { %v5901_v58 = vpop.eup %5900 }
 0x4e7   : > { %5397 = vmatprep.mubr.bf16.mxu0 %v2437_v45  ;;  %v2412_v11 = vmul.f32 %v5901_v58, %v7181_v37 }
 0x4e8   : > { %v5903_v17 = vpop.eup %5902 }
 0x4e9   : > { %v2438_v21 = vpack.c.bf16 %v2412_v11, %v2411_v50  ;;  %v2413_v12 = vmul.f32 %v5903_v17, %v7184_v62 }
 0x4ea   : > { %v5905_v5 = vpop.eup %5904 }
 0x4eb   : > { %5398 = vmatmul.mubr.bf16.gmra.mrb[56].mxu0 %v2438_v21  ;;  %v2414_v3 = vmul.f32 %v5905_v5, %v7187_v15 }
 0x4ec   : > { %v5907_v34 = vpop.eup %5906 }
 0x4ed   : > { %v2439_v6 = vpack.c.bf16 %v2414_v3, %v2413_v12  ;;  %v2415_v24 = vmul.f32 %v5907_v34, %v7190_v20  ;;  %v5633_v3 = vld [vmem:[#allocation2 + $0x18] sm:$0xff]  }
 0x4ee   : > { %v5909_v44 = vpop.eup %5908  ;;  %5443 = vmatprep.subr.bf16.mxu0 %v5633_v3 }
 0x4ef   : > { %5401 = vmatprep.mubr.bf16.mxu0 %v2439_v6  ;;  %v2416_v47 = vmul.f32 %v5909_v44, %v7193_v41  ;;  %5444 = vmatpush3.bf16.msra.mxu0 %v5633_v3 }
 0x4f1   : > { %v2440_v40 = vpack.c.bf16 %v2416_v47, %v2415_v24  ;;  %v5634_v24 = vld [vmem:[#allocation2 + $0x20] sm:$0xff]  }
 0x4f2   : > { %5461 = vmatprep.subr.bf16.mxu0 %v5634_v24 }
 0x4f3   : > { %5402 = vmatmul.mubr.bf16.gmra.mrb[60].mxu0 %v2440_v40 }
 0x505   : > { %v2338_v56 = vpop.xlane.xlu0 %2337 }
 0x506   : > { %5910 = vrcp.f32 %v2338_v56 }
 0x507   : > { %v2340_v37 = vpop.xlane.xlu1 %2339 }
 0x508   : > { %5912 = vrcp.f32 %v2340_v37 }
 0x509   : > { %v2342_v23 = vpop.xlane.xlu0 %2341 }
 0x50a   : > { %5914 = vrcp.f32 %v2342_v23  ;;  %v5635_v23 = vld [vmem:[#allocation2 + $0x28] sm:$0xff]  }
 0x50b   : > { %v2344_v13 = vpop.xlane.xlu1 %2343 }
 0x50c   : > { %5916 = vrcp.f32 %v2344_v13 }
 0x50d   : > { %v2346_v62 = vpop.xlane.xlu0 %2345 }
 0x50e   : > { %5918 = vrcp.f32 %v2346_v62 }
 0x50f   : > { %v2348_v15 = vpop.xlane.xlu1 %2347 }
 0x510   : > { %v5911_v49 = vpop.eup %5910  ;;  %5920 = vrcp.f32 %v2348_v15 }
 0x511   : > { %v2350_v43 = vpop.xlane.xlu0 %2349  ;;  %v2417_v41 = vmul.f32 %v5911_v49, %v7203_v52 }
 0x512   : > { %v5913_v59 = vpop.eup %5912  ;;  %5922 = vrcp.f32 %v2350_v43 }
 0x513   : > { %v2352_v20 = vpop.xlane.xlu1 %2351  ;;  %v2418_v60 = vmul.f32 %v5913_v59, %v7207_v46  ;;  %v5637_v59 = vld [vmem:[#allocation2 + $0x38] sm:$0xff]  }
 0x514   : > { %v5915_v30 = vpop.eup %5914  ;;  %5924 = vrcp.f32 %v2352_v20 }
 0x515   : > { %v2354_v14 = vpop.xlane.xlu0 %2353  ;;  %v2441_v33 = vpack.c.bf16 %v2418_v60, %v2417_v41  ;;  %v2419_v51 = vmul.f32 %v5915_v30, %v7211_v61 }
 0x516   : > { %v5917_v7 = vpop.eup %5916  ;;  %5926 = vrcp.f32 %v2354_v14 }
 0x517   : > { %v2420_v35 = vmul.f32 %v5917_v7, %v7215_v16  ;;  %5421 = vmatprep.mubr.bf16.mxu1 %v2441_v33  ;;  %v2356_v39 = vpop.xlane.xlu1 %2355 }
 0x518   : > { %v5919_v26 = vpop.eup %5918  ;;  %5928 = vrcp.f32 %v2356_v39 }
 0x519   : > { %v2358_v36 = vpop.xlane.xlu0 %2357  ;;  %v2442_v4 = vpack.c.bf16 %v2420_v35, %v2419_v51  ;;  %v2421_v46 = vmul.f32 %v5919_v26, %v7219_v19 }
 0x51a   : > { %v5921_v2 = vpop.eup %5920  ;;  %5930 = vrcp.f32 %v2358_v36 }
 0x51b   : > { %5422 = vmatmul.mubr.bf16.vlgmr.msra.gmra.mrb[80].mxu1 %v2442_v4  ;;  %v2360_v52 = vpop.xlane.xlu1 %2359  ;;  %v2422_v10 = vmul.f32 %v5921_v2, %v7223_v63 }
 0x51c   : > { %v5923_v9 = vpop.eup %5922  ;;  %5932 = vrcp.f32 %v2360_v52 }
 0x51d   : > { %v2443_v28 = vpack.c.bf16 %v2422_v10, %v2421_v46  ;;  %v2423_v16 = vmul.f32 %v5923_v9, %v7226_v29 }
 0x51e   : > { %v5925_v61 = vpop.eup %5924 }
 0x51f   : > { %5425 = vmatprep.mubr.bf16.mxu1 %v2443_v28  ;;  %v2424_v32 = vmul.f32 %v5925_v61, %v7229_v0 }
 0x520   : > { %v5927_v42 = vpop.eup %5926 }
 0x521   : > { %v2362_v55 = vpop.xlane.xlu0 %2361  ;;  %v2444_v54 = vpack.c.bf16 %v2424_v32, %v2423_v16  ;;  %v2425_v19 = vmul.f32 %v5927_v42, %v7234_v27 }
 0x522   : > { %v5929_v38 = vpop.eup %5928  ;;  %5934 = vrcp.f32 %v2362_v55 }
 0x523   : > { %5426 = vmatmul.mubr.bf16.gmra.mrb[84].mxu1 %v2444_v54  ;;  %v2364_v8 = vpop.xlane.xlu1 %2363  ;;  %v2426_v63 = vmul.f32 %v5929_v38, %v7239_v57 }
 0x524   : > { %v5931_v53 = vpop.eup %5930  ;;  %5936 = vrcp.f32 %v2364_v8 }
 0x525   : > { %v2366_v45 = vpop.xlane.xlu0 %2365  ;;  %v2445_v58 = vpack.c.bf16 %v2426_v63, %v2425_v19  ;;  %v2427_v0 = vmul.f32 %v5931_v53, %v7242_v1 }
 0x526   : > { %v5933_v50 = vpop.eup %5932  ;;  %5938 = vrcp.f32 %v2366_v45 }
 0x527   : > { %5429 = vmatprep.mubr.bf16.mxu1 %v2445_v58  ;;  %v2368_v29 = vpop.xlane.xlu1 %2367  ;;  %v2428_v11 = vmul.f32 %v5933_v50, %v7245_v18 }
 0x528   : > { %5940 = vrcp.f32 %v2368_v29 }
 0x529   : > { %v2446_v17 = vpack.c.bf16 %v2428_v11, %v2427_v0 }
 0x52b   : > { %5430 = vmatmul.mubr.bf16.gmra.mrb[88].mxu1 %v2446_v17  ;;  %v7311_v17 = vld [vmem:[%s8257_s7] ss:$0 sm:$0xff] }
 0x52c   : > { %v5935_v21 = vpop.eup %5934 }
 0x52d   : > { %v2429_v27 = vmul.f32 %v5935_v21, %v7248_v31 }
 0x52e   : > { %v5937_v5 = vpop.eup %5936 }
 0x52f   : > { %v2430_v57 = vmul.f32 %v5937_v5, %v7251_v25 }
 0x530   : > { %v5939_v12 = vpop.eup %5938 }
 0x531   : > { %v2447_v34 = vpack.c.bf16 %v2430_v57, %v2429_v27  ;;  %v2431_v44 = vmul.f32 %v5939_v12, %v7254_v22 }
 0x532   : > { %v5941_v6 = vpop.eup %5940 }
 0x533   : > { %5433 = vmatprep.mubr.bf16.mxu1 %v2447_v34  ;;  %v2432_v1 = vmul.f32 %v5941_v6, %v7257_v48  ;;  %v5636_v48 = vld [vmem:[#allocation2 + $0x30] sm:$0xff]   ;;  %v6102_v34 = vld [vmem:[%s6454_s19] sm:$0xff] }
 0x535   : > { %v2448_v18 = vpack.c.bf16 %v2432_v1, %v2431_v44 }
 0x537   : > { %5434 = vmatmul.mubr.bf16.gmra.mrb[92].mxu1 %v2448_v18  ;;  %v6103_v18 = vld [vmem:[%s6454_s19 + $0x8] sm:$0xff] }
 0x5ae   : > { %v5391_v47 = vpop.f32.mrb[48].mxu0 }
 0x5af   : > { %v2483_v40 = vpop.f32.mrb[49].mxu0 }
 0x5b0   : > { %v5392_v31 = vpop.f32.mrb[50].mxu0 }
 0x5b1   : > { %v2644_v56 = vpack.c.bf16 %v5392_v31, %v5391_v47  ;;  %v2486_v25 = vpop.f32.mrb[51].mxu0  ;;  %v6104_v47 = vld [vmem:[%s6454_s19 + $0x10] sm:$0xff] }
 0x5b2   : > { %v2643_v37 = vpack.c.bf16 %v2486_v25, %v2483_v40  ;;  %v6105_v25 = vld [vmem:[%s6454_s19 + $0x18] sm:$0xff] }
 0x5b4   : > { %5445 = vmatprep.mubr.msk.bf16.mxu0 %vm1758_vm0, %v2643_v37 }
 0x5b5   : > { %5446 = vmatmul.mubr.msk.bf16.vlgmr.msra.gmra.mrb[64].mxu0 %vm1758_vm0, %v2644_v56 }
 0x5b6   : > { %v5395_v13 = vpop.f32.mrb[52].mxu0  ;;  %5462 = vmatpush3.bf16.msra.mxu0 %v5634_v24 }
 0x5b7   : > { %v2499_v22 = vpop.f32.mrb[53].mxu0  ;;  %5463 = vmatprep.subr.bf16.mxu0 %v5635_v23 }
 0x5b8   : > { %v5396_v62 = vpop.f32.mrb[54].mxu0 }
 0x5b9   : > { %v2646_v15 = vpack.c.bf16 %v5396_v62, %v5395_v13  ;;  %v2502_v49 = vpop.f32.mrb[55].mxu0  ;;  %v6106_v62 = vld [vmem:[%s6454_s19 + $0x20] sm:$0xff] }
 0x5ba   : > { %v2645_v43 = vpack.c.bf16 %v2502_v49, %v2499_v22  ;;  %5464 = vmatpush3.bf16.msra.mxu0 %v5635_v23 }
 0x5bb   : > { %5465 = vmatprep.subr.bf16.mxu0 %v5636_v48 }
 0x5bc   : > { %5449 = vmatprep.mubr.msk.bf16.mxu0 %vm1758_vm0, %v2645_v43 }
 0x5bd   : > { %5450 = vmatmul.mubr.msk.bf16.gmra.mrb[68].mxu0 %vm1758_vm0, %v2646_v15 }
 0x5be   : > { %v5399_v20 = vpop.f32.mrb[56].mxu0  ;;  %5466 = vmatpush3.bf16.msra.mxu0 %v5636_v48 }
 0x5bf   : > { %v2515_v41 = vpop.f32.mrb[57].mxu0  ;;  %5467 = vmatprep.subr.bf16.mxu0 %v5637_v59 }
 0x5c0   : > { %v5400_v60 = vpop.f32.mrb[58].mxu0 }
 0x5c1   : > { %v2648_v30 = vpack.c.bf16 %v5400_v60, %v5399_v20  ;;  %v2518_v14 = vpop.f32.mrb[59].mxu0 }
 0x5c2   : > { %v2647_v33 = vpack.c.bf16 %v2518_v14, %v2515_v41  ;;  %5468 = vmatpush3.bf16.msra.mxu0 %v5637_v59  ;;  %v6107_v59 = vld [vmem:[%s6454_s19 + $0x28] sm:$0xff]  ;;  %v6108_v41 = vld [vmem:[%s6454_s19 + $0x30] sm:$0xff] }
 0x5c4   : > { %5453 = vmatprep.mubr.msk.bf16.mxu0 %vm1758_vm0, %v2647_v33  ;;  %v6109_v33 = vld [vmem:[%s6454_s19 + $0x38] sm:$0xff] }
 0x5c5   : > { %5454 = vmatmul.mubr.msk.bf16.gmra.mrb[72].mxu0 %vm1758_vm0, %v2648_v30 }
 0x5c6   : > { %v5403_v7 = vpop.f32.mrb[60].mxu0 }
 0x5c7   : > { %v2531_v51 = vpop.f32.mrb[61].mxu0 }
 0x5c8   : > { %v5404_v35 = vpop.f32.mrb[62].mxu0 }
 0x5c9   : > { %v2650_v39 = vpack.c.bf16 %v5404_v35, %v5403_v7  ;;  %v2534_v26 = vpop.f32.mrb[63].mxu0 }
 0x5ca   : > { %v2649_v36 = vpack.c.bf16 %v2534_v26, %v2531_v51 }
 0x5cc   : > { %5457 = vmatprep.mubr.msk.bf16.mxu0 %vm1758_vm0, %v2649_v36  ;;  %v6110_v36 = vld [vmem:[%s6454_s19 + $0x40] sm:$0xff] }
 0x5cd   : > { %5458 = vmatmul.mubr.msk.bf16.gmra.mrb[76].mxu0 %vm1758_vm0, %v2650_v39 }
 0x5ee   : > { %v5423_v4 = vpop.f32.mrb[80].mxu1 }
 0x5ef   : > { %v2580_v2 = vpop.f32.mrb[81].mxu1 }
 0x5f0   : > { %v5424_v52 = vpop.f32.mrb[82].mxu1 }
 0x5f1   : > { %v2652_v46 = vpack.c.bf16 %v5424_v52, %v5423_v4  ;;  %v2583_v10 = vpop.f32.mrb[83].mxu1 }
 0x5f2   : > { %v2651_v9 = vpack.c.bf16 %v2583_v10, %v2580_v2 }
 0x5f4   : > { %5469 = vmatprep.mubr.msk.bf16.mxu0 %vm1758_vm0, %v2651_v9  ;;  %v6112_v9 = vld [vmem:[%s6454_s19 + $0x50] sm:$0xff] }
 0x5f5   : > { %5470 = vmatmul.mubr.msk.bf16.vlgmr.msra.gmra.mrb[64].mxu0 %vm1758_vm0, %v2652_v46  ;;  %v6111_v46 = vld [vmem:[%s6454_s19 + $0x48] sm:$0xff] }
 0x5f6   : > { %v5427_v28 = vpop.f32.mrb[84].mxu1 }
 0x5f7   : > { %v2596_v61 = vpop.f32.mrb[85].mxu1 }
 0x5f8   : > { %v5428_v16 = vpop.f32.mrb[86].mxu1 }
 0x5f9   : > { %v2654_v32 = vpack.c.bf16 %v5428_v16, %v5427_v28  ;;  %v2599_v42 = vpop.f32.mrb[87].mxu1 }
 0x5fa   : > { %v2653_v55 = vpack.c.bf16 %v2599_v42, %v2596_v61  ;;  %v6113_v61 = vld [vmem:[%s6454_s19 + $0x58] sm:$0xff] }
 0x5fc   : > { %5473 = vmatprep.mubr.msk.bf16.mxu0 %vm1758_vm0, %v2653_v55 }
 0x5fd   : > { %5474 = vmatmul.mubr.msk.bf16.gmra.mrb[68].mxu0 %vm1758_vm0, %v2654_v32 }
 0x5fe   : > { %v5431_v54 = vpop.f32.mrb[88].mxu1 }
 0x5ff   : > { %v2612_v38 = vpop.f32.mrb[89].mxu1 }
 0x600   : > { %v5432_v8 = vpop.f32.mrb[90].mxu1 }
 0x601   : > { %v2656_v19 = vpack.c.bf16 %v5432_v8, %v5431_v54  ;;  %v2615_v63 = vpop.f32.mrb[91].mxu1 }
 0x602   : > { %v2655_v53 = vpack.c.bf16 %v2615_v63, %v2612_v38 }
 0x604   : > { %5477 = vmatprep.mubr.msk.bf16.mxu0 %vm1758_vm0, %v2655_v53 }
 0x605   : > { %5478 = vmatmul.mubr.msk.bf16.gmra.mrb[72].mxu0 %vm1758_vm0, %v2656_v19  ;;  %v6114_v19 = vld [vmem:[%s6454_s19 + $0x60] sm:$0xff] }
 0x60a   : > { %v5435_v45 = vpop.f32.mrb[92].mxu1 }
 0x60b   : > { %v2628_v58 = vpop.f32.mrb[93].mxu1 }
 0x60c   : > { %v5436_v50 = vpop.f32.mrb[94].mxu1 }
 0x60d   : > { %v2658_v29 = vpack.c.bf16 %v5436_v50, %v5435_v45  ;;  %v2631_v0 = vpop.f32.mrb[95].mxu1 }
 0x60e   : > { %v2657_v11 = vpack.c.bf16 %v2631_v0, %v2628_v58  ;;  %v6115_v58 = vld [vmem:[%s6454_s19 + $0x68] sm:$0xff] }
 0x610   : > { %5481 = vmatprep.mubr.msk.bf16.mxu0 %vm1758_vm0, %v2657_v11  ;;  %v6117_v11 = vld [vmem:[%s6454_s19 + $0x78] sm:$0xff] }
 0x611   : > { %5482 = vmatmul.mubr.msk.bf16.gmra.mrb[76].mxu0 %vm1758_vm0, %v2658_v29  ;;  %v6116_v29 = vld [vmem:[%s6454_s19 + $0x70] sm:$0xff]  ;;  %s8200_s19 = scalar_lea.hbm %s8354_s16, %s4804_s26 }
 0x6c8   : > { %v5471_v21 = vpop.f32.mrb[64].mxu0 }
 0x6c9   : > { %v2902_v5 = vpop.f32.mrb[65].mxu0  ;;  %v2990_v3 = vadd.f32 %v5471_v21, %v7311_v17 }
 0x6ca   : > { %v2988_v27 = vadd.f32 %v7311_v17, %v2902_v5  ;;  %v5472_v57 = vpop.f32.mrb[66].mxu0  ;;  %v5640_v5 = vld [vmem:[%s8260_s10 + $0x4] ss:$16 sps:$4 sm:$0xff]  }
 0x6cb   : > { %v2905_v12 = vpop.f32.mrb[67].mxu0  ;;  %v2991_v1 = vadd.f32 %v5472_v57, %v7311_v17  ;;  %v7325_v40 = vadd.f32 %v6104_v47, %v2990_v3  ;;  %v5643_v57 = vld [vmem:[%s8260_s10 + $0xc] ss:$16 sps:$4 sm:$0xff]   ;;  %3464 = vmatprep.subr.bf16.mxu1 %v5640_v5  ;;  %v5652_v5 = vld [vmem:[%s8260_s10 + $0x44] ss:$16 sps:$4 sm:$0xff]  }
 0x6cc   : > { %v7316_v6 = vadd.f32 %v6102_v34, %v2988_v27  ;;  %v2989_v44 = vadd.f32 %v7311_v17, %v2905_v12  ;;  %v5641_v27 = vld [vmem:[%s8260_s10 + $0x8] ss:$16 sps:$4 sm:$0xff]   ;;  %v5646_v12 = vld [vmem:[%s8260_s10 + $0x24] ss:$16 sps:$4 sm:$0xff]   ;;  %v5649_v3 = vld [vmem:[%s8260_s10 + $0x2c] ss:$16 sps:$4 sm:$0xff]   ;;  %3577 = vmatprep.subr.bf16.mxu0 %v5643_v57 }
 0x6cd   : > { %8312 = vst [vmem:[#allocation20_spill] sm:$0xff] %v7325_v40  ;;  %v7329_v37 = vadd.f32 %v6105_v25, %v2991_v1  ;;  %v5644_v34 = vld [vmem:[%s8260_s10 + $0x20] ss:$16 sps:$4 sm:$0xff]   ;;  %3578 = vmatpush1.bf16.msra.mxu0 %v5641_v27  ;;  %v5655_v27 = vld [vmem:[%s8260_s10 + $0x4c] ss:$16 sps:$4 sm:$0xff]  }
 0x6ce   : > { %8310 = vst [vmem:[#allocation18_spill] sm:$0xff] %v7316_v6  ;;  %v7321_v24 = vadd.f32 %v6103_v18, %v2989_v44  ;;  %3022 = vadd.xlane.f32.xlu0 %v7316_v6  ;;  %v5647_v44 = vld [vmem:[%s8260_s10 + $0x28] ss:$16 sps:$4 sm:$0xff]   ;;  %3579 = vmatprep.subr.bf16.mxu0 %v5649_v3 }
 0x6cf   : > { %8313 = vst [vmem:[#allocation21_spill] sm:$0xff] %v7329_v37  ;;  %v5653_v3 = vld [vmem:[%s8260_s10 + $0x48] ss:$16 sps:$4 sm:$0xff]  }
 0x6d0   : > { %8311 = vst [vmem:[#allocation19_spill] sm:$0xff] %v7321_v24  ;;  %3024 = vadd.xlane.f32.xlu1 %v7321_v24  ;;  %v5475_v31 = vpop.f32.mrb[68].mxu0 }
 0x6d1   : > { %v2918_v56 = vpop.f32.mrb[69].mxu0  ;;  %v2994_v48 = vadd.f32 %v5475_v31, %v7311_v17  ;;  %3580 = vmatpush1.bf16.msra.mxu0 %v5647_v44 }
 0x6d2   : > { %v2992_v23 = vadd.f32 %v7311_v17, %v2918_v56  ;;  %3026 = vadd.xlane.f32.xlu0 %v7325_v40  ;;  %v5476_v13 = vpop.f32.mrb[70].mxu0  ;;  %3581 = vmatprep.subr.bf16.mxu0 %v5655_v27  ;;  %v5679_v27 = vld [vmem:[%s8260_s10 + $0xcc] ss:$16 sps:$4 sm:$0xff]  }
 0x6d3   : > { %v2921_v22 = vpop.f32.mrb[71].mxu0  ;;  %v2995_v43 = vadd.f32 %v5476_v13, %v7311_v17  ;;  %v7345_v60 = vadd.f32 %v6108_v41, %v2994_v48 }
 0x6d4   : > { %v7335_v15 = vadd.f32 %v6106_v62, %v2992_v23  ;;  %v2993_v49 = vadd.f32 %v7311_v17, %v2921_v22  ;;  %3028 = vadd.xlane.f32.xlu1 %v7329_v37 }
 0x6d5   : > { %8316 = vst [vmem:[#allocation24_spill] sm:$0xff] %v7345_v60  ;;  %v7349_v7 = vadd.f32 %v6109_v33, %v2995_v43  ;;  %3582 = vmatpush1.bf16.msra.mxu0 %v5653_v3 }
 0x6d6   : > { %8314 = vst [vmem:[#allocation22_spill] sm:$0xff] %v7335_v15  ;;  %v7341_v20 = vadd.f32 %v6107_v59, %v2993_v49  ;;  %3030 = vadd.xlane.f32.xlu0 %v7335_v15 }
 0x6d7   : > { %8317 = vst [vmem:[#allocation25_spill] sm:$0xff] %v7349_v7 }
 0x6d8   : > { %8315 = vst [vmem:[#allocation23_spill] sm:$0xff] %v7341_v20  ;;  %3032 = vadd.xlane.f32.xlu1 %v7341_v20  ;;  %v5479_v30 = vpop.f32.mrb[72].mxu0 }
 0x6d9   : > { %v2934_v14 = vpop.f32.mrb[73].mxu0  ;;  %v2998_v26 = vadd.f32 %v5479_v30, %v7311_v17 }
 0x6da   : > { %v2996_v51 = vadd.f32 %v7311_v17, %v2934_v14  ;;  %3034 = vadd.xlane.f32.xlu0 %v7345_v60  ;;  %v5480_v35 = vpop.f32.mrb[74].mxu0 }
 0x6db   : > { %v2937_v39 = vpop.f32.mrb[75].mxu0  ;;  %v2999_v52 = vadd.f32 %v5480_v35, %v7311_v17  ;;  %v7365_v28 = vadd.f32 %v6112_v9, %v2998_v26 }
 0x6dc   : > { %v7355_v4 = vadd.f32 %v6110_v36, %v2996_v51  ;;  %v2997_v2 = vadd.f32 %v7311_v17, %v2937_v39  ;;  %3036 = vadd.xlane.f32.xlu1 %v7349_v7 }
 0x6dd   : > { %8320 = vst [vmem:[#allocation28_spill] sm:$0xff] %v7365_v28  ;;  %v7369_v16 = vadd.f32 %v6113_v61, %v2999_v52 }
 0x6de   : > { %8318 = vst [vmem:[#allocation26_spill] sm:$0xff] %v7355_v4  ;;  %v7361_v10 = vadd.f32 %v6111_v46, %v2997_v2  ;;  %3038 = vadd.xlane.f32.xlu0 %v7355_v4 }
 0x6df   : > { %8321 = vst [vmem:[#allocation29_spill] sm:$0xff] %v7369_v16 }
 0x6e0   : > { %8319 = vst [vmem:[#allocation27_spill] sm:$0xff] %v7361_v10  ;;  %3040 = vadd.xlane.f32.xlu1 %v7361_v10 }
 0x6e2   : > { %3042 = vadd.xlane.f32.xlu0 %v7365_v28 }
 0x6e4   : > { %3044 = vadd.xlane.f32.xlu1 %v7369_v16  ;;  %v5483_v32 = vpop.f32.mrb[76].mxu0 }
 0x6e5   : > { %v2950_v42 = vpop.f32.mrb[77].mxu0  ;;  %v3002_v8 = vadd.f32 %v5483_v32, %v7311_v17 }
 0x6e6   : > { %v3000_v55 = vadd.f32 %v7311_v17, %v2950_v42  ;;  %v5484_v54 = vpop.f32.mrb[78].mxu0 }
 0x6e7   : > { %v2953_v38 = vpop.f32.mrb[79].mxu0  ;;  %v3003_v45 = vadd.f32 %v5484_v54, %v7311_v17  ;;  %v7385_v0 = vadd.f32 %v6116_v29, %v3002_v8 }
 0x6e8   : > { %v7376_v63 = vadd.f32 %v6114_v19, %v3000_v55  ;;  %v3001_v53 = vadd.f32 %v7311_v17, %v2953_v38  ;;  %v5638_v17 = vld [vmem:[%s8260_s10] ss:$16 sps:$4 sm:$0xff]  }
 0x6e9   : > { %8324 = vst [vmem:[#allocation32_spill] sm:$0xff] %v7385_v0  ;;  %v7389_v21 = vadd.f32 %v6117_v11, %v3003_v45  ;;  %3465 = vmatpush1.bf16.msra.mxu1 %v5638_v17 }
 0x6ea   : > { %8322 = vst [vmem:[#allocation30_spill] sm:$0xff] %v7376_v63  ;;  %v7381_v50 = vadd.f32 %v6115_v58, %v3001_v53  ;;  %3046 = vadd.xlane.f32.xlu0 %v7376_v63  ;;  %3466 = vmatprep.subr.bf16.mxu1 %v5646_v12  ;;  %v5650_v12 = vld [vmem:[%s8260_s10 + $0x40] ss:$16 sps:$4 sm:$0xff]  }
 0x6eb   : > { %8325 = vst [vmem:[#allocation33_spill] sm:$0xff] %v7389_v21 }
 0x6ec   : > { %8323 = vst [vmem:[#allocation31_spill] sm:$0xff] %v7381_v50  ;;  %3048 = vadd.xlane.f32.xlu1 %v7381_v50 }
 0x6ed   : > { %3467 = vmatpush1.bf16.msra.mxu1 %v5644_v34 }
 0x6ee   : > { %3050 = vadd.xlane.f32.xlu0 %v7385_v0  ;;  %3468 = vmatprep.subr.bf16.mxu1 %v5652_v5  ;;  %v5676_v5 = vld [vmem:[%s8260_s10 + $0xc4] ss:$16 sps:$4 sm:$0xff]  }
 0x6f0   : > { %3052 = vadd.xlane.f32.xlu1 %v7389_v21 }
 0x6f1   : > { %3469 = vmatpush1.bf16.msra.mxu1 %v5650_v12  ;;  %v5677_v12 = vld [vmem:[%s8260_s10 + $0xc8] ss:$16 sps:$4 sm:$0xff]  }
 0x75b   : > { %v3023_v1 = vpop.xlane.xlu0 %3022 }
 0x75c   : > { %v3054_v18 = vmul.f32 0.0078125, %v3023_v1 }
 0x75d   : > { %v3025_v47 = vpop.xlane.xlu1 %3024 }
 0x75e   : > { %v7418_v31 = vsub.f32 %v7316_v6, %v3054_v18  ;;  %v3055_v56 = vmul.f32 0.0078125, %v3025_v47 }
 0x75f   : > { %v3027_v25 = vpop.xlane.xlu0 %3026 }
 0x760   : > { %v7421_v23 = vsub.f32 %v7321_v24, %v3055_v56  ;;  %v3056_v13 = vmul.f32 0.0078125, %v3027_v25  ;;  %v3086_v22 = vmul.f32 %v7418_v31, %v7418_v31  ;;  %v5658_v56 = vld [vmem:[%s8260_s10 + $0x64] ss:$16 sps:$4 sm:$0xff]   ;;  %v5661_v25 = vld [vmem:[%s8260_s10 + $0x6c] ss:$16 sps:$4 sm:$0xff]  }
 0x761   : > { %v3029_v48 = vpop.xlane.xlu1 %3028  ;;  %3470 = vmatprep.subr.bf16.mxu1 %v5658_v56  ;;  %3583 = vmatprep.subr.bf16.mxu0 %v5661_v25  ;;  %v5683_v56 = vld [vmem:[%s8260_s10 + $0xe8] ss:$16 sps:$4 sm:$0xff]   ;;  %v6250_v25 = vmov 0  }
 0x762   : > { %v7426_v62 = vsub.f32 %v7325_v40, %v3056_v13  ;;  %v3057_v49 = vmul.f32 0.0078125, %v3029_v48  ;;  %3102 = vadd.xlane.f32.xlu0 %v3086_v22  ;;  %v3087_v43 = vmul.f32 %v7421_v23, %v7421_v23  ;;  %v5656_v13 = vld [vmem:[%s8260_s10 + $0x60] ss:$16 sps:$4 sm:$0xff]   ;;  %v5659_v22 = vld [vmem:[%s8260_s10 + $0x68] ss:$16 sps:$4 sm:$0xff]   ;;  %3496 = vmatprep.mubr.bf16.mxu1 %v6250_v25 }
 0x763   : > { %v3031_v59 = vpop.xlane.xlu0 %3030  ;;  %3471 = vmatpush1.bf16.msra.mxu1 %v5656_v13  ;;  %3584 = vmatpush1.bf16.msra.mxu0 %v5659_v22  ;;  %v5686_v13 = vld [vmem:[#allocation5 + $0x40] sm:$0xff]  }
 0x764   : > { %v7431_v41 = vsub.f32 %v7329_v37, %v3057_v49  ;;  %v3058_v30 = vmul.f32 0.0078125, %v3031_v59  ;;  %3104 = vadd.xlane.f32.xlu1 %v3087_v43  ;;  %v3088_v14 = vmul.f32 %v7426_v62, %v7426_v62  ;;  %v5664_v59 = vld [vmem:[%s8260_s10 + $0x84] ss:$16 sps:$4 sm:$0xff]   ;;  %3609 = vmatprep.mubr.bf16.mxu0 %v6250_v25 }
 0x765   : > { %v3033_v33 = vpop.xlane.xlu1 %3032  ;;  %3472 = vmatprep.subr.bf16.mxu1 %v5664_v59  ;;  %v5688_v22 = vld [vmem:[#allocation5 + $0xc0] sm:$0xff]  }
 0x766   : > { %v7436_v51 = vsub.f32 %v7335_v15, %v3058_v30  ;;  %v3059_v35 = vmul.f32 0.0078125, %v3033_v33  ;;  %3106 = vadd.xlane.f32.xlu0 %v3088_v14  ;;  %v3089_v39 = vmul.f32 %v7431_v41, %v7431_v41  ;;  %v5667_v30 = vld [vmem:[%s8260_s10 + $0x8c] ss:$16 sps:$4 sm:$0xff]   ;;  %v5662_v33 = vld [vmem:[%s8260_s10 + $0x80] ss:$16 sps:$4 sm:$0xff]  }
 0x767   : > { %v3035_v26 = vpop.xlane.xlu0 %3034  ;;  %3585 = vmatprep.subr.bf16.mxu0 %v5667_v30  ;;  %3473 = vmatpush1.bf16.msra.mxu1 %v5662_v33 }
 0x768   : > { %v7441_v36 = vsub.f32 %v7341_v20, %v3059_v35  ;;  %v3060_v2 = vmul.f32 0.0078125, %v3035_v26  ;;  %3108 = vadd.xlane.f32.xlu1 %v3089_v39  ;;  %v3090_v52 = vmul.f32 %v7436_v51, %v7436_v51  ;;  %v5665_v35 = vld [vmem:[%s8260_s10 + $0x88] ss:$16 sps:$4 sm:$0xff]  }
 0x769   : > { %v3037_v46 = vpop.xlane.xlu1 %3036  ;;  %3586 = vmatpush1.bf16.msra.mxu0 %v5665_v35 }
 0x76a   : > { %v7446_v9 = vsub.f32 %v7345_v60, %v3060_v2  ;;  %v3061_v61 = vmul.f32 0.0078125, %v3037_v46  ;;  %3110 = vadd.xlane.f32.xlu0 %v3090_v52  ;;  %v3091_v32 = vmul.f32 %v7441_v36, %v7441_v36 }
 0x76b   : > { %v3039_v42 = vpop.xlane.xlu0 %3038 }
 0x76c   : > { %v7451_v55 = vsub.f32 %v7349_v7, %v3061_v61  ;;  %v3062_v54 = vmul.f32 0.0078125, %v3039_v42  ;;  %3112 = vadd.xlane.f32.xlu1 %v3091_v32  ;;  %v3092_v38 = vmul.f32 %v7446_v9, %v7446_v9  ;;  %v5670_v32 = vld [vmem:[%s8260_s10 + $0xa4] ss:$16 sps:$4 sm:$0xff]   ;;  %v5673_v42 = vld [vmem:[%s8260_s10 + $0xac] ss:$16 sps:$4 sm:$0xff]  }
 0x76d   : > { %v3041_v8 = vpop.xlane.xlu1 %3040  ;;  %3474 = vmatprep.subr.bf16.mxu1 %v5670_v32  ;;  %3587 = vmatprep.subr.bf16.mxu0 %v5673_v42 }
 0x76e   : > { %v7456_v19 = vsub.f32 %v7355_v4, %v3062_v54  ;;  %v3063_v53 = vmul.f32 0.0078125, %v3041_v8  ;;  %3114 = vadd.xlane.f32.xlu0 %v3092_v38  ;;  %v3093_v45 = vmul.f32 %v7451_v55, %v7451_v55  ;;  %v5668_v38 = vld [vmem:[%s8260_s10 + $0xa0] ss:$16 sps:$4 sm:$0xff]   ;;  %v5671_v8 = vld [vmem:[%s8260_s10 + $0xa8] ss:$16 sps:$4 sm:$0xff]  }
 0x76f   : > { %v3043_v58 = vpop.xlane.xlu0 %3042  ;;  %3475 = vmatpush1.bf16.msra.mxu1 %v5668_v38  ;;  %3588 = vmatpush1.bf16.msra.mxu0 %v5671_v8 }
 0x770   : > { %v7461_v29 = vsub.f32 %v7361_v10, %v3063_v53  ;;  %v3064_v11 = vmul.f32 0.0078125, %v3043_v58  ;;  %3116 = vadd.xlane.f32.xlu1 %v3093_v45  ;;  %v3094_v17 = vmul.f32 %v7456_v19, %v7456_v19  ;;  %3476 = vmatprep.subr.bf16.mxu1 %v5676_v5 }
 0x771   : > { %v3045_v57 = vpop.xlane.xlu1 %3044  ;;  %3589 = vmatprep.subr.bf16.mxu0 %v5679_v27  ;;  %v7574_v27 = vld [vmem:[%s8258_s8] ss:$0 sm:$0xff] }
 0x772   : > { %v7478_v34 = vsub.f32 %v7365_v28, %v3064_v11  ;;  %v3065_v44 = vmul.f32 0.0078125, %v3045_v57  ;;  %3118 = vadd.xlane.f32.xlu0 %v3094_v17  ;;  %v3095_v1 = vmul.f32 %v7461_v29, %v7461_v29  ;;  %v5674_v57 = vld [vmem:[%s8260_s10 + $0xc0] ss:$16 sps:$4 sm:$0xff]  }
 0x773   : > { %3477 = vmatpush1.bf16.msra.mxu1 %v5674_v57  ;;  %3590 = vmatpush1.bf16.msra.mxu0 %v5677_v12 }
 0x774   : > { %v7483_v18 = vsub.f32 %v7369_v16, %v3065_v44  ;;  %3120 = vadd.xlane.f32.xlu1 %v3095_v1  ;;  %v3096_v47 = vmul.f32 %v7478_v34, %v7478_v34  ;;  %v5682_v44 = vld [vmem:[%s8260_s10 + $0xe4] ss:$16 sps:$4 sm:$0xff]   ;;  %v5685_v1 = vld [vmem:[%s8260_s10 + $0xec] ss:$16 sps:$4 sm:$0xff]  }
 0x775   : > { %3478 = vmatprep.subr.bf16.mxu1 %v5682_v44  ;;  %3591 = vmatprep.subr.bf16.mxu0 %v5685_v1 }
 0x776   : > { %3122 = vadd.xlane.f32.xlu0 %v3096_v47  ;;  %v3097_v48 = vmul.f32 %v7483_v18, %v7483_v18  ;;  %v5680_v47 = vld [vmem:[%s8260_s10 + $0xe0] ss:$16 sps:$4 sm:$0xff]  }
 0x777   : > { %v3047_v49 = vpop.xlane.xlu0 %3046  ;;  %3479 = vmatpush1.bf16.msra.mxu1 %v5680_v47  ;;  %3592 = vmatpush1.bf16.msra.mxu0 %v5683_v56 }
 0x778   : > { %v3066_v43 = vmul.f32 0.0078125, %v3047_v49  ;;  %3124 = vadd.xlane.f32.xlu1 %v3097_v48  ;;  %4989 = vmatprep.subr.bf16.mxu1 %v5686_v13 }
 0x779   : > { %v3049_v14 = vpop.xlane.xlu1 %3048  ;;  %5053 = vmatprep.subr.bf16.mxu0 %v5688_v22  ;;  %v7582_v22 = vld [vmem:[%s8259_s9] ss:$0 sm:$0xff] }
 0x77a   : > { %v7514_v39 = vsub.f32 %v7376_v63, %v3066_v43  ;;  %v3067_v26 = vmul.f32 0.0078125, %v3049_v14 }
 0x77b   : > { %v3051_v2 = vpop.xlane.xlu0 %3050 }
 0x77c   : > { %v7517_v52 = vsub.f32 %v7381_v50, %v3067_v26  ;;  %v3068_v46 = vmul.f32 0.0078125, %v3051_v2  ;;  %v3098_v61 = vmul.f32 %v7514_v39, %v7514_v39 }
 0x77d   : > { %v3053_v54 = vpop.xlane.xlu1 %3052 }
 0x77e   : > { %v7534_v53 = vsub.f32 %v7385_v0, %v3068_v46  ;;  %v3069_v45 = vmul.f32 0.0078125, %v3053_v54  ;;  %3126 = vadd.xlane.f32.xlu0 %v3098_v61  ;;  %v3099_v58 = vmul.f32 %v7517_v52, %v7517_v52 }
 0x780   : > { %v7539_v11 = vsub.f32 %v7389_v21, %v3069_v45  ;;  %3128 = vadd.xlane.f32.xlu1 %v3099_v58  ;;  %v3100_v17 = vmul.f32 %v7534_v53, %v7534_v53 }
 0x782   : > { %3130 = vadd.xlane.f32.xlu0 %v3100_v17  ;;  %v3101_v3 = vmul.f32 %v7539_v11, %v7539_v11 }
 0x784   : > { %3132 = vadd.xlane.f32.xlu1 %v3101_v3 }
 0x7ef   : > { %v3103_v48 = vpop.xlane.xlu0 %3102 }
 0x7f0   : > { %v3134_v49 = vmul.f32 0.0078125, %v3103_v48 }
 0x7f1   : > { %v3105_v43 = vpop.xlane.xlu1 %3104 }
 0x7f2   : > { %v3150_v59 = vadd.f32 1e-05, %v3134_v49  ;;  %v3135_v30 = vmul.f32 0.0078125, %v3105_v43 }
 0x7f3   : > { %v3107_v14 = vpop.xlane.xlu0 %3106 }
 0x7f4   : > { %5942 = vrsqrt.f32 %v3150_v59  ;;  %v3151_v33 = vadd.f32 1e-05, %v3135_v30  ;;  %v3136_v35 = vmul.f32 0.0078125, %v3107_v14 }
 0x7f5   : > { %v3109_v26 = vpop.xlane.xlu1 %3108 }
 0x7f6   : > { %5944 = vrsqrt.f32 %v3151_v33  ;;  %v3152_v2 = vadd.f32 1e-05, %v3136_v35  ;;  %v3137_v46 = vmul.f32 0.0078125, %v3109_v26 }
 0x7f7   : > { %v3111_v61 = vpop.xlane.xlu0 %3110 }
 0x7f8   : > { %5946 = vrsqrt.f32 %v3152_v2  ;;  %v3153_v32 = vadd.f32 1e-05, %v3137_v46  ;;  %v3138_v42 = vmul.f32 0.0078125, %v3111_v61  ;;  %v5687_v46 = vld [vmem:[#allocation5] sm:$0xff]  }
 0x7f9   : > { %v3113_v54 = vpop.xlane.xlu1 %3112 }
 0x7fa   : > { %5948 = vrsqrt.f32 %v3153_v32  ;;  %v3139_v38 = vmul.f32 0.0078125, %v3113_v54  ;;  %v3154_v8 = vadd.f32 1e-05, %v3138_v42  ;;  %v5689_v42 = vld [vmem:[#allocation5 + $0x80] sm:$0xff]   ;;  %v5690_v54 = vld [vmem:[#allocation5 + $0x48] sm:$0xff]  }
 0x7fb   : > { %v3115_v58 = vpop.xlane.xlu0 %3114 }
 0x7fc   : > { %v3155_v45 = vadd.f32 1e-05, %v3139_v38  ;;  %v3140_v44 = vmul.f32 0.0078125, %v3115_v58 }
 0x7fd   : > { %v3117_v17 = vpop.xlane.xlu1 %3116 }
 0x7fe   : > { %v5943_v5 = vpop.eup %5942  ;;  %5950 = vrsqrt.f32 %v3155_v45  ;;  %v3141_v57 = vmul.f32 0.0078125, %v3117_v17  ;;  %v3156_v59 = vadd.f32 1e-05, %v3140_v44 }
 0x7ff   : > { %v3182_v12 = vmul.f32 %v5943_v5, %v7418_v31  ;;  %5952 = vrsqrt.f32 %v3154_v8  ;;  %v3119_v31 = vpop.xlane.xlu0 %3118  ;;  %v5692_v8 = vld [vmem:[#allocation5 + $0xc8] sm:$0xff]  }
 0x800   : > { %v5945_v3 = vpop.eup %5944  ;;  %v3157_v13 = vadd.f32 1e-05, %v3141_v57  ;;  %v3142_v32 = vmul.f32 0.0078125, %v3119_v31  ;;  %v5691_v5 = vld [vmem:[#allocation5 + $0x8] sm:$0xff]   ;;  %v5698_v31 = vld [vmem:[#allocation5 + $0x58] sm:$0xff]  }
 0x801   : > { %v3204_v1 = vmul.f32 %v7574_v27, %v3182_v12  ;;  %v3183_v47 = vmul.f32 %v5945_v3, %v7421_v23  ;;  %v3121_v49 = vpop.xlane.xlu1 %3120  ;;  %v5693_v12 = vld [vmem:[#allocation5 + $0x88] sm:$0xff]   ;;  %v5694_v3 = vld [vmem:[#allocation5 + $0x50] sm:$0xff]  }
 0x802   : > { %v5947_v56 = vpop.eup %5946  ;;  %5954 = vrsqrt.f32 %v3157_v13  ;;  %v3143_v35 = vmul.f32 0.0078125, %v3121_v49  ;;  %v3158_v57 = vadd.f32 1e-05, %v3142_v32  ;;  %v5702_v32 = vld [vmem:[#allocation5 + $0x60] sm:$0xff]  }
 0x803   : > { %v3205_v48 = vmul.f32 %v7574_v27, %v3183_v47  ;;  %v3226_v30 = vadd.f32 %v7582_v22, %v3204_v1  ;;  %v3184_v33 = vmul.f32 %v5947_v56, %v7426_v62  ;;  %5956 = vrsqrt.f32 %v3156_v59  ;;  %v3123_v44 = vpop.xlane.xlu0 %3122  ;;  %v5696_v59 = vld [vmem:[#allocation5 + $0xd0] sm:$0xff]  }
 0x804   : > { %v5949_v43 = vpop.eup %5948  ;;  %v3159_v62 = vadd.f32 1e-05, %v3143_v35 }
 0x805   : > { %v3227_v14 = vadd.f32 %v7582_v22, %v3205_v48  ;;  %v3185_v23 = vmul.f32 %v5949_v43, %v7431_v41  ;;  %v3206_v38 = vmul.f32 %v7574_v27, %v3184_v33  ;;  %v3125_v41 = vpop.xlane.xlu1 %3124  ;;  %v3144_v43 = vmul.f32 0.0078125, %v3123_v44 }
 0x806   : > { %5958 = vrsqrt.f32 %v3159_v62  ;;  %v3145_v56 = vmul.f32 0.0078125, %v3125_v41  ;;  %v5703_v41 = vld [vmem:[#allocation5 + $0x20] sm:$0xff]  }
 0x807   : > { %v3242_v26 = vpack.c.bf16 %v3227_v14, %v3226_v30  ;;  %v3207_v2 = vmul.f32 %v7574_v27, %v3185_v23  ;;  %v3228_v1 = vadd.f32 %v7582_v22, %v3206_v38  ;;  %5960 = vrsqrt.f32 %v3158_v57  ;;  %v5700_v23 = vld [vmem:[#allocation5 + $0xd8] sm:$0xff]  }
 0x808   : > { %v5951_v61 = vpop.eup %5950  ;;  %v3161_v33 = vadd.f32 1e-05, %v3145_v56 }
 0x809   : > { %3497 = vmatmul.mubr.bf16.vlgmr.msra.gmra.mrb[96].mxu1 %v3242_v26  ;;  %3610 = vmatmul.mubr.bf16.vlgmr.msra.gmra.mrb[80].mxu0 %v3242_v26  ;;  %v5953_v45 = vpop.eup %5952  ;;  %v3229_v58 = vadd.f32 %v7582_v22, %v3207_v2  ;;  %v3187_v17 = vmul.f32 %v5951_v61, %v7441_v36  ;;  %v5695_v36 = vld [vmem:[#allocation5 + $0x10] sm:$0xff]   ;;  %v3160_v61 = vadd.f32 1e-05, %v3144_v43 }
 0x80a   : > { %3506 = vmatprep.mubr.bf16.mxu1 %v6250_v25  ;;  %3619 = vmatprep.mubr.bf16.mxu0 %v6250_v25  ;;  %v3186_v47 = vmul.f32 %v5953_v45, %v7436_v51  ;;  %v5697_v51 = vld [vmem:[#allocation5 + $0x90] sm:$0xff]   ;;  %5962 = vrsqrt.f32 %v3161_v33 }
 0x80b   : > { %4990 = vmatpush3.bf16.msra.mxu1 %v5687_v46  ;;  %5054 = vmatpush3.bf16.msra.mxu0 %v5689_v42  ;;  %v3243_v13 = vpack.c.bf16 %v3229_v58, %v3228_v1  ;;  %v3209_v48 = vmul.f32 %v7574_v27, %v3187_v17  ;;  %v5699_v46 = vld [vmem:[#allocation5 + $0x18] sm:$0xff]   ;;  %v3127_v42 = vpop.xlane.xlu0 %3126  ;;  %5964 = vrsqrt.f32 %v3160_v61 }
 0x80c   : > { %4991 = vmatprep.subr.bf16.mxu1 %v5690_v54  ;;  %5055 = vmatprep.subr.bf16.mxu0 %v5692_v8  ;;  %v5955_v49 = vpop.eup %5954  ;;  %v3208_v30 = vmul.f32 %v7574_v27, %v3186_v47  ;;  %v3146_v17 = vmul.f32 0.0078125, %v3127_v42  ;;  %v5705_v47 = vld [vmem:[#allocation5 + $0xa0] sm:$0xff]  }
 0x80d   : > { %v5957_v14 = vpop.eup %5956  ;;  %v3129_v35 = vpop.xlane.xlu1 %3128  ;;  %v3231_v26 = vadd.f32 %v7582_v22, %v3209_v48  ;;  %v3189_v2 = vmul.f32 %v5955_v49, %v7451_v55  ;;  %v5701_v55 = vld [vmem:[#allocation5 + $0x98] sm:$0xff]  }
 0x80e   : > { %v3230_v54 = vadd.f32 %v7582_v22, %v3208_v30  ;;  %v3188_v38 = vmul.f32 %v5957_v14, %v7446_v9  ;;  %v3147_v8 = vmul.f32 0.0078125, %v3129_v35  ;;  %v3162_v56 = vadd.f32 1e-05, %v3146_v17 }
 0x80f   : > { %4992 = vmatpush3.bf16.msra.mxu1 %v5691_v5  ;;  %5056 = vmatpush3.bf16.msra.mxu0 %v5693_v12  ;;  %v3211_v62 = vmul.f32 %v7574_v27, %v3189_v2  ;;  %v5704_v5 = vld [vmem:[#allocation5 + $0xe0] sm:$0xff]  }
 0x810   : > { %4993 = vmatprep.subr.bf16.mxu1 %v5694_v3  ;;  %5057 = vmatprep.subr.bf16.mxu0 %v5696_v59  ;;  %v3244_v45 = vpack.c.bf16 %v3231_v26, %v3230_v54  ;;  %v5959_v58 = vpop.eup %5958  ;;  %v3210_v57 = vmul.f32 %v7574_v27, %v3188_v38  ;;  %v3163_v12 = vadd.f32 1e-05, %v3147_v8 }
 0x811   : > { %3507 = vmatmul.mubr.bf16.gmra.mrb[100].mxu1 %v3243_v13  ;;  %3620 = vmatmul.mubr.bf16.gmra.mrb[84].mxu0 %v3243_v13  ;;  %v5961_v9 = vpop.eup %5960  ;;  %v3133_v3 = vpop.xlane.xlu1 %3132  ;;  %v3233_v44 = vadd.f32 %v7582_v22, %v3211_v62  ;;  %v3191_v1 = vmul.f32 %v5959_v58, %v7461_v29 }
 0x812   : > { %3516 = vmatprep.mubr.bf16.mxu1 %v6250_v25  ;;  %3629 = vmatprep.mubr.bf16.mxu0 %v6250_v25  ;;  %v3131_v13 = vpop.xlane.xlu0 %3130  ;;  %v3232_v48 = vadd.f32 %v7582_v22, %v3210_v57  ;;  %5966 = vrsqrt.f32 %v3163_v12  ;;  %v3149_v49 = vmul.f32 0.0078125, %v3133_v3 }
 0x813   : > { %4994 = vmatpush3.bf16.msra.mxu1 %v5695_v36  ;;  %5058 = vmatpush3.bf16.msra.mxu0 %v5697_v51  ;;  %v3190_v36 = vmul.f32 %v5961_v9, %v7456_v19  ;;  %v3213_v59 = vmul.f32 %v7574_v27, %v3191_v1  ;;  %5968 = vrsqrt.f32 %v3162_v56  ;;  %v3148_v30 = vmul.f32 0.0078125, %v3131_v13  ;;  %v5708_v1 = vld [vmem:[#allocation5 + $0xe8] sm:$0xff]   ;;  %v5711_v56 = vld [vmem:[#allocation5 + $0x30] sm:$0xff]  }
 0x814   : > { %4995 = vmatprep.subr.bf16.mxu1 %v5698_v31  ;;  %5059 = vmatprep.subr.bf16.mxu0 %v5700_v23  ;;  %v3245_v43 = vpack.c.bf16 %v3233_v44, %v3232_v48  ;;  %v5963_v31 = vpop.eup %5962  ;;  %v3165_v14 = vadd.f32 1e-05, %v3149_v49  ;;  %v5706_v44 = vld [vmem:[#allocation5 + $0x68] sm:$0xff]   ;;  %v5712_v13 = vld [vmem:[#allocation5 + $0xf0] sm:$0xff]   ;;  %v5715_v48 = vld [vmem:[#allocation5 + $0x38] sm:$0xff]  }
 0x815   : > { %v3212_v29 = vmul.f32 %v7574_v27, %v3190_v36  ;;  %v5965_v51 = vpop.eup %5964  ;;  %v3235_v19 = vadd.f32 %v7582_v22, %v3213_v59  ;;  %v3193_v33 = vmul.f32 %v5963_v31, %v7483_v18  ;;  %v3164_v23 = vadd.f32 1e-05, %v3148_v30  ;;  %v5716_v36 = vld [vmem:[#allocation5 + $0xf8] sm:$0xff]  }
 0x816   : > { %v3192_v26 = vmul.f32 %v5965_v51, %v7478_v34  ;;  %5970 = vrsqrt.f32 %v3165_v14  ;;  %v5717_v49 = vld [vmem:[#allocation5 + $0xb8] sm:$0xff]  }
 0x817   : > { %4996 = vmatpush3.bf16.msra.mxu1 %v5699_v46  ;;  %5060 = vmatpush3.bf16.msra.mxu0 %v5701_v55  ;;  %v3234_v35 = vadd.f32 %v7582_v22, %v3212_v29  ;;  %v3215_v46 = vmul.f32 %v7574_v27, %v3193_v33  ;;  %5972 = vrsqrt.f32 %v3164_v23  ;;  %v3282_v29 = vld [vmem:[%s8261_s11] sm:$0xf] }
 0x818   : > { %4997 = vmatprep.subr.bf16.mxu1 %v5702_v32  ;;  %5061 = vmatprep.subr.bf16.mxu0 %v5704_v5  ;;  %v3214_v32 = vmul.f32 %v7574_v27, %v3192_v26 }
 0x819   : > { %3517 = vmatmul.mubr.bf16.gmra.mrb[104].mxu1 %v3244_v45  ;;  %3630 = vmatmul.mubr.bf16.gmra.mrb[88].mxu0 %v3244_v45  ;;  %v3246_v2 = vpack.c.bf16 %v3235_v19, %v3234_v35  ;;  %v3237_v18 = vadd.f32 %v7582_v22, %v3215_v46 }
 0x81a   : > { %3526 = vmatprep.mubr.bf16.mxu1 %v6250_v25  ;;  %3639 = vmatprep.mubr.bf16.mxu0 %v6250_v25  ;;  %v3236_v34 = vadd.f32 %v7582_v22, %v3214_v32 }
 0x81b   : > { %4998 = vmatpush3.bf16.msra.mxu1 %v5703_v41  ;;  %5062 = vmatpush3.bf16.msra.mxu0 %v5705_v47  ;;  %v5709_v47 = vld [vmem:[#allocation5 + $0xa8] sm:$0xff]  }
 0x81c   : > { %v5967_v61 = vpop.eup %5966  ;;  %v3247_v8 = vpack.c.bf16 %v3237_v18, %v3236_v34  ;;  %4999 = vmatprep.subr.bf16.mxu1 %v5706_v44  ;;  %5063 = vmatprep.subr.bf16.mxu0 %v5708_v1 }
 0x81d   : > { %v5969_v42 = vpop.eup %5968  ;;  %v3195_v54 = vmul.f32 %v5967_v61, %v7517_v52 }
 0x81e   : > { %v3194_v38 = vmul.f32 %v5969_v42, %v7514_v39 }
 0x81f   : > { %v3217_v45 = vmul.f32 %v7574_v27, %v3195_v54  ;;  %5064 = vmatpush3.bf16.msra.mxu0 %v5709_v47 }
 0x820   : > { %v5971_v62 = vpop.eup %5970  ;;  %v3216_v55 = vmul.f32 %v7574_v27, %v3194_v38  ;;  %5065 = vmatprep.subr.bf16.mxu0 %v5712_v13 }
 0x821   : > { %3527 = vmatmul.mubr.bf16.gmra.mrb[108].mxu1 %v3245_v43  ;;  %3640 = vmatmul.mubr.bf16.gmra.mrb[92].mxu0 %v3245_v43  ;;  %v5973_v41 = vpop.eup %5972  ;;  %v3239_v58 = vadd.f32 %v7582_v22, %v3217_v45  ;;  %v3197_v52 = vmul.f32 %v5971_v62, %v7539_v11  ;;  %v3284_v43 = vlaneseq }
 0x822   : > { %3536 = vmatprep.mubr.bf16.mxu1 %v6250_v25  ;;  %3649 = vmatprep.mubr.bf16.mxu0 %v6250_v25  ;;  %v3238_v17 = vadd.f32 %v7582_v22, %v3216_v55  ;;  %v3196_v39 = vmul.f32 %v5973_v41, %v7534_v53  ;;  %v5707_v53 = vld [vmem:[#allocation5 + $0x28] sm:$0xff]  }
 0x823   : > { %v3219_v57 = vmul.f32 %v7574_v27, %v3197_v52  ;;  %5000 = vmatpush3.bf16.msra.mxu1 %v5707_v53  ;;  %v3285_v59 = vshrl.u32 %v3284_v43, 7 }
 0x824   : > { %v3248_v5 = vpack.c.bf16 %v3239_v58, %v3238_v17  ;;  %v3218_v9 = vmul.f32 %v7574_v27, %v3196_v39  ;;  %v5710_v27 = vld [vmem:[#allocation5 + $0x70] sm:$0xff]  }
 0x825   : > { %v3241_v12 = vadd.f32 %v7582_v22, %v3219_v57  ;;  %5001 = vmatprep.subr.bf16.mxu1 %v5710_v27  ;;  %v3286_v31 = vsub.s32 0, %v3285_v59  ;;  %v3294_v30 = vsub.s32 2, %v3285_v59  ;;  %v3290_v51 = vsub.s32 1, %v3285_v59 }
 0x826   : > { %v3240_v3 = vadd.f32 %v7582_v22, %v3218_v9  ;;  %v5714_v22 = vld [vmem:[#allocation5 + $0x78] sm:$0xff]   ;;  %v3298_v14 = vsub.s32 3, %v3285_v59 }
 0x827   : > { %5002 = vmatpush3.bf16.msra.mxu1 %v5711_v56  ;;  %v7646_v19 = vrot.slane %v3282_v29, %v3286_v31  ;;  %v7648_v33 = vrot.slane %v3282_v29, %v3294_v30  ;;  %v7650_v23 = vrot.slane %v3282_v29, %v3290_v51 }
 0x828   : > { %v3249_v11 = vpack.c.bf16 %v3241_v12, %v3240_v3  ;;  %5003 = vmatprep.subr.bf16.mxu1 %v5714_v22  ;;  %v7652_v35 = vrot.slane %v3282_v29, %v3298_v14 }
 0x829   : > { %3537 = vmatmul.mubr.bf16.gmra.mrb[112].mxu1 %v3246_v2  ;;  %3650 = vmatmul.mubr.bf16.gmra.mrb[96].mxu0 %v3246_v2 }
 0x82a   : > { %3546 = vmatprep.mubr.bf16.mxu1 %v6250_v25  ;;  %3659 = vmatprep.mubr.bf16.mxu0 %v6250_v25 }
 0x82b   : > { %5004 = vmatpush3.bf16.msra.mxu1 %v5715_v48 }
 0x831   : > { %3547 = vmatmul.mubr.bf16.gmra.mrb[116].mxu1 %v3247_v8  ;;  %3660 = vmatmul.mubr.bf16.gmra.mrb[100].mxu0 %v3247_v8 }
 0x832   : > { %3556 = vmatprep.mubr.bf16.mxu1 %v6250_v25  ;;  %3669 = vmatprep.mubr.bf16.mxu0 %v6250_v25 }
 0x839   : > { %3557 = vmatmul.mubr.bf16.gmra.mrb[120].mxu1 %v3248_v5  ;;  %3670 = vmatmul.mubr.bf16.gmra.mrb[104].mxu0 %v3248_v5 }
 0x83a   : > { %3566 = vmatprep.mubr.bf16.mxu1 %v6250_v25  ;;  %3679 = vmatprep.mubr.bf16.mxu0 %v6250_v25  ;;  %v5713_v25 = vld [vmem:[#allocation5 + $0xb0] sm:$0xff]  }
 0x83b   : > { %5066 = vmatpush3.bf16.msra.mxu0 %v5713_v25 }
 0x83c   : > { %5067 = vmatprep.subr.bf16.mxu0 %v5716_v36 }
 0x83f   : > { %5068 = vmatpush3.bf16.msra.mxu0 %v5717_v49 }
 0x841   : > { %3567 = vmatmul.mubr.bf16.gmra.mrb[124].mxu1 %v3249_v11  ;;  %3680 = vmatmul.mubr.bf16.gmra.mrb[108].mxu0 %v3249_v11 }
 0x8dc   : > { %v3498_v26 = vpop.f32.mrb[96].mxu1  ;;  %v3611_v2 = vpop.f32.mrb[80].mxu0 }
 0x8dd   : > { %v3499_v46 = vadd.f32 %v3498_v26, %v7646_v19  ;;  %v3612_v61 = vadd.f32 %v3611_v2, %v7648_v33  ;;  %v3500_v32 = vpop.f32.mrb[97].mxu1  ;;  %v3613_v42 = vpop.f32.mrb[81].mxu0 }
 0x8de   : > { %v3501_v18 = vadd.f32 %v3500_v32, %v7650_v23  ;;  %v3614_v54 = vadd.f32 %v3613_v42, %v7652_v35  ;;  %v3502_v34 = vpop.f32.mrb[98].mxu1  ;;  %v3615_v38 = vpop.f32.mrb[82].mxu0 }
 0x8df   : > { %v3754_v8 = vmul.f32 0.70710677, %v3499_v46  ;;  %v3756_v45 = vmul.f32 0.70710677, %v3612_v61  ;;  %v3503_v41 = vadd.f32 %v3502_v34, %v7646_v19  ;;  %v3616_v58 = vadd.f32 %v3615_v38, %v7648_v33  ;;  %v3504_v52 = vpop.f32.mrb[99].mxu1  ;;  %v3617_v17 = vpop.f32.mrb[83].mxu0 }
 0x8e0   : > { %v3755_v62 = vmul.f32 0.70710677, %v3501_v18  ;;  %v3757_v55 = vmul.f32 0.70710677, %v3614_v54  ;;  %v3505_v39 = vadd.f32 %v3504_v52, %v7650_v23  ;;  %v3618_v5 = vadd.f32 %v3617_v17, %v7652_v35 }
 0x8e1   : > { %5974 = verf.f32 %v3754_v8  ;;  %v3758_v57 = vmul.f32 0.70710677, %v3503_v41  ;;  %v3760_v9 = vmul.f32 0.70710677, %v3616_v58  ;;  %v3690_v59 = vmul.f32 0.5, %v3499_v46 }
 0x8e2   : > { %5976 = verf.f32 %v3756_v45  ;;  %v3759_v12 = vmul.f32 0.70710677, %v3505_v39  ;;  %v3761_v11 = vmul.f32 0.70710677, %v3618_v5  ;;  %v3692_v2 = vmul.f32 0.5, %v3612_v61 }
 0x8e3   : > { %5978 = verf.f32 %v3755_v62  ;;  %v3691_v32 = vmul.f32 0.5, %v3501_v18  ;;  %v7669_v42 = vmul.f32 0.5, %v3614_v54  ;;  %v3694_v34 = vmul.f32 0.5, %v3503_v41 }
 0x8e4   : > { %5980 = verf.f32 %v3757_v55  ;;  %v3508_v3 = vpop.f32.mrb[100].mxu1  ;;  %v3621_v53 = vpop.f32.mrb[84].mxu0  ;;  %v3696_v45 = vmul.f32 0.5, %v3616_v58  ;;  %v7671_v17 = vmul.f32 0.5, %v3505_v39 }
 0x8e5   : > { %5982 = verf.f32 %v3758_v57  ;;  %v3509_v44 = vadd.f32 %v3508_v3, %v7646_v19  ;;  %v3510_v1 = vpop.f32.mrb[101].mxu1  ;;  %v3622_v47 = vadd.f32 %v3621_v53, %v7648_v33  ;;  %v3623_v56 = vpop.f32.mrb[85].mxu0  ;;  %v7673_v57 = vmul.f32 0.5, %v3618_v5 }
 0x8e6   : > { %5984 = verf.f32 %v3760_v9  ;;  %v3511_v27 = vadd.f32 %v3510_v1, %v7650_v23  ;;  %v3512_v13 = vpop.f32.mrb[102].mxu1  ;;  %v3624_v22 = vadd.f32 %v3623_v56, %v7652_v35  ;;  %v3625_v48 = vpop.f32.mrb[86].mxu0 }
 0x8e7   : > { %5986 = verf.f32 %v3759_v12  ;;  %v3762_v25 = vmul.f32 0.70710677, %v3509_v44  ;;  %v3514_v36 = vpop.f32.mrb[103].mxu1  ;;  %v3764_v49 = vmul.f32 0.70710677, %v3622_v47  ;;  %v3627_v43 = vpop.f32.mrb[87].mxu0  ;;  %v3513_v29 = vadd.f32 %v3512_v13, %v7646_v19 }
 0x8e8   : > { %5988 = verf.f32 %v3761_v11  ;;  %v3763_v31 = vmul.f32 0.70710677, %v3511_v27  ;;  %v3765_v30 = vmul.f32 0.70710677, %v3624_v22  ;;  %v3626_v51 = vadd.f32 %v3625_v48, %v7648_v33 }
 0x8e9   : > { %5990 = verf.f32 %v3762_v25  ;;  %v3515_v14 = vadd.f32 %v3514_v36, %v7650_v23  ;;  %v3766_v46 = vmul.f32 0.70710677, %v3513_v29  ;;  %v3628_v12 = vadd.f32 %v3627_v43, %v7652_v35 }
 0x8ea   : > { %5992 = verf.f32 %v3764_v49  ;;  %v3768_v9 = vmul.f32 0.70710677, %v3626_v51  ;;  %v7676_v3 = vmul.f32 0.5, %v3509_v44  ;;  %v7678_v1 = vmul.f32 0.5, %v3622_v47 }
 0x8eb   : > { %v5975_v26 = vpop.eup %5974  ;;  %5994 = verf.f32 %v3763_v31  ;;  %v3767_v41 = vmul.f32 0.70710677, %v3515_v14  ;;  %v7680_v56 = vmul.f32 0.5, %v3511_v27  ;;  %v7682_v39 = vmul.f32 0.5, %v3624_v22 }
 0x8ec   : > { %v5977_v38 = vpop.eup %5976  ;;  %v3882_v8 = vadd.f32 1.0, %v5975_v26  ;;  %v3518_v62 = vpop.f32.mrb[104].mxu1  ;;  %5996 = verf.f32 %v3765_v30  ;;  %v7688_v49 = vmul.f32 0.5, %v3513_v29  ;;  %v3769_v27 = vmul.f32 0.70710677, %v3628_v12 }
 0x8ed   : > { %v3631_v55 = vpop.f32.mrb[88].mxu0  ;;  %v5979_v52 = vpop.eup %5978  ;;  %v3884_v54 = vadd.f32 1.0, %v5977_v38  ;;  %5998 = verf.f32 %v3766_v46  ;;  %v3519_v22 = vadd.f32 %v3518_v62, %v7646_v19  ;;  %v7703_v62 = vmul.f32 0.5, %v3626_v51 }
 0x8ee   : > { %v3520_v61 = vpop.f32.mrb[105].mxu1  ;;  %v5981_v18 = vpop.eup %5980  ;;  %v7686_v48 = vmul.f32 %v3882_v8, %v3690_v59  ;;  %v3883_v44 = vadd.f32 1.0, %v5979_v52  ;;  %6000 = verf.f32 %v3768_v9  ;;  %v3632_v59 = vadd.f32 %v3631_v55, %v7648_v33 }
 0x8ef   : > { %v3633_v58 = vpop.f32.mrb[89].mxu0  ;;  %v3522_v11 = vpop.f32.mrb[106].mxu1  ;;  %v7693_v26 = vmul.f32 %v3884_v54, %v3692_v2  ;;  %6002 = verf.f32 %v3767_v41  ;;  %v3885_v46 = vadd.f32 1.0, %v5981_v18  ;;  %v3770_v52 = vmul.f32 0.70710677, %v3519_v22 }
 0x8f0   : > { %v5983_v53 = vpop.eup %5982  ;;  %v3635_v5 = vpop.f32.mrb[90].mxu0  ;;  %v7705_v2 = vmul.f32 0.5, %v3515_v14  ;;  %v7711_v55 = vmul.f32 %v3883_v44, %v3691_v32  ;;  %6004 = verf.f32 %v3769_v27 }
 0x8f1   : > { %v7684_v13 = vpop.f32.mrb[107].mxu1  ;;  %v5985_v25 = vpop.eup %5984  ;;  %v3886_v36 = vadd.f32 1.0, %v5983_v53  ;;  %v3521_v53 = vadd.f32 %v3520_v61, %v7650_v23  ;;  %6006 = verf.f32 %v3770_v52  ;;  %v7724_v32 = vmul.f32 %v3885_v46, %v7669_v42 }
 0x8f2   : > { %v7690_v43 = vpop.f32.mrb[91].mxu0  ;;  %v5987_v31 = vpop.eup %5986  ;;  %v3888_v47 = vadd.f32 1.0, %v5985_v25  ;;  %v3636_v52 = vadd.f32 %v3635_v5, %v7648_v33 }
 0x8f3   : > { %v5989_v30 = vpop.eup %5988  ;;  %v7695_v38 = vmul.f32 %v3886_v36, %v3694_v34  ;;  %v7707_v34 = vmul.f32 0.5, %v3628_v12  ;;  %v3887_v18 = vadd.f32 1.0, %v5987_v31  ;;  %v3772_v12 = vmul.f32 0.70710677, %v3632_v59 }
 0x8f4   : > { %v5991_v8 = vpop.eup %5990  ;;  %v7698_v29 = vmul.f32 %v3888_v47, %v3696_v45  ;;  %v3528_v54 = vpop.f32.mrb[108].mxu1  ;;  %v3889_v47 = vadd.f32 1.0, %v5989_v30  ;;  %v3771_v45 = vmul.f32 0.70710677, %v3521_v53  ;;  %v3634_v31 = vadd.f32 %v3633_v58, %v7652_v35 }
 0x8f5   : > { %v5993_v25 = vpop.eup %5992  ;;  %v7709_v41 = vpop.f32.mrb[92].mxu0  ;;  %v3890_v14 = vadd.f32 1.0, %v5991_v8  ;;  %v7731_v30 = vmul.f32 0.5, %v3519_v22  ;;  %6008 = verf.f32 %v3772_v12  ;;  %v3523_v8 = vadd.f32 %v3522_v11, %v7646_v19 }
 0x8f6   : > { %v7715_v61 = vpop.f32.mrb[109].mxu1  ;;  %v7717_v36 = vpop.f32.mrb[93].mxu0  ;;  %v3892_v44 = vadd.f32 1.0, %v5993_v25  ;;  %v3951_v42 = vmul.f32 %v3887_v18, %v7671_v17  ;;  %v7736_v25 = vmul.f32 0.5, %v3632_v59  ;;  %6010 = verf.f32 %v3771_v45 }
 0x8f7   : > { %v5995_v51 = vpop.eup %5994  ;;  %v7719_v9 = vpop.f32.mrb[110].mxu1  ;;  %v3953_v58 = vmul.f32 %v3889_v47, %v7673_v57  ;;  %v7740_v16 = vmul.f32 %v3890_v14, %v7676_v3  ;;  %v3773_v28 = vmul.f32 0.70710677, %v3634_v31  ;;  %v3774_v22 = vmul.f32 0.70710677, %v3523_v8 }
 0x8f8   : > { %v7721_v21 = vpop.f32.mrb[94].mxu0  ;;  %v7727_v27 = vpop.f32.mrb[111].mxu1  ;;  %v3891_v46 = vadd.f32 1.0, %v5995_v51  ;;  %v7743_v12 = vmul.f32 %v3892_v44, %v7678_v1  ;;  %v7745_v5 = vmul.f32 0.5, %v3521_v53  ;;  %v3776_v4 = vmul.f32 0.70710677, %v3636_v52 }
 0x8f9   : > { %v7729_v0 = vpop.f32.mrb[95].mxu0  ;;  %v5997_v50 = vpop.eup %5996  ;;  %6012 = verf.f32 %v3773_v28  ;;  %v3525_v59 = vadd.f32 %v7684_v13, %v7650_v23  ;;  %v3638_v57 = vadd.f32 %v7690_v43, %v7652_v35  ;;  %v3529_v53 = vadd.f32 %v3528_v54, %v7646_v19 }
 0x8fa   : > { %v5999_v63 = vpop.eup %5998  ;;  %v3893_v11 = vadd.f32 1.0, %v5997_v50  ;;  %v7756_v1 = vmul.f32 %v3891_v46, %v7680_v56  ;;  %v7758_v50 = vmul.f32 0.5, %v3634_v31  ;;  %6014 = verf.f32 %v3774_v22 }
 0x8fb   : > { %v6001_v10 = vpop.eup %6000  ;;  %v3894_v18 = vadd.f32 1.0, %v5999_v63  ;;  %v7765_v51 = vmul.f32 0.5, %v3523_v8  ;;  %6016 = verf.f32 %v3776_v4  ;;  %v3775_v43 = vmul.f32 0.70710677, %v3525_v59 }
 0x8fc   : > { %v6003_v17 = vpop.eup %6002  ;;  %v7751_v3 = vpop.f32.mrb[112].mxu1  ;;  %v3896_v13 = vadd.f32 1.0, %v6001_v10  ;;  %v7772_v44 = vmul.f32 %v3893_v11, %v7682_v39  ;;  %v3777_v46 = vmul.f32 0.70710677, %v3638_v57  ;;  %v3778_v54 = vmul.f32 0.70710677, %v3529_v53 }
 0x8fd   : > { %v7753_v45 = vpop.f32.mrb[96].mxu0  ;;  %v7761_v63 = vpop.f32.mrb[113].mxu1  ;;  %v3895_v31 = vadd.f32 1.0, %v6003_v17  ;;  %v7777_v10 = vmul.f32 %v3894_v18, %v7688_v49  ;;  %6018 = verf.f32 %v3775_v43  ;;  %v3642_v4 = vadd.f32 %v7709_v41, %v7648_v33 }
 0x8fe   : > { %v7763_v28 = vpop.f32.mrb[97].mxu0  ;;  %v7767_v47 = vpop.f32.mrb[114].mxu1  ;;  %v3531_v8 = vadd.f32 %v7715_v61, %v7650_v23  ;;  %6020 = verf.f32 %v3777_v46  ;;  %v3644_v39 = vadd.f32 %v7717_v36, %v7652_v35  ;;  %v4011_v11 = vpack.c.bf16 %v3951_v42, %v7711_v55 }
 0x8ff   : > { %v7769_v14 = vpop.f32.mrb[98].mxu0  ;;  %v6005_v56 = vpop.eup %6004  ;;  %v4013_v17 = vpack.c.bf16 %v3953_v58, %v7724_v32  ;;  %v7790_v49 = vmul.f32 %v3896_v13, %v7703_v62  ;;  %v7792_v43 = vmul.f32 0.5, %v3636_v52  ;;  %v3780_v41 = vmul.f32 0.70710677, %v3642_v4 }
 0x900   : > { %v7774_v22 = vpop.f32.mrb[115].mxu1  ;;  %v6007_v7 = vpop.eup %6006  ;;  %v3897_v18 = vadd.f32 1.0, %v6005_v56  ;;  %v7795_v61 = vmul.f32 %v3895_v31, %v7705_v2  ;;  %6022 = verf.f32 %v3778_v54  ;;  %v3779_v37 = vmul.f32 0.70710677, %v3531_v8  ;;  %4337 = vmatprep.mubr.bf16.mxu1 %v4011_v11 }
 0x901   : > { %v7783_v60 = vpop.f32.mrb[99].mxu0  ;;  %v6009_v20 = vpop.eup %6008  ;;  %v3898_v46 = vadd.f32 1.0, %v6007_v7  ;;  %4434 = vmatprep.mubr.bf16.mxu0 %v4013_v17  ;;  %v7797_v55 = vmul.f32 0.5, %v3525_v59  ;;  %v7799_v36 = vmul.f32 0.5, %v3638_v57  ;;  %v3781_v32 = vmul.f32 0.70710677, %v3644_v39 }
 0x902   : > { %v6011_v15 = vpop.eup %6010  ;;  %v3533_v62 = vadd.f32 %v7719_v9, %v7646_v19  ;;  %v8326_v52 = vpack.c.bf16 %v7695_v38, %v7686_v48  ;;  %v8327_v2 = vpack.c.bf16 %v7698_v29, %v7693_v26  ;;  %v3900_v58 = vadd.f32 1.0, %v6009_v20 }
 0x903   : > { %6024 = verf.f32 %v3780_v41  ;;  %v3646_v59 = vadd.f32 %v7721_v21, %v7648_v33  ;;  %v3535_v9 = vadd.f32 %v7727_v27, %v7650_v23  ;;  %v6013_v38 = vpop.eup %6012  ;;  %v7822_v26 = vmul.f32 %v3897_v18, %v7707_v34 }
 0x904   : > { %4338 = vmatmul.mubr.bf16.vlgmr.msra.gmra.mrb[128].mxu1 %v8326_v52  ;;  %4435 = vmatmul.mubr.bf16.vlgmr.msra.gmra.mrb[112].mxu0 %v8327_v2  ;;  %v7809_v7 = vpop.f32.mrb[116].mxu1  ;;  %v7811_v42 = vpop.f32.mrb[100].mxu0  ;;  %v3899_v29 = vadd.f32 1.0, %v6011_v15  ;;  %6026 = verf.f32 %v3779_v37  ;;  %v3782_v13 = vmul.f32 0.70710677, %v3533_v62  ;;  %v7829_v21 = vmul.f32 %v3898_v46, %v7731_v30 }
 0x905   : > { %v7817_v57 = vpop.f32.mrb[117].mxu1  ;;  %v7819_v48 = vpop.f32.mrb[101].mxu0  ;;  %v7831_v27 = vmul.f32 0.5, %v3529_v53  ;;  %6028 = verf.f32 %v3781_v32  ;;  %v3784_v54 = vmul.f32 0.70710677, %v3646_v59  ;;  %v7835_v34 = vmul.f32 0.5, %v3642_v4 }
 0x906   : > { %v7824_v56 = vpop.f32.mrb[118].mxu1  ;;  %v7826_v20 = vpop.f32.mrb[102].mxu0  ;;  %v7837_v15 = vmul.f32 0.5, %v3531_v8  ;;  %v3783_v37 = vmul.f32 0.70710677, %v3535_v9  ;;  %v3648_v18 = vadd.f32 %v7729_v0, %v7652_v35  ;;  %v7844_v30 = vmul.f32 %v3900_v58, %v7736_v25 }
 0x907   : > { %v6015_v31 = vpop.eup %6014  ;;  %v7833_v11 = vpop.f32.mrb[119].mxu1  ;;  %v7846_v53 = vmul.f32 0.5, %v3644_v39  ;;  %6030 = verf.f32 %v3782_v13  ;;  %v3539_v46 = vadd.f32 %v7751_v3, %v7646_v19  ;;  %v7851_v4 = vmul.f32 %v3899_v29, %v7745_v5 }
 0x908   : > { %v6017_v17 = vpop.eup %6016  ;;  %v7841_v41 = vpop.f32.mrb[103].mxu0  ;;  %v3901_v8 = vadd.f32 1.0, %v6013_v38  ;;  %6032 = verf.f32 %v3784_v54  ;;  %v3785_v52 = vmul.f32 0.70710677, %v3648_v18  ;;  %v3902_v0 = vadd.f32 1.0, %v6015_v31 }
 0x909   : > { %v6019_v32 = vpop.eup %6018  ;;  %v3904_v40 = vadd.f32 1.0, %v6017_v17  ;;  %6034 = verf.f32 %v3783_v37  ;;  %v3786_v24 = vmul.f32 0.70710677, %v3539_v46  ;;  %v3652_v39 = vadd.f32 %v7753_v45, %v7648_v33 }
 0x90a   : > { %v6021_v2 = vpop.eup %6020  ;;  %v3903_v25 = vadd.f32 1.0, %v6019_v32  ;;  %6036 = verf.f32 %v3785_v52  ;;  %v3541_v3 = vadd.f32 %v7761_v63, %v7650_v23  ;;  %v7861_v13 = vmul.f32 0.5, %v3533_v62 }
 0x90b   : > { %v6023_v38 = vpop.eup %6022  ;;  %v3905_v29 = vadd.f32 1.0, %v6021_v2  ;;  %6038 = verf.f32 %v3786_v24  ;;  %v3654_v31 = vadd.f32 %v7763_v28, %v7652_v35  ;;  %v7870_v45 = vmul.f32 %v3901_v8, %v7758_v50 }
 0x90c   : > { %v7857_v58 = vpop.f32.mrb[120].mxu1  ;;  %v7859_v5 = vpop.f32.mrb[104].mxu0  ;;  %v7872_v63 = vmul.f32 0.5, %v3646_v59  ;;  %v7874_v37 = vmul.f32 0.5, %v3535_v9  ;;  %v3788_v32 = vmul.f32 0.70710677, %v3652_v39  ;;  %v7881_v2 = vmul.f32 %v3902_v0, %v7765_v51 }
 0x90d   : > { %v7865_v54 = vpop.f32.mrb[121].mxu1  ;;  %v7867_v17 = vpop.f32.mrb[105].mxu0  ;;  %v7884_v28 = vmul.f32 %v3904_v40, %v7792_v43  ;;  %v7886_v6 = vmul.f32 0.5, %v3648_v18  ;;  %v7888_v50 = vmul.f32 0.5, %v3539_v46  ;;  %v4015_v51 = vpack.c.bf16 %v7795_v61, %v7756_v1 }
 0x90e   : > { %8328 = vst [vmem:[#allocation34_spill] sm:$0xff] %v7867_v17  ;;  %v7876_v52 = vpop.f32.mrb[122].mxu1  ;;  %v7878_v62 = vpop.f32.mrb[106].mxu0  ;;  %v3787_v17 = vmul.f32 0.70710677, %v3541_v3  ;;  %v7900_v40 = vmul.f32 %v3905_v29, %v7799_v36  ;;  %6040 = verf.f32 %v3788_v32  ;;  %v4017_v18 = vpack.c.bf16 %v7822_v26, %v7772_v44 }
 0x90f   : > { %8329 = vst [vmem:[#allocation35_spill] sm:$0xff] %v7876_v52  ;;  %8330 = vst [vmem:[#allocation36_spill] sm:$0xff] %v7878_v62  ;;  %v6025_v24 = vpop.eup %6024  ;;  %v7890_v59 = vpop.f32.mrb[123].mxu1  ;;  %v7895_v52 = vmul.f32 %v3903_v25, %v7797_v55  ;;  %v3906_v62 = vadd.f32 1.0, %v6023_v38  ;;  %v3789_v43 = vmul.f32 0.70710677, %v3654_v31  ;;  %4345 = vmatprep.mubr.bf16.mxu1 %v4015_v51  ;;  %v3543_v55 = vadd.f32 %v7767_v47, %v7646_v19 }
 0x910   : > { %v7892_v9 = vpop.f32.mrb[107].mxu0  ;;  %v6027_v8 = vpop.eup %6026  ;;  %v3908_v46 = vadd.f32 1.0, %v6025_v24  ;;  %v3656_v25 = vadd.f32 %v7769_v14, %v7648_v33  ;;  %v7910_v38 = vmul.f32 0.5, %v3541_v3  ;;  %4442 = vmatprep.mubr.bf16.mxu0 %v4017_v18  ;;  %v4014_v36 = vpack.c.bf16 %v7777_v10, %v7740_v16 }
 0x911   : > { %8331 = vst [vmem:[#allocation37_spill] sm:$0xff] %v7892_v9  ;;  %v6029_v0 = vpop.eup %6028  ;;  %v7904_v9 = vmul.f32 0.5, %v3652_v39  ;;  %v3907_v61 = vadd.f32 1.0, %v6027_v8  ;;  %v4016_v44 = vpack.c.bf16 %v7790_v49, %v7743_v12  ;;  %v7917_v39 = vmul.f32 %v3906_v62, %v7831_v27 }
 0x912   : > { %v6031_v1 = vpop.eup %6030  ;;  %v3909_v29 = vadd.f32 1.0, %v6029_v0  ;;  %6042 = verf.f32 %v3787_v17  ;;  %v3790_v47 = vmul.f32 0.70710677, %v3543_v55  ;;  %v7921_v24 = vmul.f32 0.5, %v3654_v31  ;;  %4346 = vmatmul.mubr.bf16.gmra.mrb[132].mxu1 %v4014_v36 }
 0x913   : > { %v6033_v26 = vpop.eup %6032  ;;  %6044 = verf.f32 %v3789_v43  ;;  %v3792_v3 = vmul.f32 0.70710677, %v3656_v25  ;;  %4443 = vmatmul.mubr.bf16.gmra.mrb[116].mxu0 %v4016_v44  ;;  %v3545_v16 = vadd.f32 %v7774_v22, %v7650_v23  ;;  %v7930_v27 = vmul.f32 %v3908_v46, %v7835_v34 }
 0x914   : > { %v7919_v32 = vpop.f32.mrb[124].mxu1  ;;  %v6035_v14 = vpop.eup %6034  ;;  %6046 = verf.f32 %v3790_v47  ;;  %v3658_v31 = vadd.f32 %v7783_v60, %v7652_v35  ;;  %v3549_v17 = vadd.f32 %v7809_v7, %v7646_v19  ;;  %v7941_v51 = vmul.f32 %v3907_v61, %v7837_v15 }
 0x915   : > { %v7925_v12 = vpop.f32.mrb[108].mxu0  ;;  %v7927_v10 = vpop.f32.mrb[125].mxu1  ;;  %v3910_v0 = vadd.f32 1.0, %v6031_v1  ;;  %v3912_v43 = vadd.f32 1.0, %v6033_v26  ;;  %6048 = verf.f32 %v3792_v3  ;;  %v7948_v60 = vmul.f32 %v3909_v29, %v7846_v53 }
 0x916   : > { %v6037_v49 = vpop.eup %6036  ;;  %v7936_v62 = vpop.f32.mrb[109].mxu0  ;;  %v3911_v46 = vadd.f32 1.0, %v6035_v14  ;;  %v3791_v7 = vmul.f32 0.70710677, %v3545_v16  ;;  %v3793_v36 = vmul.f32 0.70710677, %v3658_v31  ;;  %v3662_v15 = vadd.f32 %v7811_v42, %v7648_v33 }
 0x917   : > { %v7938_v8 = vpop.f32.mrb[126].mxu1  ;;  %v6039_v22 = vpop.eup %6038  ;;  %v3913_v44 = vadd.f32 1.0, %v6037_v49  ;;  %v3794_v61 = vmul.f32 0.70710677, %v3549_v17  ;;  %v3551_v26 = vadd.f32 %v7817_v57, %v7650_v23  ;;  %v3664_v53 = vadd.f32 %v7819_v48, %v7652_v35 }
 0x918   : > { %8332 = vst [vmem:[#allocation38_spill] sm:$0xff] %v7938_v8  ;;  %v7943_v34 = vpop.f32.mrb[110].mxu0  ;;  %v7945_v18 = vpop.f32.mrb[127].mxu1  ;;  %v3914_v47 = vadd.f32 1.0, %v6039_v22  ;;  %v7950_v8 = vmul.f32 0.5, %v3543_v55  ;;  %6050 = verf.f32 %v3791_v7  ;;  %v7961_v14 = vmul.f32 %v3910_v0, %v7861_v13 }
 0x919   : > { %v7954_v1 = vpop.f32.mrb[111].mxu0  ;;  %v6041_v29 = vpop.eup %6040  ;;  %v7964_v55 = vmul.f32 %v3912_v43, %v7872_v63  ;;  %v3728_v3 = vmul.f32 0.5, %v3656_v25  ;;  %v3796_v49 = vmul.f32 0.70710677, %v3662_v15  ;;  %v7967_v42 = vmul.f32 %v3911_v46, %v7874_v37 }
 0x91a   : > { %v7969_v22 = vmul.f32 0.5, %v3545_v16  ;;  %6052 = verf.f32 %v3793_v36  ;;  %v3795_v7 = vmul.f32 0.70710677, %v3551_v26  ;;  %v7972_v57 = vmul.f32 %v3913_v44, %v7886_v6 }
 0x91b   : > { %v7975_v48 = vmul.f32 %v3914_v47, %v7888_v50  ;;  %v7977_v13 = vmul.f32 0.5, %v3658_v31  ;;  %v7979_v0 = vmul.f32 0.5, %v3549_v17  ;;  %v3916_v25 = vadd.f32 1.0, %v6041_v29 }
 0x91c   : > { %v6043_v63 = vpop.eup %6042  ;;  %6054 = verf.f32 %v3794_v61  ;;  %v3797_v43 = vmul.f32 0.70710677, %v3664_v53  ;;  %v4019_v37 = vpack.c.bf16 %v7895_v52, %v7851_v4  ;;  %v4021_v6 = vpack.c.bf16 %v7900_v40, %v7870_v45 }
 0x91d   : > { %v6045_v16 = vpop.eup %6044  ;;  %6056 = verf.f32 %v3796_v49  ;;  %v3553_v50 = vadd.f32 %v7824_v56, %v7646_v19  ;;  %v3666_v31 = vadd.f32 %v7826_v20, %v7648_v33  ;;  %v4018_v46 = vpack.c.bf16 %v7881_v2, %v7829_v21 }
 0x91e   : > { %v6047_v17 = vpop.eup %6046  ;;  %6058 = verf.f32 %v3795_v7  ;;  %4353 = vmatprep.mubr.bf16.mxu1 %v4019_v37  ;;  %v4020_v4 = vpack.c.bf16 %v7884_v28, %v7844_v30  ;;  %v3555_v52 = vadd.f32 %v7833_v11, %v7650_v23  ;;  %v3915_v45 = vadd.f32 1.0, %v6043_v63  ;;  %4450 = vmatprep.mubr.bf16.mxu0 %v4021_v6 }
 0x91f   : > { %v6049_v36 = vpop.eup %6048  ;;  %v7995_v40 = vmul.f32 0.5, %v3662_v15  ;;  %6060 = verf.f32 %v3797_v43  ;;  %v3798_v56 = vmul.f32 0.70710677, %v3553_v50  ;;  %v3917_v20 = vadd.f32 1.0, %v6045_v16  ;;  %4354 = vmatmul.mubr.bf16.gmra.mrb[136].mxu1 %v4018_v46 }
 0x920   : > { %v7997_v44 = vmul.f32 0.5, %v3551_v26  ;;  %v3800_v47 = vmul.f32 0.70710677, %v3666_v31  ;;  %4451 = vmatmul.mubr.bf16.gmra.mrb[120].mxu0 %v4020_v4  ;;  %v3799_v21 = vmul.f32 0.70710677, %v3555_v52  ;;  %v8000_v2 = vmul.f32 %v3916_v25, %v7904_v9 }
 0x921   : > { %6062 = verf.f32 %v3798_v56  ;;  %v3668_v11 = vadd.f32 %v7841_v41, %v7652_v35  ;;  %v3559_v30 = vadd.f32 %v7857_v58, %v7646_v19  ;;  %v3918_v15 = vadd.f32 1.0, %v6047_v17 }
 0x922   : > { %v6051_v28 = vpop.eup %6050  ;;  %v3920_v61 = vadd.f32 1.0, %v6049_v36  ;;  %6064 = verf.f32 %v3800_v47  ;;  %v3672_v26 = vadd.f32 %v7859_v5, %v7648_v33  ;;  %v8008_v29 = vmul.f32 0.5, %v3664_v53  ;;  %v8333_v36 = vld [vmem:[#allocation34_spill] sm:$0xff]  ;;  %v8334_v47 = vld [vmem:[#allocation35_spill] sm:$0xff] }
 0x923   : > { %6066 = verf.f32 %v3799_v21  ;;  %v3801_v49 = vmul.f32 0.70710677, %v3668_v11  ;;  %v3561_v9 = vadd.f32 %v7865_v54, %v7650_v23  ;;  %v8013_v41 = vmul.f32 %v3915_v45, %v7910_v38 }
 0x924   : > { %v6053_v7 = vpop.eup %6052  ;;  %v8016_v58 = vmul.f32 %v3917_v20, %v7921_v24  ;;  %v8018_v63 = vmul.f32 0.5, %v3553_v50  ;;  %v3802_v25 = vmul.f32 0.70710677, %v3559_v30  ;;  %v3919_v43 = vadd.f32 1.0, %v6051_v28  ;;  %v8335_v28 = vld [vmem:[#allocation36_spill] sm:$0xff] }
 0x925   : > { %v8020_v37 = vmul.f32 0.5, %v3666_v31  ;;  %6068 = verf.f32 %v3801_v49  ;;  %v3804_v5 = vmul.f32 0.70710677, %v3672_v26  ;;  %v8023_v16 = vmul.f32 %v3918_v15, %v7950_v8 }
 0x926   : > { %v6055_v53 = vpop.eup %6054  ;;  %v8025_v54 = vmul.f32 %v3920_v61, %v3728_v3  ;;  %v8027_v6 = vmul.f32 0.5, %v3555_v52  ;;  %6070 = verf.f32 %v3802_v25  ;;  %v3921_v24 = vadd.f32 1.0, %v6053_v7 }
 0x927   : > { %v6057_v38 = vpop.eup %6056  ;;  %v8029_v17 = vmul.f32 0.5, %v3668_v11  ;;  %v8031_v50 = vmul.f32 0.5, %v3559_v30  ;;  %v3803_v46 = vmul.f32 0.70710677, %v3561_v9  ;;  %v8033_v4 = vmul.f32 0.5, %v3672_v26 }
 0x928   : > { %v6059_v31 = vpop.eup %6058  ;;  %v3674_v45 = vadd.f32 %v8333_v36, %v7652_v35  ;;  %v4023_v8 = vpack.c.bf16 %v7967_v42, %v7941_v51  ;;  %v4025_v3 = vpack.c.bf16 %v7972_v57, %v7948_v60  ;;  %v8042_v56 = vmul.f32 %v3919_v43, %v7969_v22 }
 0x929   : > { %v6061_v52 = vpop.eup %6060  ;;  %v3922_v20 = vadd.f32 1.0, %v6055_v53  ;;  %6072 = verf.f32 %v3804_v5  ;;  %v3563_v21 = vadd.f32 %v8334_v47, %v7646_v19  ;;  %v3924_v11 = vadd.f32 1.0, %v6057_v38 }
 0x92a   : > { %v3805_v30 = vmul.f32 0.70710677, %v3674_v45  ;;  %4361 = vmatprep.mubr.bf16.mxu1 %v4023_v8  ;;  %4458 = vmatprep.mubr.bf16.mxu0 %v4025_v3  ;;  %v3676_v15 = vadd.f32 %v8335_v28, %v7648_v33  ;;  %v4022_v51 = vpack.c.bf16 %v7961_v14, %v7917_v39  ;;  %v3923_v42 = vadd.f32 1.0, %v6059_v31  ;;  %v8336_v14 = vld [vmem:[#allocation37_spill] sm:$0xff] }
 0x92b   : > { %v6063_v60 = vpop.eup %6062  ;;  %6074 = verf.f32 %v3803_v46  ;;  %v3806_v22 = vmul.f32 0.70710677, %v3563_v21  ;;  %v4024_v57 = vpack.c.bf16 %v7964_v55, %v7930_v27  ;;  %v3985_v26 = vmul.f32 %v3921_v24, %v7977_v13 }
 0x92c   : > { %v6065_v61 = vpop.eup %6064  ;;  %v3925_v49 = vadd.f32 1.0, %v6061_v52  ;;  %6076 = verf.f32 %v3805_v30  ;;  %v3808_v7 = vmul.f32 0.70710677, %v3676_v15  ;;  %4362 = vmatmul.mubr.bf16.gmra.mrb[140].mxu1 %v4022_v51  ;;  %v8053_v43 = vmul.f32 0.5, %v3561_v9 }
 0x92d   : > { %v6067_v25 = vpop.eup %6066  ;;  %6078 = verf.f32 %v3806_v22  ;;  %4459 = vmatmul.mubr.bf16.gmra.mrb[124].mxu0 %v4024_v57  ;;  %v3565_v39 = vadd.f32 %v7890_v59, %v7650_v23  ;;  %v3678_v5 = vadd.f32 %v8336_v14, %v7652_v35  ;;  %v8060_v27 = vmul.f32 %v3922_v20, %v7979_v0 }
 0x92e   : > { %v8063_v55 = vmul.f32 %v3924_v11, %v7995_v40  ;;  %6080 = verf.f32 %v3808_v7  ;;  %v8067_v13 = vadd.f32 %v7919_v32, %v7646_v19  ;;  %v8070_v53 = vmul.f32 %v3923_v42, %v7997_v44 }
 0x92f   : > { %v6069_v9 = vpop.eup %6068  ;;  %v3926_v38 = vadd.f32 1.0, %v6063_v60  ;;  %v3928_v59 = vadd.f32 1.0, %v6065_v61  ;;  %v3807_v24 = vmul.f32 0.70710677, %v3565_v39  ;;  %v8073_v31 = vmul.f32 %v3925_v49, %v8008_v29 }
 0x930   : > { %v6071_v46 = vpop.eup %6070  ;;  %v3927_v0 = vadd.f32 1.0, %v6067_v25  ;;  %v8075_v36 = vmul.f32 0.5, %v3674_v45  ;;  %v3809_v40 = vmul.f32 0.70710677, %v3678_v5  ;;  %v3929_v8 = vadd.f32 1.0, %v6069_v9 }
 0x931   : > { %v3742_v3 = vmul.f32 0.5, %v3563_v21  ;;  %6082 = verf.f32 %v3807_v24  ;;  %v8079_v32 = vadd.f32 %v7925_v12, %v7648_v33  ;;  %v3744_v44 = vmul.f32 0.5, %v3676_v15 }
 0x932   : > { %6084 = verf.f32 %v3809_v40  ;;  %v3810_v52 = vmul.f32 0.70710677, %v8067_v13  ;;  %v8084_v20 = vadd.f32 %v7927_v10, %v7650_v23  ;;  %v8087_v45 = vmul.f32 %v3926_v38, %v8018_v63 }
 0x933   : > { %v6073_v29 = vpop.eup %6072  ;;  %v8090_v47 = vmul.f32 %v3928_v59, %v8020_v37  ;;  %v3930_v21 = vadd.f32 1.0, %v6071_v46  ;;  %v3812_v11 = vmul.f32 0.70710677, %v8079_v32  ;;  %v3991_v12 = vmul.f32 %v3927_v0, %v8027_v6  ;;  %v8337_v6 = vld [vmem:[#allocation38_spill] sm:$0xff] }
 0x934   : > { %v3743_v30 = vmul.f32 0.5, %v3565_v39  ;;  %v3745_v28 = vmul.f32 0.5, %v3678_v5  ;;  %v3811_v15 = vmul.f32 0.70710677, %v8084_v20  ;;  %v3993_v10 = vmul.f32 %v3929_v8, %v8029_v17 }
 0x935   : > { %v6075_v51 = vpop.eup %6074  ;;  %v8098_v60 = vadd.f32 %v7936_v62, %v7652_v35  ;;  %v4027_v63 = vpack.c.bf16 %v8042_v56, %v8013_v41  ;;  %v4029_v37 = vpack.c.bf16 %v3985_v26, %v8016_v58  ;;  %v3932_v22 = vadd.f32 1.0, %v6073_v29 }
 0x936   : > { %v6077_v42 = vpop.eup %6076  ;;  %6086 = verf.f32 %v3810_v52  ;;  %v3573_v57 = vadd.f32 %v8337_v6, %v7646_v19  ;;  %v8107_v61 = vadd.f32 %v7943_v34, %v7648_v33  ;;  %v8110_v49 = vmul.f32 %v3930_v21, %v8031_v50 }
 0x937   : > { %v6079_v17 = vpop.eup %6078  ;;  %6088 = verf.f32 %v3812_v11  ;;  %v3813_v62 = vmul.f32 0.70710677, %v8098_v60  ;;  %4369 = vmatprep.mubr.bf16.mxu1 %v4027_v63  ;;  %4466 = vmatprep.mubr.bf16.mxu0 %v4029_v37  ;;  %v4026_v41 = vpack.c.bf16 %v8023_v16, %v7975_v48  ;;  %v3931_v56 = vadd.f32 1.0, %v6075_v51 }
 0x938   : > { %v6081_v58 = vpop.eup %6080  ;;  %v3934_v26 = vadd.f32 1.0, %v6079_v17  ;;  %6090 = verf.f32 %v3811_v15  ;;  %v3814_v19 = vmul.f32 0.70710677, %v3573_v57  ;;  %v3933_v7 = vadd.f32 1.0, %v6077_v42 }
 0x939   : > { %v3936_v33 = vadd.f32 1.0, %v6081_v58  ;;  %6092 = verf.f32 %v3813_v62  ;;  %v3816_v34 = vmul.f32 0.70710677, %v8107_v61  ;;  %4370 = vmatmul.mubr.bf16.gmra.mrb[144].mxu1 %v4026_v41  ;;  %v4028_v25 = vpack.c.bf16 %v8025_v54, %v8000_v2 }
 0x93a   : > { %v3998_v50 = vmul.f32 %v3934_v26, %v3742_v3  ;;  %6094 = verf.f32 %v3814_v19  ;;  %v3575_v39 = vadd.f32 %v7945_v18, %v7650_v23  ;;  %v3688_v14 = vadd.f32 %v7954_v1, %v7652_v35 }
 0x93b   : > { %v6083_v48 = vpop.eup %6082  ;;  %v8120_v16 = vmul.f32 %v3936_v33, %v3744_v44  ;;  %6096 = verf.f32 %v3816_v34  ;;  %v4031_v5 = vpack.c.bf16 %v3991_v12, %v8070_v53  ;;  %v3996_v38 = vmul.f32 %v3932_v22, %v8033_v4  ;;  %4467 = vmatmul.mubr.bf16.gmra.mrb[128].mxu0 %v4028_v25 }
 0x93c   : > { %v6085_v9 = vpop.eup %6084  ;;  %v3935_v59 = vadd.f32 1.0, %v6083_v48  ;;  %v3815_v24 = vmul.f32 0.70710677, %v3575_v39  ;;  %v4033_v2 = vpack.c.bf16 %v3993_v10, %v8073_v31  ;;  %v3995_v54 = vmul.f32 %v3931_v56, %v8053_v43 }
 0x93d   : > { %v3937_v23 = vadd.f32 1.0, %v6085_v9  ;;  %v3817_v18 = vmul.f32 0.70710677, %v3688_v14  ;;  %4377 = vmatprep.mubr.bf16.mxu1 %v4031_v5  ;;  %v4030_v46 = vpack.c.bf16 %v8087_v45, %v8060_v27  ;;  %v3997_v35 = vmul.f32 %v3933_v7, %v8075_v36 }
 0x93e   : > { %v3999_v1 = vmul.f32 %v3935_v59, %v3743_v30  ;;  %6098 = verf.f32 %v3815_v24  ;;  %4474 = vmatprep.mubr.bf16.mxu0 %v4033_v2  ;;  %v4032_v4 = vpack.c.bf16 %v8090_v47, %v8063_v55  ;;  %v4034_v31 = vpack.c.bf16 %v3998_v50, %v8110_v49 }
 0x93f   : > { %v4001_v53 = vmul.f32 %v3937_v23, %v3745_v28  ;;  %6100 = verf.f32 %v3817_v18  ;;  %v4036_v43 = vpack.c.bf16 %v8120_v16, %v3996_v38  ;;  %v3746_v55 = vmul.f32 0.5, %v8067_v13 }
 0x940   : > { %v6087_v0 = vpop.eup %6086  ;;  %v4035_v40 = vpack.c.bf16 %v3999_v1, %v3995_v54  ;;  %v3750_v47 = vmul.f32 0.5, %v3573_v57  ;;  %v3748_v11 = vmul.f32 0.5, %v8079_v32  ;;  %v3752_v12 = vmul.f32 0.5, %v8107_v61  ;;  %v8338_v54 = vld [vmem:[#allocation18_spill] sm:$0xff] }
 0x941   : > { %v6089_v8 = vpop.eup %6088  ;;  %4378 = vmatmul.mubr.bf16.gmra.mrb[148].mxu1 %v4030_v46  ;;  %v4037_v3 = vpack.c.bf16 %v4001_v53, %v3997_v35  ;;  %v3938_v44 = vadd.f32 1.0, %v6087_v0  ;;  %v3747_v6 = vmul.f32 0.5, %v8084_v20  ;;  %v3751_v17 = vmul.f32 0.5, %v3575_v39  ;;  %v8339_v46 = vld [vmem:[#allocation19_spill] sm:$0xff] }
 0x942   : > { %v6091_v27 = vpop.eup %6090  ;;  %4385 = vmatprep.mubr.bf16.mxu1 %v4035_v40  ;;  %v3940_v29 = vadd.f32 1.0, %v6089_v8  ;;  %v3749_v49 = vmul.f32 0.5, %v8098_v60  ;;  %v3753_v32 = vmul.f32 0.5, %v3688_v14  ;;  %v8143_v60 = vld [vmem:[%s8263_s13] ss:$0 sm:$0xff] }
 0x943   : > { %v6093_v36 = vpop.eup %6092  ;;  %4475 = vmatmul.mubr.bf16.gmra.mrb[132].mxu0 %v4032_v4  ;;  %v4002_v28 = vmul.f32 %v3938_v44, %v3746_v55  ;;  %v3939_v15 = vadd.f32 1.0, %v6091_v27  ;;  %v8340_v55 = vld [vmem:[#allocation20_spill] sm:$0xff] }
 0x944   : > { %v6095_v52 = vpop.eup %6094  ;;  %4482 = vmatprep.mubr.bf16.mxu0 %v4037_v3  ;;  %v4004_v63 = vmul.f32 %v3940_v29, %v3748_v11  ;;  %v3941_v37 = vadd.f32 1.0, %v6093_v36  ;;  %v8341_v11 = vld [vmem:[#allocation21_spill] sm:$0xff] }
 0x945   : > { %v6097_v45 = vpop.eup %6096  ;;  %v3942_v21 = vadd.f32 1.0, %v6095_v52  ;;  %v4003_v41 = vmul.f32 %v3939_v15, %v3747_v6 }
 0x946   : > { %v3944_v30 = vadd.f32 1.0, %v6097_v45  ;;  %v4005_v56 = vmul.f32 %v3941_v37, %v3749_v49 }
 0x947   : > { %v4006_v51 = vmul.f32 %v3942_v21, %v3750_v47 }
 0x948   : > { %v6099_v10 = vpop.eup %6098  ;;  %v4008_v42 = vmul.f32 %v3944_v30, %v3752_v12 }
 0x949   : > { %v6101_v22 = vpop.eup %6100  ;;  %v3943_v13 = vadd.f32 1.0, %v6099_v10  ;;  %4386 = vmatmul.mubr.bf16.gmra.mrb[152].mxu1 %v4034_v31  ;;  %v4038_v57 = vpack.c.bf16 %v4006_v51, %v4002_v28 }
 0x94a   : > { %v3945_v62 = vadd.f32 1.0, %v6101_v22  ;;  %v4040_v61 = vpack.c.bf16 %v4008_v42, %v4004_v63 }
 0x94b   : > { %v4007_v58 = vmul.f32 %v3943_v13, %v3751_v17  ;;  %4483 = vmatmul.mubr.bf16.gmra.mrb[136].mxu0 %v4036_v43 }
 0x94c   : > { %v4009_v26 = vmul.f32 %v3945_v62, %v3753_v32  ;;  %v8342_v62 = vld [vmem:[#allocation22_spill] sm:$0xff] }
 0x94d   : > { %v4039_v19 = vpack.c.bf16 %v4007_v58, %v4003_v41  ;;  %v8343_v58 = vld [vmem:[#allocation23_spill] sm:$0xff] }
 0x94e   : > { %v4041_v7 = vpack.c.bf16 %v4009_v26, %v4005_v56 }
 0x94f   : > { %4393 = vmatprep.mubr.bf16.mxu1 %v4039_v19 }
 0x950   : > { %4490 = vmatprep.mubr.bf16.mxu0 %v4041_v7 }
 0x951   : > { %4394 = vmatmul.mubr.bf16.gmra.mrb[156].mxu1 %v4038_v57 }
 0x953   : > { %4491 = vmatmul.mubr.bf16.gmra.mrb[140].mxu0 %v4040_v61 }
 0x9d7   : > { %v5005_v20 = vpop.f32.mrb[128].mxu1  ;;  %v5069_v33 = vpop.f32.mrb[112].mxu0 }
 0x9d8   : > { %v5006_v34 = vpop.f32.mrb[129].mxu1  ;;  %v5070_v50 = vpop.f32.mrb[113].mxu0 }
 0x9d9   : > { %v5007_v25 = vadd.f32 %v5006_v34, %v5005_v20  ;;  %v5071_v39 = vadd.f32 %v5070_v50, %v5069_v33  ;;  %v5008_v48 = vpop.f32.mrb[130].mxu1  ;;  %v5072_v16 = vpop.f32.mrb[114].mxu0 }
 0x9da   : > { %v5009_v14 = vpop.f32.mrb[131].mxu1  ;;  %v5073_v5 = vpop.f32.mrb[115].mxu0 }
 0x9db   : > { %v4340_v9 = vadd.f32 %v5007_v25, %v8143_v60  ;;  %v5010_v38 = vadd.f32 %v5009_v14, %v5008_v48  ;;  %v5074_v59 = vadd.f32 %v5073_v5, %v5072_v16 }
 0x9dd   : > { %v4437_v24 = vadd.f32 %v5071_v39, %v4340_v9  ;;  %v4343_v2 = vadd.f32 %v5010_v38, %v8143_v60 }
 0x9df   : > { %v4499_v23 = vadd.f32 %v4437_v24, %v8338_v54  ;;  %v4440_v18 = vadd.f32 %v5074_v59, %v4343_v2  ;;  %v8344_v59 = vld [vmem:[#allocation24_spill] sm:$0xff]  ;;  %v8345_v54 = vld [vmem:[#allocation25_spill] sm:$0xff] }
 0x9e1   : > { %4515 = vst [vmem:[%s8151_s24] sm:$0xff] %v4499_v23  ;;  %v4500_v35 = vadd.f32 %v4440_v18, %v8339_v46 }
 0x9e3   : > { %4516 = vst [vmem:[%s8151_s24 + $0x8] sm:$0xff] %v4500_v35 }
 0x9e5   : > { %v5011_v1 = vpop.f32.mrb[132].mxu1 }
 0x9e6   : > { %v5075_v4 = vpop.f32.mrb[116].mxu0  ;;  %v5012_v53 = vpop.f32.mrb[133].mxu1 }
 0x9e7   : > { %v5076_v31 = vpop.f32.mrb[117].mxu0  ;;  %v5013_v43 = vadd.f32 %v5012_v53, %v5011_v1  ;;  %v5014_v40 = vpop.f32.mrb[134].mxu1 }
 0x9e8   : > { %v5077_v0 = vadd.f32 %v5076_v31, %v5075_v4  ;;  %v5078_v8 = vpop.f32.mrb[118].mxu0  ;;  %v5015_v3 = vpop.f32.mrb[135].mxu1 }
 0x9e9   : > { %v5079_v27 = vpop.f32.mrb[119].mxu0  ;;  %v4348_v36 = vadd.f32 %v5013_v43, %v8143_v60  ;;  %v5016_v44 = vadd.f32 %v5015_v3, %v5014_v40 }
 0x9ea   : > { %v5080_v52 = vadd.f32 %v5079_v27, %v5078_v8 }
 0x9eb   : > { %v4445_v29 = vadd.f32 %v5077_v0, %v4348_v36  ;;  %v4351_v45 = vadd.f32 %v5016_v44, %v8143_v60 }
 0x9ed   : > { %v4501_v47 = vadd.f32 %v4445_v29, %v8340_v55  ;;  %v4448_v21 = vadd.f32 %v5080_v52, %v4351_v45  ;;  %v8346_v29 = vld [vmem:[#allocation26_spill] sm:$0xff] }
 0x9ef   : > { %4517 = vst [vmem:[%s8151_s24 + $0x10] sm:$0xff] %v4501_v47  ;;  %v4502_v12 = vadd.f32 %v4448_v21, %v8341_v11 }
 0x9f1   : > { %4518 = vst [vmem:[%s8151_s24 + $0x18] sm:$0xff] %v4502_v12  ;;  %v8347_v12 = vld [vmem:[#allocation27_spill] sm:$0xff] }
 0x9f2   : > { %v5017_v30 = vpop.f32.mrb[136].mxu1 }
 0x9f3   : > { %v5081_v28 = vpop.f32.mrb[120].mxu0  ;;  %v5018_v15 = vpop.f32.mrb[137].mxu1 }
 0x9f4   : > { %v5082_v51 = vpop.f32.mrb[121].mxu0  ;;  %v5019_v10 = vadd.f32 %v5018_v15, %v5017_v30  ;;  %v5020_v37 = vpop.f32.mrb[138].mxu1 }
 0x9f5   : > { %v5083_v63 = vadd.f32 %v5082_v51, %v5081_v28  ;;  %v5084_v42 = vpop.f32.mrb[122].mxu0  ;;  %v5021_v22 = vpop.f32.mrb[139].mxu1 }
 0x9f6   : > { %v5085_v6 = vpop.f32.mrb[123].mxu0  ;;  %v4356_v17 = vadd.f32 %v5019_v10, %v8143_v60  ;;  %v5022_v13 = vadd.f32 %v5021_v22, %v5020_v37 }
 0x9f7   : > { %v5086_v57 = vadd.f32 %v5085_v6, %v5084_v42 }
 0x9f8   : > { %v4453_v49 = vadd.f32 %v5083_v63, %v4356_v17  ;;  %v4359_v32 = vadd.f32 %v5022_v13, %v8143_v60 }
 0x9fa   : > { %v4503_v61 = vadd.f32 %v4453_v49, %v8342_v62  ;;  %v4456_v41 = vadd.f32 %v5086_v57, %v4359_v32  ;;  %v8348_v49 = vld [vmem:[#allocation28_spill] sm:$0xff] }
 0x9fc   : > { %4519 = vst [vmem:[%s8151_s24 + $0x20] sm:$0xff] %v4503_v61  ;;  %v4504_v56 = vadd.f32 %v4456_v41, %v8343_v58 }
 0x9fe   : > { %4520 = vst [vmem:[%s8151_s24 + $0x28] sm:$0xff] %v4504_v56  ;;  %v8349_v56 = vld [vmem:[#allocation29_spill] sm:$0xff] }
 0x9ff   : > { %v5023_v26 = vpop.f32.mrb[140].mxu1 }
 0xa00   : > { %v5087_v19 = vpop.f32.mrb[124].mxu0  ;;  %v5024_v7 = vpop.f32.mrb[141].mxu1 }
 0xa01   : > { %v5025_v20 = vadd.f32 %v5024_v7, %v5023_v26  ;;  %v5088_v33 = vpop.f32.mrb[125].mxu0  ;;  %v5026_v34 = vpop.f32.mrb[142].mxu1 }
 0xa02   : > { %v5089_v50 = vadd.f32 %v5088_v33, %v5087_v19  ;;  %v5090_v25 = vpop.f32.mrb[126].mxu0  ;;  %v5027_v39 = vpop.f32.mrb[143].mxu1 }
 0xa03   : > { %v4364_v48 = vadd.f32 %v5025_v20, %v8143_v60  ;;  %v5028_v16 = vadd.f32 %v5027_v39, %v5026_v34  ;;  %v5091_v14 = vpop.f32.mrb[127].mxu0 }
 0xa04   : > { %v5092_v5 = vadd.f32 %v5091_v14, %v5090_v25 }
 0xa05   : > { %v4461_v9 = vadd.f32 %v5089_v50, %v4364_v48  ;;  %v4367_v38 = vadd.f32 %v5028_v16, %v8143_v60 }
 0xa07   : > { %v4505_v24 = vadd.f32 %v4461_v9, %v8344_v59  ;;  %v4464_v2 = vadd.f32 %v5092_v5, %v4367_v38  ;;  %v8350_v9 = vld [vmem:[#allocation30_spill] sm:$0xff] }
 0xa09   : > { %4521 = vst [vmem:[%s8151_s24 + $0x30] sm:$0xff] %v4505_v24  ;;  %v4506_v23 = vadd.f32 %v4464_v2, %v8345_v54 }
 0xa0b   : > { %4522 = vst [vmem:[%s8151_s24 + $0x38] sm:$0xff] %v4506_v23  ;;  %v8351_v23 = vld [vmem:[#allocation31_spill] sm:$0xff] }
 0xa0c   : > { %v5029_v18 = vpop.f32.mrb[144].mxu1 }
 0xa0d   : > { %v5030_v46 = vpop.f32.mrb[145].mxu1 }
 0xa0e   : > { %v5031_v35 = vadd.f32 %v5030_v46, %v5029_v18  ;;  %v5032_v1 = vpop.f32.mrb[146].mxu1  ;;  %v5093_v4 = vpop.f32.mrb[128].mxu0 }
 0xa0f   : > { %v5033_v53 = vpop.f32.mrb[147].mxu1  ;;  %v5094_v43 = vpop.f32.mrb[129].mxu0 }
 0xa10   : > { %v4372_v31 = vadd.f32 %v5031_v35, %v8143_v60  ;;  %v5034_v0 = vadd.f32 %v5033_v53, %v5032_v1  ;;  %v5095_v40 = vadd.f32 %v5094_v43, %v5093_v4  ;;  %v5096_v8 = vpop.f32.mrb[130].mxu0 }
 0xa11   : > { %v5097_v27 = vpop.f32.mrb[131].mxu0 }
 0xa12   : > { %v4375_v3 = vadd.f32 %v5034_v0, %v8143_v60  ;;  %v4469_v36 = vadd.f32 %v5095_v40, %v4372_v31  ;;  %v5098_v44 = vadd.f32 %v5097_v27, %v5096_v8  ;;  %v8353_v27 = vld [vmem:[#allocation32_spill] sm:$0xff] }
 0xa14   : > { %v5035_v52 = vpop.f32.mrb[148].mxu1  ;;  %v4507_v45 = vadd.f32 %v4469_v36, %v8346_v29  ;;  %v4472_v55 = vadd.f32 %v5098_v44, %v4375_v3 }
 0xa15   : > { %v5036_v47 = vpop.f32.mrb[149].mxu1 }
 0xa16   : > { %v5037_v21 = vadd.f32 %v5036_v47, %v5035_v52  ;;  %v5038_v11 = vpop.f32.mrb[150].mxu1  ;;  %4523 = vst [vmem:[%s8151_s24 + $0x40] sm:$0xff] %v4507_v45  ;;  %v4508_v30 = vadd.f32 %v4472_v55, %v8347_v12  ;;  %v5099_v28 = vpop.f32.mrb[132].mxu0 }
 0xa17   : > { %v5039_v15 = vpop.f32.mrb[151].mxu1  ;;  %v5100_v10 = vpop.f32.mrb[133].mxu0 }
 0xa18   : > { %v4380_v51 = vadd.f32 %v5037_v21, %v8143_v60  ;;  %v5040_v63 = vadd.f32 %v5039_v15, %v5038_v11  ;;  %4524 = vst [vmem:[%s8151_s24 + $0x48] sm:$0xff] %v4508_v30  ;;  %v5101_v37 = vadd.f32 %v5100_v10, %v5099_v28  ;;  %v5102_v42 = vpop.f32.mrb[134].mxu0 }
 0xa19   : > { %v5103_v6 = vpop.f32.mrb[135].mxu0 }
 0xa1a   : > { %v4383_v22 = vadd.f32 %v5040_v63, %v8143_v60  ;;  %v4477_v17 = vadd.f32 %v5101_v37, %v4380_v51  ;;  %v5104_v13 = vadd.f32 %v5103_v6, %v5102_v42 }
 0xa1c   : > { %v5041_v57 = vpop.f32.mrb[152].mxu1  ;;  %v4509_v32 = vadd.f32 %v4477_v17, %v8348_v49  ;;  %v4480_v62 = vadd.f32 %v5104_v13, %v4383_v22 }
 0xa1d   : > { %v5042_v61 = vpop.f32.mrb[153].mxu1 }
 0xa1e   : > { %v5043_v41 = vadd.f32 %v5042_v61, %v5041_v57  ;;  %v5044_v58 = vpop.f32.mrb[154].mxu1  ;;  %4525 = vst [vmem:[%s8151_s24 + $0x50] sm:$0xff] %v4509_v32  ;;  %v4510_v26 = vadd.f32 %v4480_v62, %v8349_v56  ;;  %v5105_v19 = vpop.f32.mrb[136].mxu0 }
 0xa1f   : > { %v5045_v7 = vpop.f32.mrb[155].mxu1  ;;  %v5106_v33 = vpop.f32.mrb[137].mxu0 }
 0xa20   : > { %v4388_v20 = vadd.f32 %v5043_v41, %v8143_v60  ;;  %v5046_v34 = vadd.f32 %v5045_v7, %v5044_v58  ;;  %4526 = vst [vmem:[%s8151_s24 + $0x58] sm:$0xff] %v4510_v26  ;;  %v5107_v50 = vadd.f32 %v5106_v33, %v5105_v19  ;;  %v5108_v25 = vpop.f32.mrb[138].mxu0 }
 0xa21   : > { %v5109_v48 = vpop.f32.mrb[139].mxu0 }
 0xa22   : > { %v4391_v39 = vadd.f32 %v5046_v34, %v8143_v60  ;;  %v4485_v16 = vadd.f32 %v5107_v50, %v4388_v20  ;;  %v5110_v14 = vadd.f32 %v5109_v48, %v5108_v25 }
 0xa24   : > { %v5047_v5 = vpop.f32.mrb[156].mxu1  ;;  %v4511_v38 = vadd.f32 %v4485_v16, %v8350_v9  ;;  %v4488_v59 = vadd.f32 %v5110_v14, %v4391_v39 }
 0xa25   : > { %v5048_v24 = vpop.f32.mrb[157].mxu1 }
 0xa26   : > { %v5049_v2 = vadd.f32 %v5048_v24, %v5047_v5  ;;  %v5050_v54 = vpop.f32.mrb[158].mxu1  ;;  %4527 = vst [vmem:[%s8151_s24 + $0x60] sm:$0xff] %v4511_v38  ;;  %v4512_v18 = vadd.f32 %v4488_v59, %v8351_v23  ;;  %v5111_v46 = vpop.f32.mrb[140].mxu0 }
 0xa27   : > { %v5051_v35 = vpop.f32.mrb[159].mxu1  ;;  %v5112_v4 = vpop.f32.mrb[141].mxu0 }
 0xa28   : > { %v4396_v1 = vadd.f32 %v5049_v2, %v8143_v60  ;;  %v5052_v53 = vadd.f32 %v5051_v35, %v5050_v54  ;;  %4528 = vst [vmem:[%s8151_s24 + $0x68] sm:$0xff] %v4512_v18  ;;  %v5113_v31 = vadd.f32 %v5112_v4, %v5111_v46  ;;  %v5114_v43 = vpop.f32.mrb[142].mxu0 }
 0xa29   : > { %v5115_v40 = vpop.f32.mrb[143].mxu0 }
 0xa2a   : > { %v4399_v0 = vadd.f32 %v5052_v53, %v8143_v60  ;;  %v4493_v8 = vadd.f32 %v5113_v31, %v4396_v1  ;;  %v5116_v3 = vadd.f32 %v5115_v40, %v5114_v43  ;;  %v8356_v60 = vld [vmem:[#allocation33_spill] sm:$0xff] }
 0xa2c   : > { %v4513_v36 = vadd.f32 %v4493_v8, %v8353_v27  ;;  %v4496_v44 = vadd.f32 %v5116_v3, %v4399_v0 }
 0xa2e   : > { %4529 = vst [vmem:[%s8151_s24 + $0x70] sm:$0xff] %v4513_v36  ;;  %v4514_v52 = vadd.f32 %v4496_v44, %v8356_v60 }
 0xa30   : > { %4530 = vst [vmem:[%s8151_s24 + $0x78] sm:$0xff] %v4514_v52 }
 0xa31   : > { %6187 = shalt.err (!%p6184_p11)
}
 0xa32   : > { %s6188_s29 = scalar_lea.hbm %s8200_s19, 2048  ;;  %s6192_s26 = scalar_lea.hbm %s8355_s23, 4096 }
 0xa33   : > { %p6189_p13 = scmp.ne.s32.totalorder %s8200_s19, %s6188_s29  ;;  %p6193_p6 = scmp.lt.u32.totalorder %s8200_s19, %s8355_s23 }
 0xa34   : > { %p6194_p9 = scmp.lt.u32.totalorder %s6192_s26, %s6188_s29  ;;  %p6196_p12 = scmp.lt.u32.totalorder %s6188_s29, %s8200_s19 }
 0xa35   : > { %p6190_p5 = pnand %p6189_p13, %p8357_p1 }
 0xa36   : > { %p6195_p10 = por %p6194_p9, %p6193_p6 }
 0xa37   : > { %p6191_p0 = pneg %p6190_p5 }
 0xa38   : > { %p6197_p2 = por %p6196_p12, %p6195_p10 }
 0xa3a   : > { %p6198_p3 = pnand %p6197_p2, %p6191_p0 }
 0xa3c   : > { %6201 = shalt.err (!%p6198_p3)
}
 0xa3d   : > { %s6252_s16 = smov 128   ;;  %s6253_s28 = smov 8  }
 0xa3e   : > { %5525 = dma.vmem_to_hbm [thread:$0]  (%p8357_p1), %s8202_s18, 2048, %s8200_s19, %s8209_s17, %s6252_s16, %s6252_s16, %s6253_s28  }
 0xa3f PF: > { %s8358_s20 = sld [smem:[#allocation13_spill]]  ;;  %s8359_s25 = sld [smem:[#allocation11_spill]] }
 0xa40   : > { %s8360_s22 = sld [smem:[#allocation17_spill]] }
 0xa45   : > { %p5542_p4 = scmp.ge.s32.totalorder %s8358_s20, 2  ;;  %s4560_s15 = sand.u32 1, %s8359_s25  }
 0xa46   : > { %p8361_p7 = scmp.ne.s32.totalorder %s8360_s22, 0  ;;  %s4561_s29 = scalar_lea.sflag [#allocation4], %s4560_s15 }
 0xa48   : > { %p5535_p8 = pnand %p5542_p4, %p8361_p7 }
 0xa4a   : > { %6227 = dma.done.wait (!%p5535_p8), %s4561_s29, 2048  }
 0xa4b   : > { %6229 = vsyncadd (!%p5535_p8), %s4561_s29, 4294965248  ;;  %s8362_s16 = sld [smem:[#allocation14_spill]]  ;;  %s8363_s24 = sld [smem:[#allocation12_spill]] }
 0xa4c   : > { %s8364_s15 = sld [smem:[#allocation15_spill]]  ;;  %s8365_s29 = smov %s6236_s30 }
 0xa51   : > { %p26_p11 = scmp.ge.s32.totalorder %s8362_s16, 4   ;;  %s8366_s30 = smov %s8363_s24 }
 0xa53   :  { %28 = sbr.rel (!%p26_p11) target bundleno = 7 (0x7), region = 120 }
 0xa5a   :  { %4566 = vsyncpa [#allocation3], 1 }
 0xa5b   :  { %4568 = vsyncpa [#allocation3 + $0x1], 1 }
 0xa5c   :  { %4569 = vsyncpa [#allocation6], 1 }
 0xa5d   :  { %4570 = vsyncpa [#allocation4], 1 }
 0xa5e   :  { %4572 = vsyncpa [#allocation4 + $0x1], 1 }

</bundles_post_ra>
